<compile_context>
chip_gen: v6e
topology: v6e:2x2x1
jax: 0.10.0
libtpu: 0.0.40
codegen_flags: <defaults>
</compile_context>

<pallas_src>
import jax
import jax.numpy as jnp
from jax.experimental import pallas as pl
from jax.experimental.pallas import tpu as pltpu


def _vmem_capacity_bytes():
    try:
        return int(pltpu.get_tpu_info().vmem_capacity_bytes)
    except Exception:
        return 64 * 1024 * 1024          # conservative: v7x per-TC VMEM


def _pick_tile_h(H, *, n_batch, C, W):
    """Largest tile height (multiple of 16 dividing H) fitting a VMEM budget,
    while keeping >= 2 parallel grid steps so both v7x TensorCores get work."""
    if H % 16 != 0:
        return H                          # single-tile fallback
    budget = _vmem_capacity_bytes() // 8  # headroom for double-buffers / temps
    # f32 bytes per output-row-pair per step (input row pair + output rows), x2 buffers
    per_th2_row = 2 * 4 * (C * 2 * W + 2 * C * (W // 2))
    cap_th2 = max(8, budget // max(per_th2_row, 1))
    cands = [t for t in range(16, H + 1, 16) if H % t == 0 and (t // 2) <= cap_th2]
    if not cands:
        cands = [16]
    th = max(cands)                       # v5e/v6e: biggest tile that fits
    if n_batch * (H // th) < 2:           # v7x: keep both TensorCores busy
        ok = [t for t in cands if n_batch * (H // t) >= 2]
        if ok:
            th = max(ok)
    return th


def _make_kernel(C, Cout, TH2, W, HB2, n_th):
    W2 = W // 2

    def kernel(w_ref, csel0_ref, csel1_ref, x_ref, top_ref, bot_ref, o_ref):
        t = pl.program_id(1)
        f32 = jnp.float32

        # Row-pair tile: lanes [0, W) = even image rows, [W, 2W) = odd rows.
        xt = x_ref[0].astype(f32)                          # (C, TH2, 2W)
        xe = xt[:, :, :W]                                  # image rows 2r
        xo = xt[:, :, W:]                                  # image rows 2r + 1

        # One halo image-row above / below the tile, zero-masked at the borders.
        top = top_ref[0, :, HB2 - 1:HB2, W:].astype(f32)   # image row t*TH - 1 (odd)
        bot = bot_ref[0, :, 0:1, :W].astype(f32)           # image row (t+1)*TH (even)
        top = top * (t > 0).astype(f32)
        bot = bot * (t < n_th - 1).astype(f32)

        # Row-parity buffers with a single zero column of padding on each side:
        #   ev[:, r] = image row 2r      (r in [0, TH2], last row = bottom halo)
        #   od[:, r] = image row 2r - 1  (r in [0, TH2], first row = top halo)
        zc = jnp.zeros((C, TH2 + 1, 1), f32)
        ev = jnp.concatenate([zc, jnp.concatenate([xe, bot], axis=1), zc], axis=2)
        od = jnp.concatenate([zc, jnp.concatenate([top, xo], axis=1), zc], axis=2)

        def row_slab(d):
            # Input rows 2*oh + d for oh in [0, TH2); d = i + ki - 1 in {-1,0,1,2}.
            src = ev if d % 2 == 0 else od
            r0 = (d + 1) // 2
            return src[:, r0:r0 + TH2, :]                  # (C, TH2, W + 2)

        csel0 = csel0_ref[...]                             # picks cols 0,2,4,...
        csel1 = csel1_ref[...]                             # picks cols 1,3,5,...

        for i in range(2):                                 # output row phase
            # 3 independent partial sums per output channel (one per kernel row)
            # -> 6 independent MAC chains fill the 4 VALU slots.
            part = [[jnp.zeros((TH2, W), f32) for _ in range(3)]
                    for _ in range(Cout)]
            for ki in range(3):
                slab = row_slab(i + ki - 1)
                for kj in range(3):
                    win = slab[:, :, kj:kj + W]            # (C, TH2, W) tap window
                    for ci in range(C):
                        wci = win[ci]
                        for co in range(Cout):
                            w_s = w_ref[((co * C + ci) * 3 + ki) * 3 + kj]
                            part[co][ki] = part[co][ki] + w_s * wci
            # Stack the Cout accumulators, then column-decimate once per phase
            # with two constant 0/1 matmuls (exact: precision=HIGHEST).
            big = jnp.concatenate(
                [part[co][0] + part[co][1] + part[co][2] for co in range(Cout)],
                axis=0)                                    # (Cout*TH2, W)
            res0 = jnp.dot(big, csel0, preferred_element_type=f32,
                           precision=jax.lax.Precision.HIGHEST)
            res1 = jnp.dot(big, csel1, preferred_element_type=f32,
                           precision=jax.lax.Precision.HIGHEST)
            for co in range(Cout):
                r0, r1 = co * TH2, (co + 1) * TH2
                o_ref[0, co * 4 + 2 * i + 0, :, :] = res0[r0:r1, :].astype(o_ref.dtype)
                o_ref[0, co * 4 + 2 * i + 1, :, :] = res1[r0:r1, :].astype(o_ref.dtype)

    return kernel


def downsample_forward(x_nchw, w_oihw, *, tile_h=None):
    """x_nchw: (N, C, H, W) f32; w_oihw: (C//2, C, 3, 3) f32 (PyTorch OIHW).
    Returns (N, 2*C, H//2, W//2), matching the PyTorch Downsample module."""
    N, C, H, W = x_nchw.shape
    Cout = w_oihw.shape[0]
    assert Cout == C // 2 and w_oihw.shape[1] == C and w_oihw.shape[2:] == (3, 3)
    assert H % 2 == 0 and W % 2 == 0, "PixelUnshuffle(2) needs even spatial dims"

    TH = _pick_tile_h(H, n_batch=N, C=C, W=W) if tile_h is None else tile_h
    assert H % TH == 0 and TH % 2 == 0 and (TH == H or TH % 16 == 0), "bad tile_h"
    H2, W2 = H // 2, W // 2
    TH2 = TH // 2
    n_th = H // TH
    HB2 = 8 if (TH % 16 == 0 and H % 16 == 0) else H2      # halo block height (H2-rows)

    # Free view + tiny host constants (no extra HBM pass over the activations).
    xr = x_nchw.reshape(N, C, H2, 2 * W)                   # row pairs along lanes
    w_flat = w_oihw.reshape(-1)                            # SMEM scalars (tiny C)
    cols = jnp.arange(W, dtype=jnp.int32)[:, None]
    outs = jnp.arange(W2, dtype=jnp.int32)[None, :]
    csel0 = (cols == 2 * outs).astype(jnp.float32)
    csel1 = (cols == 2 * outs + 1).astype(jnp.float32)

    grid_spec = pltpu.PrefetchScalarGridSpec(
        num_scalar_prefetch=0,
        grid=(N, n_th),
        in_specs=[
            pl.BlockSpec(memory_space=pltpu.MemorySpace.SMEM),           # conv weights
            pl.BlockSpec((W, W2), lambda b, t: (0, 0)),                  # csel0 (resident)
            pl.BlockSpec((W, W2), lambda b, t: (0, 0)),                  # csel1 (resident)
            pl.BlockSpec((1, C, TH2, 2 * W), lambda b, t: (b, 0, t, 0)),  # row-pair tile
            # halo blocks: contain image rows t*TH - 1 / (t+1)*TH (clamped at borders)
            pl.BlockSpec((1, C, HB2, 2 * W),
                         lambda b, t: (b, 0, jnp.maximum(t * (TH2 // HB2) - 1, 0), 0)),
            pl.BlockSpec((1, C, HB2, 2 * W),
                         lambda b, t: (b, 0, jnp.minimum((t + 1) * (TH2 // HB2),
                                                         H2 // HB2 - 1), 0)),
        ],
        out_specs=pl.BlockSpec((1, 4 * Cout, TH2, W2), lambda b, t: (b, 0, t, 0)),
    )

    # vmem_limit from actual block bytes (with buffering headroom), not a flat 48 MiB.
    blk_bytes = 4 * (C * TH2 * 2 * W + 2 * C * HB2 * 2 * W + 2 * W * W2
                     + 4 * Cout * TH2 * W2)
    vmem_limit = int(min(64 * 1024 * 1024,
                         max(4 * 1024 * 1024, 3 * blk_bytes + (2 << 20))))

    fn = pl.pallas_call(
        _make_kernel(C, Cout, TH2, W, HB2, n_th),
        out_shape=jax.ShapeDtypeStruct((N, 4 * Cout, H2, W2), x_nchw.dtype),
        grid_spec=grid_spec,
        compiler_params=pltpu.CompilerParams(
            dimension_semantics=("parallel", "parallel"),
            vmem_limit_bytes=vmem_limit,
        ),
    )
    return fn(w_flat, csel0, csel1, xr, xr, xr)


def _reference(x_nchw, w_oihw):
    # Reference conv via XLA (full f32 precision), then the same pixel-unshuffle.
    conv = jax.lax.conv_general_dilated(
        x_nchw, w_oihw, window_strides=(1, 1), padding=((1, 1), (1, 1)),
        dimension_numbers=("NCHW", "OIHW", "NCHW"),
        precision=jax.lax.Precision.HIGHEST)
    N, Cout, H, W = conv.shape
    y = conv.reshape(N, Cout, H // 2, 2, W // 2, 2)
    y = jnp.transpose(y, (0, 1, 3, 5, 2, 4))
    return y.reshape(N, Cout * 4, H // 2, W // 2)


if __name__ == "__main__":
    key = jax.random.PRNGKey(0)
    k_x, k_w = jax.random.split(key)

    N, C, H, W = 2, 4, 32, 32               # n_feat = 4
    x = jax.random.normal(k_x, (N, C, H, W), dtype=jnp.float32)
    # Deterministic conv weight in PyTorch layout (out_ch, in_ch, kh, kw).
    w = jax.random.normal(k_w, (C // 2, C, 3, 3), dtype=jnp.float32) * 0.1

    ref = _reference(x, w)

    # Default tiling: whole-image tiles -> 2 parallel grid steps for N=2.
    out = jax.block_until_ready(downsample_forward(x, w))
    assert out.shape == (N, 2 * C, H // 2, W // 2), out.shape
    assert jnp.allclose(out, ref, atol=1e-4, rtol=1e-4), "mismatch vs reference"

    # tile_h=16 -> 2 row-tiles per image: exercises the interior-halo path and
    # the masked top/bottom border path.
    out2 = jax.block_until_ready(downsample_forward(x, w, tile_h=16))
    assert jnp.allclose(out2, ref, atol=1e-4, rtol=1e-4), "mismatch vs reference (tiled)"

    print("KERNEL_OK")
</pallas_src>

<mosaic_0001>
module attributes {stable_mosaic.version = 11 : i64} {
  func.func @kernel(%arg0: i32, %arg1: i32, %arg2: memref<72xf32, #tpu.memory_space<smem>>, %arg3: memref<32x16xf32, #tpu.memory_space<vmem>>, %arg4: memref<32x16xf32, #tpu.memory_space<vmem>>, %arg5: memref<1x4x16x64xf32, #tpu.memory_space<vmem>>, %arg6: memref<1x4x8x64xf32, #tpu.memory_space<vmem>>, %arg7: memref<1x4x8x64xf32, #tpu.memory_space<vmem>>, %arg8: memref<1x8x16x16xf32, #tpu.memory_space<vmem>>) attributes {dimension_semantics = [#tpu.dimension_semantics<parallel>, #tpu.dimension_semantics<parallel>], iteration_bounds = array<i64: 2, 1>, scalar_prefetch = 0 : i64, scratch_operands = 0 : i64, tpu.core_type = #tpu.core_type<tc>, window_params = [{transform_indices = @transform_0, window_bounds = array<i64: 72>}, {pipeline_mode = #tpu.pipeline_mode<synchronous>, transform_indices = @transform_1, window_bounds = array<i64: 32, 16>}, {pipeline_mode = #tpu.pipeline_mode<synchronous>, transform_indices = @transform_2, window_bounds = array<i64: 32, 16>}, {transform_indices = @transform_3, window_bounds = array<i64: 1, 4, 16, 64>}, {transform_indices = @transform_4, window_bounds = array<i64: 1, 4, 8, 64>}, {transform_indices = @transform_5, window_bounds = array<i64: 1, 4, 8, 64>}, {transform_indices = @transform_6, window_bounds = array<i64: 1, 8, 16, 16>}]} {
    %c0 = arith.constant 0 : index
    %c0_0 = arith.constant 0 : index
    %c0_1 = arith.constant 0 : index
    %c0_2 = arith.constant 0 : index
    %0 = vector.load %arg5[%c0, %c0_0, %c0_1, %c0_2] : memref<1x4x16x64xf32, #tpu.memory_space<vmem>>, vector<1x4x16x64xf32>
    %1 = vector.shape_cast %0 : vector<1x4x16x64xf32> to vector<4x16x64xf32>
    %2 = vector.extract_strided_slice %1 {offsets = [0, 0, 0], sizes = [4, 16, 32], strides = [1, 1, 1]} : vector<4x16x64xf32> to vector<4x16x32xf32>
    %3 = vector.extract_strided_slice %1 {offsets = [0, 0, 32], sizes = [4, 16, 32], strides = [1, 1, 1]} : vector<4x16x64xf32> to vector<4x16x32xf32>
    %c0_3 = arith.constant 0 : index
    %c0_4 = arith.constant 0 : index
    %c7 = arith.constant 7 : index
    %c32 = arith.constant 32 : index
    %4 = vector.load %arg6[%c0_3, %c0_4, %c7, %c32] : memref<1x4x8x64xf32, #tpu.memory_space<vmem>>, vector<1x4x1x32xf32>
    %5 = vector.shape_cast %4 : vector<1x4x1x32xf32> to vector<4x1x32xf32>
    %c0_5 = arith.constant 0 : index
    %c0_6 = arith.constant 0 : index
    %c0_7 = arith.constant 0 : index
    %c0_8 = arith.constant 0 : index
    %6 = vector.load %arg7[%c0_5, %c0_6, %c0_7, %c0_8] : memref<1x4x8x64xf32, #tpu.memory_space<vmem>>, vector<1x4x1x32xf32>
    %7 = vector.shape_cast %6 : vector<1x4x1x32xf32> to vector<4x1x32xf32>
    %c0_i32 = arith.constant 0 : i32
    %8 = arith.cmpi sgt, %arg1, %c0_i32 : i32
    %9 = arith.extui %8 : i1 to i32
    %10 = arith.sitofp %9 : i32 to f32
    %11 = vector.broadcast %10 : f32 to vector<4x1x32xf32>
    %12 = arith.mulf %5, %11 : vector<4x1x32xf32>
    %c0_i32_9 = arith.constant 0 : i32
    %13 = arith.cmpi slt, %arg1, %c0_i32_9 : i32
    %14 = arith.extui %13 : i1 to i32
    %15 = arith.sitofp %14 : i32 to f32
    %16 = vector.broadcast %15 : f32 to vector<4x1x32xf32>
    %17 = arith.mulf %7, %16 : vector<4x1x32xf32>
    %cst = arith.constant 0.000000e+00 : f32
    %18 = vector.broadcast %cst : f32 to vector<4x17x1xf32>
    %19 = tpu.concatenate %2, %17 in 1 : vector<4x16x32xf32>, vector<4x1x32xf32> -> vector<4x17x32xf32>
    %20 = tpu.concatenate %18, %19, %18 in 2 : vector<4x17x1xf32>, vector<4x17x32xf32>, vector<4x17x1xf32> -> vector<4x17x34xf32>
    %21 = tpu.concatenate %12, %3 in 1 : vector<4x1x32xf32>, vector<4x16x32xf32> -> vector<4x17x32xf32>
    %22 = tpu.concatenate %18, %21, %18 in 2 : vector<4x17x1xf32>, vector<4x17x32xf32>, vector<4x17x1xf32> -> vector<4x17x34xf32>
    %c0_10 = arith.constant 0 : index
    %c0_11 = arith.constant 0 : index
    %23 = vector.load %arg3[%c0_10, %c0_11] : memref<32x16xf32, #tpu.memory_space<vmem>>, vector<32x16xf32>
    %c0_12 = arith.constant 0 : index
    %c0_13 = arith.constant 0 : index
    %24 = vector.load %arg4[%c0_12, %c0_13] : memref<32x16xf32, #tpu.memory_space<vmem>>, vector<32x16xf32>
    %cst_14 = arith.constant 0.000000e+00 : f32
    %25 = vector.broadcast %cst_14 : f32 to vector<16x32xf32>
    %cst_15 = arith.constant 0.000000e+00 : f32
    %26 = vector.broadcast %cst_15 : f32 to vector<16x32xf32>
    %cst_16 = arith.constant 0.000000e+00 : f32
    %27 = vector.broadcast %cst_16 : f32 to vector<16x32xf32>
    %cst_17 = arith.constant 0.000000e+00 : f32
    %28 = vector.broadcast %cst_17 : f32 to vector<16x32xf32>
    %cst_18 = arith.constant 0.000000e+00 : f32
    %29 = vector.broadcast %cst_18 : f32 to vector<16x32xf32>
    %cst_19 = arith.constant 0.000000e+00 : f32
    %30 = vector.broadcast %cst_19 : f32 to vector<16x32xf32>
    %31 = vector.extract_strided_slice %22 {offsets = [0, 0, 0], sizes = [4, 16, 34], strides = [1, 1, 1]} : vector<4x17x34xf32> to vector<4x16x34xf32>
    %32 = vector.extract_strided_slice %31 {offsets = [0, 0, 0], sizes = [4, 16, 32], strides = [1, 1, 1]} : vector<4x16x34xf32> to vector<4x16x32xf32>
    %33 = vector.extract_strided_slice %32 {offsets = [0, 0, 0], sizes = [1, 16, 32], strides = [1, 1, 1]} : vector<4x16x32xf32> to vector<1x16x32xf32>
    %34 = vector.shape_cast %33 : vector<1x16x32xf32> to vector<16x32xf32>
    %c0_20 = arith.constant 0 : index
    %35 = memref.load %arg2[%c0_20] : memref<72xf32, #tpu.memory_space<smem>>
    %36 = vector.broadcast %35 : f32 to vector<16x32xf32>
    %37 = arith.mulf %36, %34 : vector<16x32xf32>
    %38 = arith.addf %25, %37 : vector<16x32xf32>
    %c36 = arith.constant 36 : index
    %39 = memref.load %arg2[%c36] : memref<72xf32, #tpu.memory_space<smem>>
    %40 = vector.broadcast %39 : f32 to vector<16x32xf32>
    %41 = arith.mulf %40, %34 : vector<16x32xf32>
    %42 = arith.addf %28, %41 : vector<16x32xf32>
    %43 = vector.extract_strided_slice %32 {offsets = [1, 0, 0], sizes = [1, 16, 32], strides = [1, 1, 1]} : vector<4x16x32xf32> to vector<1x16x32xf32>
    %44 = vector.shape_cast %43 : vector<1x16x32xf32> to vector<16x32xf32>
    %c9 = arith.constant 9 : index
    %45 = memref.load %arg2[%c9] : memref<72xf32, #tpu.memory_space<smem>>
    %46 = vector.broadcast %45 : f32 to vector<16x32xf32>
    %47 = arith.mulf %46, %44 : vector<16x32xf32>
    %48 = arith.addf %38, %47 : vector<16x32xf32>
    %c45 = arith.constant 45 : index
    %49 = memref.load %arg2[%c45] : memref<72xf32, #tpu.memory_space<smem>>
    %50 = vector.broadcast %49 : f32 to vector<16x32xf32>
    %51 = arith.mulf %50, %44 : vector<16x32xf32>
    %52 = arith.addf %42, %51 : vector<16x32xf32>
    %53 = vector.extract_strided_slice %32 {offsets = [2, 0, 0], sizes = [1, 16, 32], strides = [1, 1, 1]} : vector<4x16x32xf32> to vector<1x16x32xf32>
    %54 = vector.shape_cast %53 : vector<1x16x32xf32> to vector<16x32xf32>
    %c18 = arith.constant 18 : index
    %55 = memref.load %arg2[%c18] : memref<72xf32, #tpu.memory_space<smem>>
    %56 = vector.broadcast %55 : f32 to vector<16x32xf32>
    %57 = arith.mulf %56, %54 : vector<16x32xf32>
    %58 = arith.addf %48, %57 : vector<16x32xf32>
    %c54 = arith.constant 54 : index
    %59 = memref.load %arg2[%c54] : memref<72xf32, #tpu.memory_space<smem>>
    %60 = vector.broadcast %59 : f32 to vector<16x32xf32>
    %61 = arith.mulf %60, %54 : vector<16x32xf32>
    %62 = arith.addf %52, %61 : vector<16x32xf32>
    %63 = vector.extract_strided_slice %32 {offsets = [3, 0, 0], sizes = [1, 16, 32], strides = [1, 1, 1]} : vector<4x16x32xf32> to vector<1x16x32xf32>
    %64 = vector.shape_cast %63 : vector<1x16x32xf32> to vector<16x32xf32>
    %c27 = arith.constant 27 : index
    %65 = memref.load %arg2[%c27] : memref<72xf32, #tpu.memory_space<smem>>
    %66 = vector.broadcast %65 : f32 to vector<16x32xf32>
    %67 = arith.mulf %66, %64 : vector<16x32xf32>
    %68 = arith.addf %58, %67 : vector<16x32xf32>
    %c63 = arith.constant 63 : index
    %69 = memref.load %arg2[%c63] : memref<72xf32, #tpu.memory_space<smem>>
    %70 = vector.broadcast %69 : f32 to vector<16x32xf32>
    %71 = arith.mulf %70, %64 : vector<16x32xf32>
    %72 = arith.addf %62, %71 : vector<16x32xf32>
    %73 = vector.extract_strided_slice %31 {offsets = [0, 0, 1], sizes = [4, 16, 32], strides = [1, 1, 1]} : vector<4x16x34xf32> to vector<4x16x32xf32>
    %74 = vector.extract_strided_slice %73 {offsets = [0, 0, 0], sizes = [1, 16, 32], strides = [1, 1, 1]} : vector<4x16x32xf32> to vector<1x16x32xf32>
    %75 = vector.shape_cast %74 : vector<1x16x32xf32> to vector<16x32xf32>
    %c1 = arith.constant 1 : index
    %76 = memref.load %arg2[%c1] : memref<72xf32, #tpu.memory_space<smem>>
    %77 = vector.broadcast %76 : f32 to vector<16x32xf32>
    %78 = arith.mulf %77, %75 : vector<16x32xf32>
    %79 = arith.addf %68, %78 : vector<16x32xf32>
    %c37 = arith.constant 37 : index
    %80 = memref.load %arg2[%c37] : memref<72xf32, #tpu.memory_space<smem>>
    %81 = vector.broadcast %80 : f32 to vector<16x32xf32>
    %82 = arith.mulf %81, %75 : vector<16x32xf32>
    %83 = arith.addf %72, %82 : vector<16x32xf32>
    %84 = vector.extract_strided_slice %73 {offsets = [1, 0, 0], sizes = [1, 16, 32], strides = [1, 1, 1]} : vector<4x16x32xf32> to vector<1x16x32xf32>
    %85 = vector.shape_cast %84 : vector<1x16x32xf32> to vector<16x32xf32>
    %c10 = arith.constant 10 : index
    %86 = memref.load %arg2[%c10] : memref<72xf32, #tpu.memory_space<smem>>
    %87 = vector.broadcast %86 : f32 to vector<16x32xf32>
    %88 = arith.mulf %87, %85 : vector<16x32xf32>
    %89 = arith.addf %79, %88 : vector<16x32xf32>
    %c46 = arith.constant 46 : index
    %90 = memref.load %arg2[%c46] : memref<72xf32, #tpu.memory_space<smem>>
    %91 = vector.broadcast %90 : f32 to vector<16x32xf32>
    %92 = arith.mulf %91, %85 : vector<16x32xf32>
    %93 = arith.addf %83, %92 : vector<16x32xf32>
    %94 = vector.extract_strided_slice %73 {offsets = [2, 0, 0], sizes = [1, 16, 32], strides = [1, 1, 1]} : vector<4x16x32xf32> to vector<1x16x32xf32>
    %95 = vector.shape_cast %94 : vector<1x16x32xf32> to vector<16x32xf32>
    %c19 = arith.constant 19 : index
    %96 = memref.load %arg2[%c19] : memref<72xf32, #tpu.memory_space<smem>>
    %97 = vector.broadcast %96 : f32 to vector<16x32xf32>
    %98 = arith.mulf %97, %95 : vector<16x32xf32>
    %99 = arith.addf %89, %98 : vector<16x32xf32>
    %c55 = arith.constant 55 : index
    %100 = memref.load %arg2[%c55] : memref<72xf32, #tpu.memory_space<smem>>
    %101 = vector.broadcast %100 : f32 to vector<16x32xf32>
    %102 = arith.mulf %101, %95 : vector<16x32xf32>
    %103 = arith.addf %93, %102 : vector<16x32xf32>
    %104 = vector.extract_strided_slice %73 {offsets = [3, 0, 0], sizes = [1, 16, 32], strides = [1, 1, 1]} : vector<4x16x32xf32> to vector<1x16x32xf32>
    %105 = vector.shape_cast %104 : vector<1x16x32xf32> to vector<16x32xf32>
    %c28 = arith.constant 28 : index
    %106 = memref.load %arg2[%c28] : memref<72xf32, #tpu.memory_space<smem>>
    %107 = vector.broadcast %106 : f32 to vector<16x32xf32>
    %108 = arith.mulf %107, %105 : vector<16x32xf32>
    %109 = arith.addf %99, %108 : vector<16x32xf32>
    %c64 = arith.constant 64 : index
    %110 = memref.load %arg2[%c64] : memref<72xf32, #tpu.memory_space<smem>>
    %111 = vector.broadcast %110 : f32 to vector<16x32xf32>
    %112 = arith.mulf %111, %105 : vector<16x32xf32>
    %113 = arith.addf %103, %112 : vector<16x32xf32>
    %114 = vector.extract_strided_slice %31 {offsets = [0, 0, 2], sizes = [4, 16, 32], strides = [1, 1, 1]} : vector<4x16x34xf32> to vector<4x16x32xf32>
    %115 = vector.extract_strided_slice %114 {offsets = [0, 0, 0], sizes = [1, 16, 32], strides = [1, 1, 1]} : vector<4x16x32xf32> to vector<1x16x32xf32>
    %116 = vector.shape_cast %115 : vector<1x16x32xf32> to vector<16x32xf32>
    %c2 = arith.constant 2 : index
    %117 = memref.load %arg2[%c2] : memref<72xf32, #tpu.memory_space<smem>>
    %118 = vector.broadcast %117 : f32 to vector<16x32xf32>
    %119 = arith.mulf %118, %116 : vector<16x32xf32>
    %120 = arith.addf %109, %119 : vector<16x32xf32>
    %c38 = arith.constant 38 : index
    %121 = memref.load %arg2[%c38] : memref<72xf32, #tpu.memory_space<smem>>
    %122 = vector.broadcast %121 : f32 to vector<16x32xf32>
    %123 = arith.mulf %122, %116 : vector<16x32xf32>
    %124 = arith.addf %113, %123 : vector<16x32xf32>
    %125 = vector.extract_strided_slice %114 {offsets = [1, 0, 0], sizes = [1, 16, 32], strides = [1, 1, 1]} : vector<4x16x32xf32> to vector<1x16x32xf32>
    %126 = vector.shape_cast %125 : vector<1x16x32xf32> to vector<16x32xf32>
    %c11 = arith.constant 11 : index
    %127 = memref.load %arg2[%c11] : memref<72xf32, #tpu.memory_space<smem>>
    %128 = vector.broadcast %127 : f32 to vector<16x32xf32>
    %129 = arith.mulf %128, %126 : vector<16x32xf32>
    %130 = arith.addf %120, %129 : vector<16x32xf32>
    %c47 = arith.constant 47 : index
    %131 = memref.load %arg2[%c47] : memref<72xf32, #tpu.memory_space<smem>>
    %132 = vector.broadcast %131 : f32 to vector<16x32xf32>
    %133 = arith.mulf %132, %126 : vector<16x32xf32>
    %134 = arith.addf %124, %133 : vector<16x32xf32>
    %135 = vector.extract_strided_slice %114 {offsets = [2, 0, 0], sizes = [1, 16, 32], strides = [1, 1, 1]} : vector<4x16x32xf32> to vector<1x16x32xf32>
    %136 = vector.shape_cast %135 : vector<1x16x32xf32> to vector<16x32xf32>
    %c20 = arith.constant 20 : index
    %137 = memref.load %arg2[%c20] : memref<72xf32, #tpu.memory_space<smem>>
    %138 = vector.broadcast %137 : f32 to vector<16x32xf32>
    %139 = arith.mulf %138, %136 : vector<16x32xf32>
    %140 = arith.addf %130, %139 : vector<16x32xf32>
    %c56 = arith.constant 56 : index
    %141 = memref.load %arg2[%c56] : memref<72xf32, #tpu.memory_space<smem>>
    %142 = vector.broadcast %141 : f32 to vector<16x32xf32>
    %143 = arith.mulf %142, %136 : vector<16x32xf32>
    %144 = arith.addf %134, %143 : vector<16x32xf32>
    %145 = vector.extract_strided_slice %114 {offsets = [3, 0, 0], sizes = [1, 16, 32], strides = [1, 1, 1]} : vector<4x16x32xf32> to vector<1x16x32xf32>
    %146 = vector.shape_cast %145 : vector<1x16x32xf32> to vector<16x32xf32>
    %c29 = arith.constant 29 : index
    %147 = memref.load %arg2[%c29] : memref<72xf32, #tpu.memory_space<smem>>
    %148 = vector.broadcast %147 : f32 to vector<16x32xf32>
    %149 = arith.mulf %148, %146 : vector<16x32xf32>
    %150 = arith.addf %140, %149 : vector<16x32xf32>
    %c65 = arith.constant 65 : index
    %151 = memref.load %arg2[%c65] : memref<72xf32, #tpu.memory_space<smem>>
    %152 = vector.broadcast %151 : f32 to vector<16x32xf32>
    %153 = arith.mulf %152, %146 : vector<16x32xf32>
    %154 = arith.addf %144, %153 : vector<16x32xf32>
    %155 = vector.extract_strided_slice %20 {offsets = [0, 0, 0], sizes = [4, 16, 34], strides = [1, 1, 1]} : vector<4x17x34xf32> to vector<4x16x34xf32>
    %156 = vector.extract_strided_slice %155 {offsets = [0, 0, 0], sizes = [4, 16, 32], strides = [1, 1, 1]} : vector<4x16x34xf32> to vector<4x16x32xf32>
    %157 = vector.extract_strided_slice %156 {offsets = [0, 0, 0], sizes = [1, 16, 32], strides = [1, 1, 1]} : vector<4x16x32xf32> to vector<1x16x32xf32>
    %158 = vector.shape_cast %157 : vector<1x16x32xf32> to vector<16x32xf32>
    %c3 = arith.constant 3 : index
    %159 = memref.load %arg2[%c3] : memref<72xf32, #tpu.memory_space<smem>>
    %160 = vector.broadcast %159 : f32 to vector<16x32xf32>
    %161 = arith.mulf %160, %158 : vector<16x32xf32>
    %162 = arith.addf %26, %161 : vector<16x32xf32>
    %c39 = arith.constant 39 : index
    %163 = memref.load %arg2[%c39] : memref<72xf32, #tpu.memory_space<smem>>
    %164 = vector.broadcast %163 : f32 to vector<16x32xf32>
    %165 = arith.mulf %164, %158 : vector<16x32xf32>
    %166 = arith.addf %29, %165 : vector<16x32xf32>
    %167 = vector.extract_strided_slice %156 {offsets = [1, 0, 0], sizes = [1, 16, 32], strides = [1, 1, 1]} : vector<4x16x32xf32> to vector<1x16x32xf32>
    %168 = vector.shape_cast %167 : vector<1x16x32xf32> to vector<16x32xf32>
    %c12 = arith.constant 12 : index
    %169 = memref.load %arg2[%c12] : memref<72xf32, #tpu.memory_space<smem>>
    %170 = vector.broadcast %169 : f32 to vector<16x32xf32>
    %171 = arith.mulf %170, %168 : vector<16x32xf32>
    %172 = arith.addf %162, %171 : vector<16x32xf32>
    %c48 = arith.constant 48 : index
    %173 = memref.load %arg2[%c48] : memref<72xf32, #tpu.memory_space<smem>>
    %174 = vector.broadcast %173 : f32 to vector<16x32xf32>
    %175 = arith.mulf %174, %168 : vector<16x32xf32>
    %176 = arith.addf %166, %175 : vector<16x32xf32>
    %177 = vector.extract_strided_slice %156 {offsets = [2, 0, 0], sizes = [1, 16, 32], strides = [1, 1, 1]} : vector<4x16x32xf32> to vector<1x16x32xf32>
    %178 = vector.shape_cast %177 : vector<1x16x32xf32> to vector<16x32xf32>
    %c21 = arith.constant 21 : index
    %179 = memref.load %arg2[%c21] : memref<72xf32, #tpu.memory_space<smem>>
    %180 = vector.broadcast %179 : f32 to vector<16x32xf32>
    %181 = arith.mulf %180, %178 : vector<16x32xf32>
    %182 = arith.addf %172, %181 : vector<16x32xf32>
    %c57 = arith.constant 57 : index
    %183 = memref.load %arg2[%c57] : memref<72xf32, #tpu.memory_space<smem>>
    %184 = vector.broadcast %183 : f32 to vector<16x32xf32>
    %185 = arith.mulf %184, %178 : vector<16x32xf32>
    %186 = arith.addf %176, %185 : vector<16x32xf32>
    %187 = vector.extract_strided_slice %156 {offsets = [3, 0, 0], sizes = [1, 16, 32], strides = [1, 1, 1]} : vector<4x16x32xf32> to vector<1x16x32xf32>
    %188 = vector.shape_cast %187 : vector<1x16x32xf32> to vector<16x32xf32>
    %c30 = arith.constant 30 : index
    %189 = memref.load %arg2[%c30] : memref<72xf32, #tpu.memory_space<smem>>
    %190 = vector.broadcast %189 : f32 to vector<16x32xf32>
    %191 = arith.mulf %190, %188 : vector<16x32xf32>
    %192 = arith.addf %182, %191 : vector<16x32xf32>
    %c66 = arith.constant 66 : index
    %193 = memref.load %arg2[%c66] : memref<72xf32, #tpu.memory_space<smem>>
    %194 = vector.broadcast %193 : f32 to vector<16x32xf32>
    %195 = arith.mulf %194, %188 : vector<16x32xf32>
    %196 = arith.addf %186, %195 : vector<16x32xf32>
    %197 = vector.extract_strided_slice %155 {offsets = [0, 0, 1], sizes = [4, 16, 32], strides = [1, 1, 1]} : vector<4x16x34xf32> to vector<4x16x32xf32>
    %198 = vector.extract_strided_slice %197 {offsets = [0, 0, 0], sizes = [1, 16, 32], strides = [1, 1, 1]} : vector<4x16x32xf32> to vector<1x16x32xf32>
    %199 = vector.shape_cast %198 : vector<1x16x32xf32> to vector<16x32xf32>
    %c4 = arith.constant 4 : index
    %200 = memref.load %arg2[%c4] : memref<72xf32, #tpu.memory_space<smem>>
    %201 = vector.broadcast %200 : f32 to vector<16x32xf32>
    %202 = arith.mulf %201, %199 : vector<16x32xf32>
    %203 = arith.addf %192, %202 : vector<16x32xf32>
    %c40 = arith.constant 40 : index
    %204 = memref.load %arg2[%c40] : memref<72xf32, #tpu.memory_space<smem>>
    %205 = vector.broadcast %204 : f32 to vector<16x32xf32>
    %206 = arith.mulf %205, %199 : vector<16x32xf32>
    %207 = arith.addf %196, %206 : vector<16x32xf32>
    %208 = vector.extract_strided_slice %197 {offsets = [1, 0, 0], sizes = [1, 16, 32], strides = [1, 1, 1]} : vector<4x16x32xf32> to vector<1x16x32xf32>
    %209 = vector.shape_cast %208 : vector<1x16x32xf32> to vector<16x32xf32>
    %c13 = arith.constant 13 : index
    %210 = memref.load %arg2[%c13] : memref<72xf32, #tpu.memory_space<smem>>
    %211 = vector.broadcast %210 : f32 to vector<16x32xf32>
    %212 = arith.mulf %211, %209 : vector<16x32xf32>
    %213 = arith.addf %203, %212 : vector<16x32xf32>
    %c49 = arith.constant 49 : index
    %214 = memref.load %arg2[%c49] : memref<72xf32, #tpu.memory_space<smem>>
    %215 = vector.broadcast %214 : f32 to vector<16x32xf32>
    %216 = arith.mulf %215, %209 : vector<16x32xf32>
    %217 = arith.addf %207, %216 : vector<16x32xf32>
    %218 = vector.extract_strided_slice %197 {offsets = [2, 0, 0], sizes = [1, 16, 32], strides = [1, 1, 1]} : vector<4x16x32xf32> to vector<1x16x32xf32>
    %219 = vector.shape_cast %218 : vector<1x16x32xf32> to vector<16x32xf32>
    %c22 = arith.constant 22 : index
    %220 = memref.load %arg2[%c22] : memref<72xf32, #tpu.memory_space<smem>>
    %221 = vector.broadcast %220 : f32 to vector<16x32xf32>
    %222 = arith.mulf %221, %219 : vector<16x32xf32>
    %223 = arith.addf %213, %222 : vector<16x32xf32>
    %c58 = arith.constant 58 : index
    %224 = memref.load %arg2[%c58] : memref<72xf32, #tpu.memory_space<smem>>
    %225 = vector.broadcast %224 : f32 to vector<16x32xf32>
    %226 = arith.mulf %225, %219 : vector<16x32xf32>
    %227 = arith.addf %217, %226 : vector<16x32xf32>
    %228 = vector.extract_strided_slice %197 {offsets = [3, 0, 0], sizes = [1, 16, 32], strides = [1, 1, 1]} : vector<4x16x32xf32> to vector<1x16x32xf32>
    %229 = vector.shape_cast %228 : vector<1x16x32xf32> to vector<16x32xf32>
    %c31 = arith.constant 31 : index
    %230 = memref.load %arg2[%c31] : memref<72xf32, #tpu.memory_space<smem>>
    %231 = vector.broadcast %230 : f32 to vector<16x32xf32>
    %232 = arith.mulf %231, %229 : vector<16x32xf32>
    %233 = arith.addf %223, %232 : vector<16x32xf32>
    %c67 = arith.constant 67 : index
    %234 = memref.load %arg2[%c67] : memref<72xf32, #tpu.memory_space<smem>>
    %235 = vector.broadcast %234 : f32 to vector<16x32xf32>
    %236 = arith.mulf %235, %229 : vector<16x32xf32>
    %237 = arith.addf %227, %236 : vector<16x32xf32>
    %238 = vector.extract_strided_slice %155 {offsets = [0, 0, 2], sizes = [4, 16, 32], strides = [1, 1, 1]} : vector<4x16x34xf32> to vector<4x16x32xf32>
    %239 = vector.extract_strided_slice %238 {offsets = [0, 0, 0], sizes = [1, 16, 32], strides = [1, 1, 1]} : vector<4x16x32xf32> to vector<1x16x32xf32>
    %240 = vector.shape_cast %239 : vector<1x16x32xf32> to vector<16x32xf32>
    %c5 = arith.constant 5 : index
    %241 = memref.load %arg2[%c5] : memref<72xf32, #tpu.memory_space<smem>>
    %242 = vector.broadcast %241 : f32 to vector<16x32xf32>
    %243 = arith.mulf %242, %240 : vector<16x32xf32>
    %244 = arith.addf %233, %243 : vector<16x32xf32>
    %c41 = arith.constant 41 : index
    %245 = memref.load %arg2[%c41] : memref<72xf32, #tpu.memory_space<smem>>
    %246 = vector.broadcast %245 : f32 to vector<16x32xf32>
    %247 = arith.mulf %246, %240 : vector<16x32xf32>
    %248 = arith.addf %237, %247 : vector<16x32xf32>
    %249 = vector.extract_strided_slice %238 {offsets = [1, 0, 0], sizes = [1, 16, 32], strides = [1, 1, 1]} : vector<4x16x32xf32> to vector<1x16x32xf32>
    %250 = vector.shape_cast %249 : vector<1x16x32xf32> to vector<16x32xf32>
    %c14 = arith.constant 14 : index
    %251 = memref.load %arg2[%c14] : memref<72xf32, #tpu.memory_space<smem>>
    %252 = vector.broadcast %251 : f32 to vector<16x32xf32>
    %253 = arith.mulf %252, %250 : vector<16x32xf32>
    %254 = arith.addf %244, %253 : vector<16x32xf32>
    %c50 = arith.constant 50 : index
    %255 = memref.load %arg2[%c50] : memref<72xf32, #tpu.memory_space<smem>>
    %256 = vector.broadcast %255 : f32 to vector<16x32xf32>
    %257 = arith.mulf %256, %250 : vector<16x32xf32>
    %258 = arith.addf %248, %257 : vector<16x32xf32>
    %259 = vector.extract_strided_slice %238 {offsets = [2, 0, 0], sizes = [1, 16, 32], strides = [1, 1, 1]} : vector<4x16x32xf32> to vector<1x16x32xf32>
    %260 = vector.shape_cast %259 : vector<1x16x32xf32> to vector<16x32xf32>
    %c23 = arith.constant 23 : index
    %261 = memref.load %arg2[%c23] : memref<72xf32, #tpu.memory_space<smem>>
    %262 = vector.broadcast %261 : f32 to vector<16x32xf32>
    %263 = arith.mulf %262, %260 : vector<16x32xf32>
    %264 = arith.addf %254, %263 : vector<16x32xf32>
    %c59 = arith.constant 59 : index
    %265 = memref.load %arg2[%c59] : memref<72xf32, #tpu.memory_space<smem>>
    %266 = vector.broadcast %265 : f32 to vector<16x32xf32>
    %267 = arith.mulf %266, %260 : vector<16x32xf32>
    %268 = arith.addf %258, %267 : vector<16x32xf32>
    %269 = vector.extract_strided_slice %238 {offsets = [3, 0, 0], sizes = [1, 16, 32], strides = [1, 1, 1]} : vector<4x16x32xf32> to vector<1x16x32xf32>
    %270 = vector.shape_cast %269 : vector<1x16x32xf32> to vector<16x32xf32>
    %c32_21 = arith.constant 32 : index
    %271 = memref.load %arg2[%c32_21] : memref<72xf32, #tpu.memory_space<smem>>
    %272 = vector.broadcast %271 : f32 to vector<16x32xf32>
    %273 = arith.mulf %272, %270 : vector<16x32xf32>
    %274 = arith.addf %264, %273 : vector<16x32xf32>
    %c68 = arith.constant 68 : index
    %275 = memref.load %arg2[%c68] : memref<72xf32, #tpu.memory_space<smem>>
    %276 = vector.broadcast %275 : f32 to vector<16x32xf32>
    %277 = arith.mulf %276, %270 : vector<16x32xf32>
    %278 = arith.addf %268, %277 : vector<16x32xf32>
    %279 = vector.extract_strided_slice %22 {offsets = [0, 1, 0], sizes = [4, 16, 34], strides = [1, 1, 1]} : vector<4x17x34xf32> to vector<4x16x34xf32>
    %280 = vector.extract_strided_slice %279 {offsets = [0, 0, 0], sizes = [4, 16, 32], strides = [1, 1, 1]} : vector<4x16x34xf32> to vector<4x16x32xf32>
    %281 = vector.extract_strided_slice %280 {offsets = [0, 0, 0], sizes = [1, 16, 32], strides = [1, 1, 1]} : vector<4x16x32xf32> to vector<1x16x32xf32>
    %282 = vector.shape_cast %281 : vector<1x16x32xf32> to vector<16x32xf32>
    %c6 = arith.constant 6 : index
    %283 = memref.load %arg2[%c6] : memref<72xf32, #tpu.memory_space<smem>>
    %284 = vector.broadcast %283 : f32 to vector<16x32xf32>
    %285 = arith.mulf %284, %282 : vector<16x32xf32>
    %286 = arith.addf %27, %285 : vector<16x32xf32>
    %c42 = arith.constant 42 : index
    %287 = memref.load %arg2[%c42] : memref<72xf32, #tpu.memory_space<smem>>
    %288 = vector.broadcast %287 : f32 to vector<16x32xf32>
    %289 = arith.mulf %288, %282 : vector<16x32xf32>
    %290 = arith.addf %30, %289 : vector<16x32xf32>
    %291 = vector.extract_strided_slice %280 {offsets = [1, 0, 0], sizes = [1, 16, 32], strides = [1, 1, 1]} : vector<4x16x32xf32> to vector<1x16x32xf32>
    %292 = vector.shape_cast %291 : vector<1x16x32xf32> to vector<16x32xf32>
    %c15 = arith.constant 15 : index
    %293 = memref.load %arg2[%c15] : memref<72xf32, #tpu.memory_space<smem>>
    %294 = vector.broadcast %293 : f32 to vector<16x32xf32>
    %295 = arith.mulf %294, %292 : vector<16x32xf32>
    %296 = arith.addf %286, %295 : vector<16x32xf32>
    %c51 = arith.constant 51 : index
    %297 = memref.load %arg2[%c51] : memref<72xf32, #tpu.memory_space<smem>>
    %298 = vector.broadcast %297 : f32 to vector<16x32xf32>
    %299 = arith.mulf %298, %292 : vector<16x32xf32>
    %300 = arith.addf %290, %299 : vector<16x32xf32>
    %301 = vector.extract_strided_slice %280 {offsets = [2, 0, 0], sizes = [1, 16, 32], strides = [1, 1, 1]} : vector<4x16x32xf32> to vector<1x16x32xf32>
    %302 = vector.shape_cast %301 : vector<1x16x32xf32> to vector<16x32xf32>
    %c24 = arith.constant 24 : index
    %303 = memref.load %arg2[%c24] : memref<72xf32, #tpu.memory_space<smem>>
    %304 = vector.broadcast %303 : f32 to vector<16x32xf32>
    %305 = arith.mulf %304, %302 : vector<16x32xf32>
    %306 = arith.addf %296, %305 : vector<16x32xf32>
    %c60 = arith.constant 60 : index
    %307 = memref.load %arg2[%c60] : memref<72xf32, #tpu.memory_space<smem>>
    %308 = vector.broadcast %307 : f32 to vector<16x32xf32>
    %309 = arith.mulf %308, %302 : vector<16x32xf32>
    %310 = arith.addf %300, %309 : vector<16x32xf32>
    %311 = vector.extract_strided_slice %280 {offsets = [3, 0, 0], sizes = [1, 16, 32], strides = [1, 1, 1]} : vector<4x16x32xf32> to vector<1x16x32xf32>
    %312 = vector.shape_cast %311 : vector<1x16x32xf32> to vector<16x32xf32>
    %c33 = arith.constant 33 : index
    %313 = memref.load %arg2[%c33] : memref<72xf32, #tpu.memory_space<smem>>
    %314 = vector.broadcast %313 : f32 to vector<16x32xf32>
    %315 = arith.mulf %314, %312 : vector<16x32xf32>
    %316 = arith.addf %306, %315 : vector<16x32xf32>
    %c69 = arith.constant 69 : index
    %317 = memref.load %arg2[%c69] : memref<72xf32, #tpu.memory_space<smem>>
    %318 = vector.broadcast %317 : f32 to vector<16x32xf32>
    %319 = arith.mulf %318, %312 : vector<16x32xf32>
    %320 = arith.addf %310, %319 : vector<16x32xf32>
    %321 = vector.extract_strided_slice %279 {offsets = [0, 0, 1], sizes = [4, 16, 32], strides = [1, 1, 1]} : vector<4x16x34xf32> to vector<4x16x32xf32>
    %322 = vector.extract_strided_slice %321 {offsets = [0, 0, 0], sizes = [1, 16, 32], strides = [1, 1, 1]} : vector<4x16x32xf32> to vector<1x16x32xf32>
    %323 = vector.shape_cast %322 : vector<1x16x32xf32> to vector<16x32xf32>
    %c7_22 = arith.constant 7 : index
    %324 = memref.load %arg2[%c7_22] : memref<72xf32, #tpu.memory_space<smem>>
    %325 = vector.broadcast %324 : f32 to vector<16x32xf32>
    %326 = arith.mulf %325, %323 : vector<16x32xf32>
    %327 = arith.addf %316, %326 : vector<16x32xf32>
    %c43 = arith.constant 43 : index
    %328 = memref.load %arg2[%c43] : memref<72xf32, #tpu.memory_space<smem>>
    %329 = vector.broadcast %328 : f32 to vector<16x32xf32>
    %330 = arith.mulf %329, %323 : vector<16x32xf32>
    %331 = arith.addf %320, %330 : vector<16x32xf32>
    %332 = vector.extract_strided_slice %321 {offsets = [1, 0, 0], sizes = [1, 16, 32], strides = [1, 1, 1]} : vector<4x16x32xf32> to vector<1x16x32xf32>
    %333 = vector.shape_cast %332 : vector<1x16x32xf32> to vector<16x32xf32>
    %c16 = arith.constant 16 : index
    %334 = memref.load %arg2[%c16] : memref<72xf32, #tpu.memory_space<smem>>
    %335 = vector.broadcast %334 : f32 to vector<16x32xf32>
    %336 = arith.mulf %335, %333 : vector<16x32xf32>
    %337 = arith.addf %327, %336 : vector<16x32xf32>
    %c52 = arith.constant 52 : index
    %338 = memref.load %arg2[%c52] : memref<72xf32, #tpu.memory_space<smem>>
    %339 = vector.broadcast %338 : f32 to vector<16x32xf32>
    %340 = arith.mulf %339, %333 : vector<16x32xf32>
    %341 = arith.addf %331, %340 : vector<16x32xf32>
    %342 = vector.extract_strided_slice %321 {offsets = [2, 0, 0], sizes = [1, 16, 32], strides = [1, 1, 1]} : vector<4x16x32xf32> to vector<1x16x32xf32>
    %343 = vector.shape_cast %342 : vector<1x16x32xf32> to vector<16x32xf32>
    %c25 = arith.constant 25 : index
    %344 = memref.load %arg2[%c25] : memref<72xf32, #tpu.memory_space<smem>>
    %345 = vector.broadcast %344 : f32 to vector<16x32xf32>
    %346 = arith.mulf %345, %343 : vector<16x32xf32>
    %347 = arith.addf %337, %346 : vector<16x32xf32>
    %c61 = arith.constant 61 : index
    %348 = memref.load %arg2[%c61] : memref<72xf32, #tpu.memory_space<smem>>
    %349 = vector.broadcast %348 : f32 to vector<16x32xf32>
    %350 = arith.mulf %349, %343 : vector<16x32xf32>
    %351 = arith.addf %341, %350 : vector<16x32xf32>
    %352 = vector.extract_strided_slice %321 {offsets = [3, 0, 0], sizes = [1, 16, 32], strides = [1, 1, 1]} : vector<4x16x32xf32> to vector<1x16x32xf32>
    %353 = vector.shape_cast %352 : vector<1x16x32xf32> to vector<16x32xf32>
    %c34 = arith.constant 34 : index
    %354 = memref.load %arg2[%c34] : memref<72xf32, #tpu.memory_space<smem>>
    %355 = vector.broadcast %354 : f32 to vector<16x32xf32>
    %356 = arith.mulf %355, %353 : vector<16x32xf32>
    %357 = arith.addf %347, %356 : vector<16x32xf32>
    %c70 = arith.constant 70 : index
    %358 = memref.load %arg2[%c70] : memref<72xf32, #tpu.memory_space<smem>>
    %359 = vector.broadcast %358 : f32 to vector<16x32xf32>
    %360 = arith.mulf %359, %353 : vector<16x32xf32>
    %361 = arith.addf %351, %360 : vector<16x32xf32>
    %362 = vector.extract_strided_slice %279 {offsets = [0, 0, 2], sizes = [4, 16, 32], strides = [1, 1, 1]} : vector<4x16x34xf32> to vector<4x16x32xf32>
    %363 = vector.extract_strided_slice %362 {offsets = [0, 0, 0], sizes = [1, 16, 32], strides = [1, 1, 1]} : vector<4x16x32xf32> to vector<1x16x32xf32>
    %364 = vector.shape_cast %363 : vector<1x16x32xf32> to vector<16x32xf32>
    %c8 = arith.constant 8 : index
    %365 = memref.load %arg2[%c8] : memref<72xf32, #tpu.memory_space<smem>>
    %366 = vector.broadcast %365 : f32 to vector<16x32xf32>
    %367 = arith.mulf %366, %364 : vector<16x32xf32>
    %368 = arith.addf %357, %367 : vector<16x32xf32>
    %c44 = arith.constant 44 : index
    %369 = memref.load %arg2[%c44] : memref<72xf32, #tpu.memory_space<smem>>
    %370 = vector.broadcast %369 : f32 to vector<16x32xf32>
    %371 = arith.mulf %370, %364 : vector<16x32xf32>
    %372 = arith.addf %361, %371 : vector<16x32xf32>
    %373 = vector.extract_strided_slice %362 {offsets = [1, 0, 0], sizes = [1, 16, 32], strides = [1, 1, 1]} : vector<4x16x32xf32> to vector<1x16x32xf32>
    %374 = vector.shape_cast %373 : vector<1x16x32xf32> to vector<16x32xf32>
    %c17 = arith.constant 17 : index
    %375 = memref.load %arg2[%c17] : memref<72xf32, #tpu.memory_space<smem>>
    %376 = vector.broadcast %375 : f32 to vector<16x32xf32>
    %377 = arith.mulf %376, %374 : vector<16x32xf32>
    %378 = arith.addf %368, %377 : vector<16x32xf32>
    %c53 = arith.constant 53 : index
    %379 = memref.load %arg2[%c53] : memref<72xf32, #tpu.memory_space<smem>>
    %380 = vector.broadcast %379 : f32 to vector<16x32xf32>
    %381 = arith.mulf %380, %374 : vector<16x32xf32>
    %382 = arith.addf %372, %381 : vector<16x32xf32>
    %383 = vector.extract_strided_slice %362 {offsets = [2, 0, 0], sizes = [1, 16, 32], strides = [1, 1, 1]} : vector<4x16x32xf32> to vector<1x16x32xf32>
    %384 = vector.shape_cast %383 : vector<1x16x32xf32> to vector<16x32xf32>
    %c26 = arith.constant 26 : index
    %385 = memref.load %arg2[%c26] : memref<72xf32, #tpu.memory_space<smem>>
    %386 = vector.broadcast %385 : f32 to vector<16x32xf32>
    %387 = arith.mulf %386, %384 : vector<16x32xf32>
    %388 = arith.addf %378, %387 : vector<16x32xf32>
    %c62 = arith.constant 62 : index
    %389 = memref.load %arg2[%c62] : memref<72xf32, #tpu.memory_space<smem>>
    %390 = vector.broadcast %389 : f32 to vector<16x32xf32>
    %391 = arith.mulf %390, %384 : vector<16x32xf32>
    %392 = arith.addf %382, %391 : vector<16x32xf32>
    %393 = vector.extract_strided_slice %362 {offsets = [3, 0, 0], sizes = [1, 16, 32], strides = [1, 1, 1]} : vector<4x16x32xf32> to vector<1x16x32xf32>
    %394 = vector.shape_cast %393 : vector<1x16x32xf32> to vector<16x32xf32>
    %c35 = arith.constant 35 : index
    %395 = memref.load %arg2[%c35] : memref<72xf32, #tpu.memory_space<smem>>
    %396 = vector.broadcast %395 : f32 to vector<16x32xf32>
    %397 = arith.mulf %396, %394 : vector<16x32xf32>
    %398 = arith.addf %388, %397 : vector<16x32xf32>
    %c71 = arith.constant 71 : index
    %399 = memref.load %arg2[%c71] : memref<72xf32, #tpu.memory_space<smem>>
    %400 = vector.broadcast %399 : f32 to vector<16x32xf32>
    %401 = arith.mulf %400, %394 : vector<16x32xf32>
    %402 = arith.addf %392, %401 : vector<16x32xf32>
    %403 = arith.addf %150, %274 : vector<16x32xf32>
    %404 = arith.addf %403, %398 : vector<16x32xf32>
    %405 = arith.addf %154, %278 : vector<16x32xf32>
    %406 = arith.addf %405, %402 : vector<16x32xf32>
    %407 = tpu.concatenate %404, %406 in 0 : vector<16x32xf32>, vector<16x32xf32> -> vector<32x32xf32>
    %cst_23 = arith.constant dense<0.000000e+00> : vector<32x16xf32>
    %408 = tpu.matmul %407, %23, %cst_23 {dimension_numbers = #tpu.dot_dimension_numbers<[1], [0], [0], [1], [0, 0, 1, 1], [], []>, precision = #tpu.contract_precision<fp32>} : vector<32x32xf32>, vector<32x16xf32>, vector<32x16xf32> -> vector<32x16xf32>
    %cst_24 = arith.constant dense<0.000000e+00> : vector<32x16xf32>
    %409 = tpu.matmul %407, %24, %cst_24 {dimension_numbers = #tpu.dot_dimension_numbers<[1], [0], [0], [1], [0, 0, 1, 1], [], []>, precision = #tpu.contract_precision<fp32>} : vector<32x32xf32>, vector<32x16xf32>, vector<32x16xf32> -> vector<32x16xf32>
    %410 = vector.extract_strided_slice %408 {offsets = [0, 0], sizes = [16, 16], strides = [1, 1]} : vector<32x16xf32> to vector<16x16xf32>
    %c0_25 = arith.constant 0 : index
    %c0_26 = arith.constant 0 : index
    %c0_27 = arith.constant 0 : index
    %c0_28 = arith.constant 0 : index
    %411 = vector.load %arg8[%c0_25, %c0_26, %c0_27, %c0_28] : memref<1x8x16x16xf32, #tpu.memory_space<vmem>>, vector<1x1x16x16xf32>
    %412 = vector.shape_cast %411 : vector<1x1x16x16xf32> to vector<16x16xf32>
    %413 = vector.shape_cast %410 : vector<16x16xf32> to vector<1x1x16x16xf32>
    tpu.vector_store %arg8[%c0_25, %c0_26, %c0_27, %c0_28], %413 {strides = array<i32>} : memref<1x8x16x16xf32, #tpu.memory_space<vmem>>, vector<1x1x16x16xf32>,
    %414 = vector.extract_strided_slice %409 {offsets = [0, 0], sizes = [16, 16], strides = [1, 1]} : vector<32x16xf32> to vector<16x16xf32>
    %c0_29 = arith.constant 0 : index
    %c1_30 = arith.constant 1 : index
    %c0_31 = arith.constant 0 : index
    %c0_32 = arith.constant 0 : index
    %415 = vector.load %arg8[%c0_29, %c1_30, %c0_31, %c0_32] : memref<1x8x16x16xf32, #tpu.memory_space<vmem>>, vector<1x1x16x16xf32>
    %416 = vector.shape_cast %415 : vector<1x1x16x16xf32> to vector<16x16xf32>
    %417 = vector.shape_cast %414 : vector<16x16xf32> to vector<1x1x16x16xf32>
    tpu.vector_store %arg8[%c0_29, %c1_30, %c0_31, %c0_32], %417 {strides = array<i32>} : memref<1x8x16x16xf32, #tpu.memory_space<vmem>>, vector<1x1x16x16xf32>,
    %418 = vector.extract_strided_slice %408 {offsets = [16, 0], sizes = [16, 16], strides = [1, 1]} : vector<32x16xf32> to vector<16x16xf32>
    %c0_33 = arith.constant 0 : index
    %c4_34 = arith.constant 4 : index
    %c0_35 = arith.constant 0 : index
    %c0_36 = arith.constant 0 : index
    %419 = vector.load %arg8[%c0_33, %c4_34, %c0_35, %c0_36] : memref<1x8x16x16xf32, #tpu.memory_space<vmem>>, vector<1x1x16x16xf32>
    %420 = vector.shape_cast %419 : vector<1x1x16x16xf32> to vector<16x16xf32>
    %421 = vector.shape_cast %418 : vector<16x16xf32> to vector<1x1x16x16xf32>
    tpu.vector_store %arg8[%c0_33, %c4_34, %c0_35, %c0_36], %421 {strides = array<i32>} : memref<1x8x16x16xf32, #tpu.memory_space<vmem>>, vector<1x1x16x16xf32>,
    %422 = vector.extract_strided_slice %409 {offsets = [16, 0], sizes = [16, 16], strides = [1, 1]} : vector<32x16xf32> to vector<16x16xf32>
    %c0_37 = arith.constant 0 : index
    %c5_38 = arith.constant 5 : index
    %c0_39 = arith.constant 0 : index
    %c0_40 = arith.constant 0 : index
    %423 = vector.load %arg8[%c0_37, %c5_38, %c0_39, %c0_40] : memref<1x8x16x16xf32, #tpu.memory_space<vmem>>, vector<1x1x16x16xf32>
    %424 = vector.shape_cast %423 : vector<1x1x16x16xf32> to vector<16x16xf32>
    %425 = vector.shape_cast %422 : vector<16x16xf32> to vector<1x1x16x16xf32>
    tpu.vector_store %arg8[%c0_37, %c5_38, %c0_39, %c0_40], %425 {strides = array<i32>} : memref<1x8x16x16xf32, #tpu.memory_space<vmem>>, vector<1x1x16x16xf32>,
    %cst_41 = arith.constant 0.000000e+00 : f32
    %426 = vector.broadcast %cst_41 : f32 to vector<16x32xf32>
    %cst_42 = arith.constant 0.000000e+00 : f32
    %427 = vector.broadcast %cst_42 : f32 to vector<16x32xf32>
    %cst_43 = arith.constant 0.000000e+00 : f32
    %428 = vector.broadcast %cst_43 : f32 to vector<16x32xf32>
    %cst_44 = arith.constant 0.000000e+00 : f32
    %429 = vector.broadcast %cst_44 : f32 to vector<16x32xf32>
    %cst_45 = arith.constant 0.000000e+00 : f32
    %430 = vector.broadcast %cst_45 : f32 to vector<16x32xf32>
    %cst_46 = arith.constant 0.000000e+00 : f32
    %431 = vector.broadcast %cst_46 : f32 to vector<16x32xf32>
    %432 = vector.extract_strided_slice %20 {offsets = [0, 0, 0], sizes = [4, 16, 34], strides = [1, 1, 1]} : vector<4x17x34xf32> to vector<4x16x34xf32>
    %433 = vector.extract_strided_slice %432 {offsets = [0, 0, 0], sizes = [4, 16, 32], strides = [1, 1, 1]} : vector<4x16x34xf32> to vector<4x16x32xf32>
    %434 = vector.extract_strided_slice %433 {offsets = [0, 0, 0], sizes = [1, 16, 32], strides = [1, 1, 1]} : vector<4x16x32xf32> to vector<1x16x32xf32>
    %435 = vector.shape_cast %434 : vector<1x16x32xf32> to vector<16x32xf32>
    %c0_47 = arith.constant 0 : index
    %436 = memref.load %arg2[%c0_47] : memref<72xf32, #tpu.memory_space<smem>>
    %437 = vector.broadcast %436 : f32 to vector<16x32xf32>
    %438 = arith.mulf %437, %435 : vector<16x32xf32>
    %439 = arith.addf %426, %438 : vector<16x32xf32>
    %c36_48 = arith.constant 36 : index
    %440 = memref.load %arg2[%c36_48] : memref<72xf32, #tpu.memory_space<smem>>
    %441 = vector.broadcast %440 : f32 to vector<16x32xf32>
    %442 = arith.mulf %441, %435 : vector<16x32xf32>
    %443 = arith.addf %429, %442 : vector<16x32xf32>
    %444 = vector.extract_strided_slice %433 {offsets = [1, 0, 0], sizes = [1, 16, 32], strides = [1, 1, 1]} : vector<4x16x32xf32> to vector<1x16x32xf32>
    %445 = vector.shape_cast %444 : vector<1x16x32xf32> to vector<16x32xf32>
    %c9_49 = arith.constant 9 : index
    %446 = memref.load %arg2[%c9_49] : memref<72xf32, #tpu.memory_space<smem>>
    %447 = vector.broadcast %446 : f32 to vector<16x32xf32>
    %448 = arith.mulf %447, %445 : vector<16x32xf32>
    %449 = arith.addf %439, %448 : vector<16x32xf32>
    %c45_50 = arith.constant 45 : index
    %450 = memref.load %arg2[%c45_50] : memref<72xf32, #tpu.memory_space<smem>>
    %451 = vector.broadcast %450 : f32 to vector<16x32xf32>
    %452 = arith.mulf %451, %445 : vector<16x32xf32>
    %453 = arith.addf %443, %452 : vector<16x32xf32>
    %454 = vector.extract_strided_slice %433 {offsets = [2, 0, 0], sizes = [1, 16, 32], strides = [1, 1, 1]} : vector<4x16x32xf32> to vector<1x16x32xf32>
    %455 = vector.shape_cast %454 : vector<1x16x32xf32> to vector<16x32xf32>
    %c18_51 = arith.constant 18 : index
    %456 = memref.load %arg2[%c18_51] : memref<72xf32, #tpu.memory_space<smem>>
    %457 = vector.broadcast %456 : f32 to vector<16x32xf32>
    %458 = arith.mulf %457, %455 : vector<16x32xf32>
    %459 = arith.addf %449, %458 : vector<16x32xf32>
    %c54_52 = arith.constant 54 : index
    %460 = memref.load %arg2[%c54_52] : memref<72xf32, #tpu.memory_space<smem>>
    %461 = vector.broadcast %460 : f32 to vector<16x32xf32>
    %462 = arith.mulf %461, %455 : vector<16x32xf32>
    %463 = arith.addf %453, %462 : vector<16x32xf32>
    %464 = vector.extract_strided_slice %433 {offsets = [3, 0, 0], sizes = [1, 16, 32], strides = [1, 1, 1]} : vector<4x16x32xf32> to vector<1x16x32xf32>
    %465 = vector.shape_cast %464 : vector<1x16x32xf32> to vector<16x32xf32>
    %c27_53 = arith.constant 27 : index
    %466 = memref.load %arg2[%c27_53] : memref<72xf32, #tpu.memory_space<smem>>
    %467 = vector.broadcast %466 : f32 to vector<16x32xf32>
    %468 = arith.mulf %467, %465 : vector<16x32xf32>
    %469 = arith.addf %459, %468 : vector<16x32xf32>
    %c63_54 = arith.constant 63 : index
    %470 = memref.load %arg2[%c63_54] : memref<72xf32, #tpu.memory_space<smem>>
    %471 = vector.broadcast %470 : f32 to vector<16x32xf32>
    %472 = arith.mulf %471, %465 : vector<16x32xf32>
    %473 = arith.addf %463, %472 : vector<16x32xf32>
    %474 = vector.extract_strided_slice %432 {offsets = [0, 0, 1], sizes = [4, 16, 32], strides = [1, 1, 1]} : vector<4x16x34xf32> to vector<4x16x32xf32>
    %475 = vector.extract_strided_slice %474 {offsets = [0, 0, 0], sizes = [1, 16, 32], strides = [1, 1, 1]} : vector<4x16x32xf32> to vector<1x16x32xf32>
    %476 = vector.shape_cast %475 : vector<1x16x32xf32> to vector<16x32xf32>
    %c1_55 = arith.constant 1 : index
    %477 = memref.load %arg2[%c1_55] : memref<72xf32, #tpu.memory_space<smem>>
    %478 = vector.broadcast %477 : f32 to vector<16x32xf32>
    %479 = arith.mulf %478, %476 : vector<16x32xf32>
    %480 = arith.addf %469, %479 : vector<16x32xf32>
    %c37_56 = arith.constant 37 : index
    %481 = memref.load %arg2[%c37_56] : memref<72xf32, #tpu.memory_space<smem>>
    %482 = vector.broadcast %481 : f32 to vector<16x32xf32>
    %483 = arith.mulf %482, %476 : vector<16x32xf32>
    %484 = arith.addf %473, %483 : vector<16x32xf32>
    %485 = vector.extract_strided_slice %474 {offsets = [1, 0, 0], sizes = [1, 16, 32], strides = [1, 1, 1]} : vector<4x16x32xf32> to vector<1x16x32xf32>
    %486 = vector.shape_cast %485 : vector<1x16x32xf32> to vector<16x32xf32>
    %c10_57 = arith.constant 10 : index
    %487 = memref.load %arg2[%c10_57] : memref<72xf32, #tpu.memory_space<smem>>
    %488 = vector.broadcast %487 : f32 to vector<16x32xf32>
    %489 = arith.mulf %488, %486 : vector<16x32xf32>
    %490 = arith.addf %480, %489 : vector<16x32xf32>
    %c46_58 = arith.constant 46 : index
    %491 = memref.load %arg2[%c46_58] : memref<72xf32, #tpu.memory_space<smem>>
    %492 = vector.broadcast %491 : f32 to vector<16x32xf32>
    %493 = arith.mulf %492, %486 : vector<16x32xf32>
    %494 = arith.addf %484, %493 : vector<16x32xf32>
    %495 = vector.extract_strided_slice %474 {offsets = [2, 0, 0], sizes = [1, 16, 32], strides = [1, 1, 1]} : vector<4x16x32xf32> to vector<1x16x32xf32>
    %496 = vector.shape_cast %495 : vector<1x16x32xf32> to vector<16x32xf32>
    %c19_59 = arith.constant 19 : index
    %497 = memref.load %arg2[%c19_59] : memref<72xf32, #tpu.memory_space<smem>>
    %498 = vector.broadcast %497 : f32 to vector<16x32xf32>
    %499 = arith.mulf %498, %496 : vector<16x32xf32>
    %500 = arith.addf %490, %499 : vector<16x32xf32>
    %c55_60 = arith.constant 55 : index
    %501 = memref.load %arg2[%c55_60] : memref<72xf32, #tpu.memory_space<smem>>
    %502 = vector.broadcast %501 : f32 to vector<16x32xf32>
    %503 = arith.mulf %502, %496 : vector<16x32xf32>
    %504 = arith.addf %494, %503 : vector<16x32xf32>
    %505 = vector.extract_strided_slice %474 {offsets = [3, 0, 0], sizes = [1, 16, 32], strides = [1, 1, 1]} : vector<4x16x32xf32> to vector<1x16x32xf32>
    %506 = vector.shape_cast %505 : vector<1x16x32xf32> to vector<16x32xf32>
    %c28_61 = arith.constant 28 : index
    %507 = memref.load %arg2[%c28_61] : memref<72xf32, #tpu.memory_space<smem>>
    %508 = vector.broadcast %507 : f32 to vector<16x32xf32>
    %509 = arith.mulf %508, %506 : vector<16x32xf32>
    %510 = arith.addf %500, %509 : vector<16x32xf32>
    %c64_62 = arith.constant 64 : index
    %511 = memref.load %arg2[%c64_62] : memref<72xf32, #tpu.memory_space<smem>>
    %512 = vector.broadcast %511 : f32 to vector<16x32xf32>
    %513 = arith.mulf %512, %506 : vector<16x32xf32>
    %514 = arith.addf %504, %513 : vector<16x32xf32>
    %515 = vector.extract_strided_slice %432 {offsets = [0, 0, 2], sizes = [4, 16, 32], strides = [1, 1, 1]} : vector<4x16x34xf32> to vector<4x16x32xf32>
    %516 = vector.extract_strided_slice %515 {offsets = [0, 0, 0], sizes = [1, 16, 32], strides = [1, 1, 1]} : vector<4x16x32xf32> to vector<1x16x32xf32>
    %517 = vector.shape_cast %516 : vector<1x16x32xf32> to vector<16x32xf32>
    %c2_63 = arith.constant 2 : index
    %518 = memref.load %arg2[%c2_63] : memref<72xf32, #tpu.memory_space<smem>>
    %519 = vector.broadcast %518 : f32 to vector<16x32xf32>
    %520 = arith.mulf %519, %517 : vector<16x32xf32>
    %521 = arith.addf %510, %520 : vector<16x32xf32>
    %c38_64 = arith.constant 38 : index
    %522 = memref.load %arg2[%c38_64] : memref<72xf32, #tpu.memory_space<smem>>
    %523 = vector.broadcast %522 : f32 to vector<16x32xf32>
    %524 = arith.mulf %523, %517 : vector<16x32xf32>
    %525 = arith.addf %514, %524 : vector<16x32xf32>
    %526 = vector.extract_strided_slice %515 {offsets = [1, 0, 0], sizes = [1, 16, 32], strides = [1, 1, 1]} : vector<4x16x32xf32> to vector<1x16x32xf32>
    %527 = vector.shape_cast %526 : vector<1x16x32xf32> to vector<16x32xf32>
    %c11_65 = arith.constant 11 : index
    %528 = memref.load %arg2[%c11_65] : memref<72xf32, #tpu.memory_space<smem>>
    %529 = vector.broadcast %528 : f32 to vector<16x32xf32>
    %530 = arith.mulf %529, %527 : vector<16x32xf32>
    %531 = arith.addf %521, %530 : vector<16x32xf32>
    %c47_66 = arith.constant 47 : index
    %532 = memref.load %arg2[%c47_66] : memref<72xf32, #tpu.memory_space<smem>>
    %533 = vector.broadcast %532 : f32 to vector<16x32xf32>
    %534 = arith.mulf %533, %527 : vector<16x32xf32>
    %535 = arith.addf %525, %534 : vector<16x32xf32>
    %536 = vector.extract_strided_slice %515 {offsets = [2, 0, 0], sizes = [1, 16, 32], strides = [1, 1, 1]} : vector<4x16x32xf32> to vector<1x16x32xf32>
    %537 = vector.shape_cast %536 : vector<1x16x32xf32> to vector<16x32xf32>
    %c20_67 = arith.constant 20 : index
    %538 = memref.load %arg2[%c20_67] : memref<72xf32, #tpu.memory_space<smem>>
    %539 = vector.broadcast %538 : f32 to vector<16x32xf32>
    %540 = arith.mulf %539, %537 : vector<16x32xf32>
    %541 = arith.addf %531, %540 : vector<16x32xf32>
    %c56_68 = arith.constant 56 : index
    %542 = memref.load %arg2[%c56_68] : memref<72xf32, #tpu.memory_space<smem>>
    %543 = vector.broadcast %542 : f32 to vector<16x32xf32>
    %544 = arith.mulf %543, %537 : vector<16x32xf32>
    %545 = arith.addf %535, %544 : vector<16x32xf32>
    %546 = vector.extract_strided_slice %515 {offsets = [3, 0, 0], sizes = [1, 16, 32], strides = [1, 1, 1]} : vector<4x16x32xf32> to vector<1x16x32xf32>
    %547 = vector.shape_cast %546 : vector<1x16x32xf32> to vector<16x32xf32>
    %c29_69 = arith.constant 29 : index
    %548 = memref.load %arg2[%c29_69] : memref<72xf32, #tpu.memory_space<smem>>
    %549 = vector.broadcast %548 : f32 to vector<16x32xf32>
    %550 = arith.mulf %549, %547 : vector<16x32xf32>
    %551 = arith.addf %541, %550 : vector<16x32xf32>
    %c65_70 = arith.constant 65 : index
    %552 = memref.load %arg2[%c65_70] : memref<72xf32, #tpu.memory_space<smem>>
    %553 = vector.broadcast %552 : f32 to vector<16x32xf32>
    %554 = arith.mulf %553, %547 : vector<16x32xf32>
    %555 = arith.addf %545, %554 : vector<16x32xf32>
    %556 = vector.extract_strided_slice %22 {offsets = [0, 1, 0], sizes = [4, 16, 34], strides = [1, 1, 1]} : vector<4x17x34xf32> to vector<4x16x34xf32>
    %557 = vector.extract_strided_slice %556 {offsets = [0, 0, 0], sizes = [4, 16, 32], strides = [1, 1, 1]} : vector<4x16x34xf32> to vector<4x16x32xf32>
    %558 = vector.extract_strided_slice %557 {offsets = [0, 0, 0], sizes = [1, 16, 32], strides = [1, 1, 1]} : vector<4x16x32xf32> to vector<1x16x32xf32>
    %559 = vector.shape_cast %558 : vector<1x16x32xf32> to vector<16x32xf32>
    %c3_71 = arith.constant 3 : index
    %560 = memref.load %arg2[%c3_71] : memref<72xf32, #tpu.memory_space<smem>>
    %561 = vector.broadcast %560 : f32 to vector<16x32xf32>
    %562 = arith.mulf %561, %559 : vector<16x32xf32>
    %563 = arith.addf %427, %562 : vector<16x32xf32>
    %c39_72 = arith.constant 39 : index
    %564 = memref.load %arg2[%c39_72] : memref<72xf32, #tpu.memory_space<smem>>
    %565 = vector.broadcast %564 : f32 to vector<16x32xf32>
    %566 = arith.mulf %565, %559 : vector<16x32xf32>
    %567 = arith.addf %430, %566 : vector<16x32xf32>
    %568 = vector.extract_strided_slice %557 {offsets = [1, 0, 0], sizes = [1, 16, 32], strides = [1, 1, 1]} : vector<4x16x32xf32> to vector<1x16x32xf32>
    %569 = vector.shape_cast %568 : vector<1x16x32xf32> to vector<16x32xf32>
    %c12_73 = arith.constant 12 : index
    %570 = memref.load %arg2[%c12_73] : memref<72xf32, #tpu.memory_space<smem>>
    %571 = vector.broadcast %570 : f32 to vector<16x32xf32>
    %572 = arith.mulf %571, %569 : vector<16x32xf32>
    %573 = arith.addf %563, %572 : vector<16x32xf32>
    %c48_74 = arith.constant 48 : index
    %574 = memref.load %arg2[%c48_74] : memref<72xf32, #tpu.memory_space<smem>>
    %575 = vector.broadcast %574 : f32 to vector<16x32xf32>
    %576 = arith.mulf %575, %569 : vector<16x32xf32>
    %577 = arith.addf %567, %576 : vector<16x32xf32>
    %578 = vector.extract_strided_slice %557 {offsets = [2, 0, 0], sizes = [1, 16, 32], strides = [1, 1, 1]} : vector<4x16x32xf32> to vector<1x16x32xf32>
    %579 = vector.shape_cast %578 : vector<1x16x32xf32> to vector<16x32xf32>
    %c21_75 = arith.constant 21 : index
    %580 = memref.load %arg2[%c21_75] : memref<72xf32, #tpu.memory_space<smem>>
    %581 = vector.broadcast %580 : f32 to vector<16x32xf32>
    %582 = arith.mulf %581, %579 : vector<16x32xf32>
    %583 = arith.addf %573, %582 : vector<16x32xf32>
    %c57_76 = arith.constant 57 : index
    %584 = memref.load %arg2[%c57_76] : memref<72xf32, #tpu.memory_space<smem>>
    %585 = vector.broadcast %584 : f32 to vector<16x32xf32>
    %586 = arith.mulf %585, %579 : vector<16x32xf32>
    %587 = arith.addf %577, %586 : vector<16x32xf32>
    %588 = vector.extract_strided_slice %557 {offsets = [3, 0, 0], sizes = [1, 16, 32], strides = [1, 1, 1]} : vector<4x16x32xf32> to vector<1x16x32xf32>
    %589 = vector.shape_cast %588 : vector<1x16x32xf32> to vector<16x32xf32>
    %c30_77 = arith.constant 30 : index
    %590 = memref.load %arg2[%c30_77] : memref<72xf32, #tpu.memory_space<smem>>
    %591 = vector.broadcast %590 : f32 to vector<16x32xf32>
    %592 = arith.mulf %591, %589 : vector<16x32xf32>
    %593 = arith.addf %583, %592 : vector<16x32xf32>
    %c66_78 = arith.constant 66 : index
    %594 = memref.load %arg2[%c66_78] : memref<72xf32, #tpu.memory_space<smem>>
    %595 = vector.broadcast %594 : f32 to vector<16x32xf32>
    %596 = arith.mulf %595, %589 : vector<16x32xf32>
    %597 = arith.addf %587, %596 : vector<16x32xf32>
    %598 = vector.extract_strided_slice %556 {offsets = [0, 0, 1], sizes = [4, 16, 32], strides = [1, 1, 1]} : vector<4x16x34xf32> to vector<4x16x32xf32>
    %599 = vector.extract_strided_slice %598 {offsets = [0, 0, 0], sizes = [1, 16, 32], strides = [1, 1, 1]} : vector<4x16x32xf32> to vector<1x16x32xf32>
    %600 = vector.shape_cast %599 : vector<1x16x32xf32> to vector<16x32xf32>
    %c4_79 = arith.constant 4 : index
    %601 = memref.load %arg2[%c4_79] : memref<72xf32, #tpu.memory_space<smem>>
    %602 = vector.broadcast %601 : f32 to vector<16x32xf32>
    %603 = arith.mulf %602, %600 : vector<16x32xf32>
    %604 = arith.addf %593, %603 : vector<16x32xf32>
    %c40_80 = arith.constant 40 : index
    %605 = memref.load %arg2[%c40_80] : memref<72xf32, #tpu.memory_space<smem>>
    %606 = vector.broadcast %605 : f32 to vector<16x32xf32>
    %607 = arith.mulf %606, %600 : vector<16x32xf32>
    %608 = arith.addf %597, %607 : vector<16x32xf32>
    %609 = vector.extract_strided_slice %598 {offsets = [1, 0, 0], sizes = [1, 16, 32], strides = [1, 1, 1]} : vector<4x16x32xf32> to vector<1x16x32xf32>
    %610 = vector.shape_cast %609 : vector<1x16x32xf32> to vector<16x32xf32>
    %c13_81 = arith.constant 13 : index
    %611 = memref.load %arg2[%c13_81] : memref<72xf32, #tpu.memory_space<smem>>
    %612 = vector.broadcast %611 : f32 to vector<16x32xf32>
    %613 = arith.mulf %612, %610 : vector<16x32xf32>
    %614 = arith.addf %604, %613 : vector<16x32xf32>
    %c49_82 = arith.constant 49 : index
    %615 = memref.load %arg2[%c49_82] : memref<72xf32, #tpu.memory_space<smem>>
    %616 = vector.broadcast %615 : f32 to vector<16x32xf32>
    %617 = arith.mulf %616, %610 : vector<16x32xf32>
    %618 = arith.addf %608, %617 : vector<16x32xf32>
    %619 = vector.extract_strided_slice %598 {offsets = [2, 0, 0], sizes = [1, 16, 32], strides = [1, 1, 1]} : vector<4x16x32xf32> to vector<1x16x32xf32>
    %620 = vector.shape_cast %619 : vector<1x16x32xf32> to vector<16x32xf32>
    %c22_83 = arith.constant 22 : index
    %621 = memref.load %arg2[%c22_83] : memref<72xf32, #tpu.memory_space<smem>>
    %622 = vector.broadcast %621 : f32 to vector<16x32xf32>
    %623 = arith.mulf %622, %620 : vector<16x32xf32>
    %624 = arith.addf %614, %623 : vector<16x32xf32>
    %c58_84 = arith.constant 58 : index
    %625 = memref.load %arg2[%c58_84] : memref<72xf32, #tpu.memory_space<smem>>
    %626 = vector.broadcast %625 : f32 to vector<16x32xf32>
    %627 = arith.mulf %626, %620 : vector<16x32xf32>
    %628 = arith.addf %618, %627 : vector<16x32xf32>
    %629 = vector.extract_strided_slice %598 {offsets = [3, 0, 0], sizes = [1, 16, 32], strides = [1, 1, 1]} : vector<4x16x32xf32> to vector<1x16x32xf32>
    %630 = vector.shape_cast %629 : vector<1x16x32xf32> to vector<16x32xf32>
    %c31_85 = arith.constant 31 : index
    %631 = memref.load %arg2[%c31_85] : memref<72xf32, #tpu.memory_space<smem>>
    %632 = vector.broadcast %631 : f32 to vector<16x32xf32>
    %633 = arith.mulf %632, %630 : vector<16x32xf32>
    %634 = arith.addf %624, %633 : vector<16x32xf32>
    %c67_86 = arith.constant 67 : index
    %635 = memref.load %arg2[%c67_86] : memref<72xf32, #tpu.memory_space<smem>>
    %636 = vector.broadcast %635 : f32 to vector<16x32xf32>
    %637 = arith.mulf %636, %630 : vector<16x32xf32>
    %638 = arith.addf %628, %637 : vector<16x32xf32>
    %639 = vector.extract_strided_slice %556 {offsets = [0, 0, 2], sizes = [4, 16, 32], strides = [1, 1, 1]} : vector<4x16x34xf32> to vector<4x16x32xf32>
    %640 = vector.extract_strided_slice %639 {offsets = [0, 0, 0], sizes = [1, 16, 32], strides = [1, 1, 1]} : vector<4x16x32xf32> to vector<1x16x32xf32>
    %641 = vector.shape_cast %640 : vector<1x16x32xf32> to vector<16x32xf32>
    %c5_87 = arith.constant 5 : index
    %642 = memref.load %arg2[%c5_87] : memref<72xf32, #tpu.memory_space<smem>>
    %643 = vector.broadcast %642 : f32 to vector<16x32xf32>
    %644 = arith.mulf %643, %641 : vector<16x32xf32>
    %645 = arith.addf %634, %644 : vector<16x32xf32>
    %c41_88 = arith.constant 41 : index
    %646 = memref.load %arg2[%c41_88] : memref<72xf32, #tpu.memory_space<smem>>
    %647 = vector.broadcast %646 : f32 to vector<16x32xf32>
    %648 = arith.mulf %647, %641 : vector<16x32xf32>
    %649 = arith.addf %638, %648 : vector<16x32xf32>
    %650 = vector.extract_strided_slice %639 {offsets = [1, 0, 0], sizes = [1, 16, 32], strides = [1, 1, 1]} : vector<4x16x32xf32> to vector<1x16x32xf32>
    %651 = vector.shape_cast %650 : vector<1x16x32xf32> to vector<16x32xf32>
    %c14_89 = arith.constant 14 : index
    %652 = memref.load %arg2[%c14_89] : memref<72xf32, #tpu.memory_space<smem>>
    %653 = vector.broadcast %652 : f32 to vector<16x32xf32>
    %654 = arith.mulf %653, %651 : vector<16x32xf32>
    %655 = arith.addf %645, %654 : vector<16x32xf32>
    %c50_90 = arith.constant 50 : index
    %656 = memref.load %arg2[%c50_90] : memref<72xf32, #tpu.memory_space<smem>>
    %657 = vector.broadcast %656 : f32 to vector<16x32xf32>
    %658 = arith.mulf %657, %651 : vector<16x32xf32>
    %659 = arith.addf %649, %658 : vector<16x32xf32>
    %660 = vector.extract_strided_slice %639 {offsets = [2, 0, 0], sizes = [1, 16, 32], strides = [1, 1, 1]} : vector<4x16x32xf32> to vector<1x16x32xf32>
    %661 = vector.shape_cast %660 : vector<1x16x32xf32> to vector<16x32xf32>
    %c23_91 = arith.constant 23 : index
    %662 = memref.load %arg2[%c23_91] : memref<72xf32, #tpu.memory_space<smem>>
    %663 = vector.broadcast %662 : f32 to vector<16x32xf32>
    %664 = arith.mulf %663, %661 : vector<16x32xf32>
    %665 = arith.addf %655, %664 : vector<16x32xf32>
    %c59_92 = arith.constant 59 : index
    %666 = memref.load %arg2[%c59_92] : memref<72xf32, #tpu.memory_space<smem>>
    %667 = vector.broadcast %666 : f32 to vector<16x32xf32>
    %668 = arith.mulf %667, %661 : vector<16x32xf32>
    %669 = arith.addf %659, %668 : vector<16x32xf32>
    %670 = vector.extract_strided_slice %639 {offsets = [3, 0, 0], sizes = [1, 16, 32], strides = [1, 1, 1]} : vector<4x16x32xf32> to vector<1x16x32xf32>
    %671 = vector.shape_cast %670 : vector<1x16x32xf32> to vector<16x32xf32>
    %c32_93 = arith.constant 32 : index
    %672 = memref.load %arg2[%c32_93] : memref<72xf32, #tpu.memory_space<smem>>
    %673 = vector.broadcast %672 : f32 to vector<16x32xf32>
    %674 = arith.mulf %673, %671 : vector<16x32xf32>
    %675 = arith.addf %665, %674 : vector<16x32xf32>
    %c68_94 = arith.constant 68 : index
    %676 = memref.load %arg2[%c68_94] : memref<72xf32, #tpu.memory_space<smem>>
    %677 = vector.broadcast %676 : f32 to vector<16x32xf32>
    %678 = arith.mulf %677, %671 : vector<16x32xf32>
    %679 = arith.addf %669, %678 : vector<16x32xf32>
    %680 = vector.extract_strided_slice %20 {offsets = [0, 1, 0], sizes = [4, 16, 34], strides = [1, 1, 1]} : vector<4x17x34xf32> to vector<4x16x34xf32>
    %681 = vector.extract_strided_slice %680 {offsets = [0, 0, 0], sizes = [4, 16, 32], strides = [1, 1, 1]} : vector<4x16x34xf32> to vector<4x16x32xf32>
    %682 = vector.extract_strided_slice %681 {offsets = [0, 0, 0], sizes = [1, 16, 32], strides = [1, 1, 1]} : vector<4x16x32xf32> to vector<1x16x32xf32>
    %683 = vector.shape_cast %682 : vector<1x16x32xf32> to vector<16x32xf32>
    %c6_95 = arith.constant 6 : index
    %684 = memref.load %arg2[%c6_95] : memref<72xf32, #tpu.memory_space<smem>>
    %685 = vector.broadcast %684 : f32 to vector<16x32xf32>
    %686 = arith.mulf %685, %683 : vector<16x32xf32>
    %687 = arith.addf %428, %686 : vector<16x32xf32>
    %c42_96 = arith.constant 42 : index
    %688 = memref.load %arg2[%c42_96] : memref<72xf32, #tpu.memory_space<smem>>
    %689 = vector.broadcast %688 : f32 to vector<16x32xf32>
    %690 = arith.mulf %689, %683 : vector<16x32xf32>
    %691 = arith.addf %431, %690 : vector<16x32xf32>
    %692 = vector.extract_strided_slice %681 {offsets = [1, 0, 0], sizes = [1, 16, 32], strides = [1, 1, 1]} : vector<4x16x32xf32> to vector<1x16x32xf32>
    %693 = vector.shape_cast %692 : vector<1x16x32xf32> to vector<16x32xf32>
    %c15_97 = arith.constant 15 : index
    %694 = memref.load %arg2[%c15_97] : memref<72xf32, #tpu.memory_space<smem>>
    %695 = vector.broadcast %694 : f32 to vector<16x32xf32>
    %696 = arith.mulf %695, %693 : vector<16x32xf32>
    %697 = arith.addf %687, %696 : vector<16x32xf32>
    %c51_98 = arith.constant 51 : index
    %698 = memref.load %arg2[%c51_98] : memref<72xf32, #tpu.memory_space<smem>>
    %699 = vector.broadcast %698 : f32 to vector<16x32xf32>
    %700 = arith.mulf %699, %693 : vector<16x32xf32>
    %701 = arith.addf %691, %700 : vector<16x32xf32>
    %702 = vector.extract_strided_slice %681 {offsets = [2, 0, 0], sizes = [1, 16, 32], strides = [1, 1, 1]} : vector<4x16x32xf32> to vector<1x16x32xf32>
    %703 = vector.shape_cast %702 : vector<1x16x32xf32> to vector<16x32xf32>
    %c24_99 = arith.constant 24 : index
    %704 = memref.load %arg2[%c24_99] : memref<72xf32, #tpu.memory_space<smem>>
    %705 = vector.broadcast %704 : f32 to vector<16x32xf32>
    %706 = arith.mulf %705, %703 : vector<16x32xf32>
    %707 = arith.addf %697, %706 : vector<16x32xf32>
    %c60_100 = arith.constant 60 : index
    %708 = memref.load %arg2[%c60_100] : memref<72xf32, #tpu.memory_space<smem>>
    %709 = vector.broadcast %708 : f32 to vector<16x32xf32>
    %710 = arith.mulf %709, %703 : vector<16x32xf32>
    %711 = arith.addf %701, %710 : vector<16x32xf32>
    %712 = vector.extract_strided_slice %681 {offsets = [3, 0, 0], sizes = [1, 16, 32], strides = [1, 1, 1]} : vector<4x16x32xf32> to vector<1x16x32xf32>
    %713 = vector.shape_cast %712 : vector<1x16x32xf32> to vector<16x32xf32>
    %c33_101 = arith.constant 33 : index
    %714 = memref.load %arg2[%c33_101] : memref<72xf32, #tpu.memory_space<smem>>
    %715 = vector.broadcast %714 : f32 to vector<16x32xf32>
    %716 = arith.mulf %715, %713 : vector<16x32xf32>
    %717 = arith.addf %707, %716 : vector<16x32xf32>
    %c69_102 = arith.constant 69 : index
    %718 = memref.load %arg2[%c69_102] : memref<72xf32, #tpu.memory_space<smem>>
    %719 = vector.broadcast %718 : f32 to vector<16x32xf32>
    %720 = arith.mulf %719, %713 : vector<16x32xf32>
    %721 = arith.addf %711, %720 : vector<16x32xf32>
    %722 = vector.extract_strided_slice %680 {offsets = [0, 0, 1], sizes = [4, 16, 32], strides = [1, 1, 1]} : vector<4x16x34xf32> to vector<4x16x32xf32>
    %723 = vector.extract_strided_slice %722 {offsets = [0, 0, 0], sizes = [1, 16, 32], strides = [1, 1, 1]} : vector<4x16x32xf32> to vector<1x16x32xf32>
    %724 = vector.shape_cast %723 : vector<1x16x32xf32> to vector<16x32xf32>
    %c7_103 = arith.constant 7 : index
    %725 = memref.load %arg2[%c7_103] : memref<72xf32, #tpu.memory_space<smem>>
    %726 = vector.broadcast %725 : f32 to vector<16x32xf32>
    %727 = arith.mulf %726, %724 : vector<16x32xf32>
    %728 = arith.addf %717, %727 : vector<16x32xf32>
    %c43_104 = arith.constant 43 : index
    %729 = memref.load %arg2[%c43_104] : memref<72xf32, #tpu.memory_space<smem>>
    %730 = vector.broadcast %729 : f32 to vector<16x32xf32>
    %731 = arith.mulf %730, %724 : vector<16x32xf32>
    %732 = arith.addf %721, %731 : vector<16x32xf32>
    %733 = vector.extract_strided_slice %722 {offsets = [1, 0, 0], sizes = [1, 16, 32], strides = [1, 1, 1]} : vector<4x16x32xf32> to vector<1x16x32xf32>
    %734 = vector.shape_cast %733 : vector<1x16x32xf32> to vector<16x32xf32>
    %c16_105 = arith.constant 16 : index
    %735 = memref.load %arg2[%c16_105] : memref<72xf32, #tpu.memory_space<smem>>
    %736 = vector.broadcast %735 : f32 to vector<16x32xf32>
    %737 = arith.mulf %736, %734 : vector<16x32xf32>
    %738 = arith.addf %728, %737 : vector<16x32xf32>
    %c52_106 = arith.constant 52 : index
    %739 = memref.load %arg2[%c52_106] : memref<72xf32, #tpu.memory_space<smem>>
    %740 = vector.broadcast %739 : f32 to vector<16x32xf32>
    %741 = arith.mulf %740, %734 : vector<16x32xf32>
    %742 = arith.addf %732, %741 : vector<16x32xf32>
    %743 = vector.extract_strided_slice %722 {offsets = [2, 0, 0], sizes = [1, 16, 32], strides = [1, 1, 1]} : vector<4x16x32xf32> to vector<1x16x32xf32>
    %744 = vector.shape_cast %743 : vector<1x16x32xf32> to vector<16x32xf32>
    %c25_107 = arith.constant 25 : index
    %745 = memref.load %arg2[%c25_107] : memref<72xf32, #tpu.memory_space<smem>>
    %746 = vector.broadcast %745 : f32 to vector<16x32xf32>
    %747 = arith.mulf %746, %744 : vector<16x32xf32>
    %748 = arith.addf %738, %747 : vector<16x32xf32>
    %c61_108 = arith.constant 61 : index
    %749 = memref.load %arg2[%c61_108] : memref<72xf32, #tpu.memory_space<smem>>
    %750 = vector.broadcast %749 : f32 to vector<16x32xf32>
    %751 = arith.mulf %750, %744 : vector<16x32xf32>
    %752 = arith.addf %742, %751 : vector<16x32xf32>
    %753 = vector.extract_strided_slice %722 {offsets = [3, 0, 0], sizes = [1, 16, 32], strides = [1, 1, 1]} : vector<4x16x32xf32> to vector<1x16x32xf32>
    %754 = vector.shape_cast %753 : vector<1x16x32xf32> to vector<16x32xf32>
    %c34_109 = arith.constant 34 : index
    %755 = memref.load %arg2[%c34_109] : memref<72xf32, #tpu.memory_space<smem>>
    %756 = vector.broadcast %755 : f32 to vector<16x32xf32>
    %757 = arith.mulf %756, %754 : vector<16x32xf32>
    %758 = arith.addf %748, %757 : vector<16x32xf32>
    %c70_110 = arith.constant 70 : index
    %759 = memref.load %arg2[%c70_110] : memref<72xf32, #tpu.memory_space<smem>>
    %760 = vector.broadcast %759 : f32 to vector<16x32xf32>
    %761 = arith.mulf %760, %754 : vector<16x32xf32>
    %762 = arith.addf %752, %761 : vector<16x32xf32>
    %763 = vector.extract_strided_slice %680 {offsets = [0, 0, 2], sizes = [4, 16, 32], strides = [1, 1, 1]} : vector<4x16x34xf32> to vector<4x16x32xf32>
    %764 = vector.extract_strided_slice %763 {offsets = [0, 0, 0], sizes = [1, 16, 32], strides = [1, 1, 1]} : vector<4x16x32xf32> to vector<1x16x32xf32>
    %765 = vector.shape_cast %764 : vector<1x16x32xf32> to vector<16x32xf32>
    %c8_111 = arith.constant 8 : index
    %766 = memref.load %arg2[%c8_111] : memref<72xf32, #tpu.memory_space<smem>>
    %767 = vector.broadcast %766 : f32 to vector<16x32xf32>
    %768 = arith.mulf %767, %765 : vector<16x32xf32>
    %769 = arith.addf %758, %768 : vector<16x32xf32>
    %c44_112 = arith.constant 44 : index
    %770 = memref.load %arg2[%c44_112] : memref<72xf32, #tpu.memory_space<smem>>
    %771 = vector.broadcast %770 : f32 to vector<16x32xf32>
    %772 = arith.mulf %771, %765 : vector<16x32xf32>
    %773 = arith.addf %762, %772 : vector<16x32xf32>
    %774 = vector.extract_strided_slice %763 {offsets = [1, 0, 0], sizes = [1, 16, 32], strides = [1, 1, 1]} : vector<4x16x32xf32> to vector<1x16x32xf32>
    %775 = vector.shape_cast %774 : vector<1x16x32xf32> to vector<16x32xf32>
    %c17_113 = arith.constant 17 : index
    %776 = memref.load %arg2[%c17_113] : memref<72xf32, #tpu.memory_space<smem>>
    %777 = vector.broadcast %776 : f32 to vector<16x32xf32>
    %778 = arith.mulf %777, %775 : vector<16x32xf32>
    %779 = arith.addf %769, %778 : vector<16x32xf32>
    %c53_114 = arith.constant 53 : index
    %780 = memref.load %arg2[%c53_114] : memref<72xf32, #tpu.memory_space<smem>>
    %781 = vector.broadcast %780 : f32 to vector<16x32xf32>
    %782 = arith.mulf %781, %775 : vector<16x32xf32>
    %783 = arith.addf %773, %782 : vector<16x32xf32>
    %784 = vector.extract_strided_slice %763 {offsets = [2, 0, 0], sizes = [1, 16, 32], strides = [1, 1, 1]} : vector<4x16x32xf32> to vector<1x16x32xf32>
    %785 = vector.shape_cast %784 : vector<1x16x32xf32> to vector<16x32xf32>
    %c26_115 = arith.constant 26 : index
    %786 = memref.load %arg2[%c26_115] : memref<72xf32, #tpu.memory_space<smem>>
    %787 = vector.broadcast %786 : f32 to vector<16x32xf32>
    %788 = arith.mulf %787, %785 : vector<16x32xf32>
    %789 = arith.addf %779, %788 : vector<16x32xf32>
    %c62_116 = arith.constant 62 : index
    %790 = memref.load %arg2[%c62_116] : memref<72xf32, #tpu.memory_space<smem>>
    %791 = vector.broadcast %790 : f32 to vector<16x32xf32>
    %792 = arith.mulf %791, %785 : vector<16x32xf32>
    %793 = arith.addf %783, %792 : vector<16x32xf32>
    %794 = vector.extract_strided_slice %763 {offsets = [3, 0, 0], sizes = [1, 16, 32], strides = [1, 1, 1]} : vector<4x16x32xf32> to vector<1x16x32xf32>
    %795 = vector.shape_cast %794 : vector<1x16x32xf32> to vector<16x32xf32>
    %c35_117 = arith.constant 35 : index
    %796 = memref.load %arg2[%c35_117] : memref<72xf32, #tpu.memory_space<smem>>
    %797 = vector.broadcast %796 : f32 to vector<16x32xf32>
    %798 = arith.mulf %797, %795 : vector<16x32xf32>
    %799 = arith.addf %789, %798 : vector<16x32xf32>
    %c71_118 = arith.constant 71 : index
    %800 = memref.load %arg2[%c71_118] : memref<72xf32, #tpu.memory_space<smem>>
    %801 = vector.broadcast %800 : f32 to vector<16x32xf32>
    %802 = arith.mulf %801, %795 : vector<16x32xf32>
    %803 = arith.addf %793, %802 : vector<16x32xf32>
    %804 = arith.addf %551, %675 : vector<16x32xf32>
    %805 = arith.addf %804, %799 : vector<16x32xf32>
    %806 = arith.addf %555, %679 : vector<16x32xf32>
    %807 = arith.addf %806, %803 : vector<16x32xf32>
    %808 = tpu.concatenate %805, %807 in 0 : vector<16x32xf32>, vector<16x32xf32> -> vector<32x32xf32>
    %cst_119 = arith.constant dense<0.000000e+00> : vector<32x16xf32>
    %809 = tpu.matmul %808, %23, %cst_119 {dimension_numbers = #tpu.dot_dimension_numbers<[1], [0], [0], [1], [0, 0, 1, 1], [], []>, precision = #tpu.contract_precision<fp32>} : vector<32x32xf32>, vector<32x16xf32>, vector<32x16xf32> -> vector<32x16xf32>
    %cst_120 = arith.constant dense<0.000000e+00> : vector<32x16xf32>
    %810 = tpu.matmul %808, %24, %cst_120 {dimension_numbers = #tpu.dot_dimension_numbers<[1], [0], [0], [1], [0, 0, 1, 1], [], []>, precision = #tpu.contract_precision<fp32>} : vector<32x32xf32>, vector<32x16xf32>, vector<32x16xf32> -> vector<32x16xf32>
    %811 = vector.extract_strided_slice %809 {offsets = [0, 0], sizes = [16, 16], strides = [1, 1]} : vector<32x16xf32> to vector<16x16xf32>
    %c0_121 = arith.constant 0 : index
    %c2_122 = arith.constant 2 : index
    %c0_123 = arith.constant 0 : index
    %c0_124 = arith.constant 0 : index
    %812 = vector.load %arg8[%c0_121, %c2_122, %c0_123, %c0_124] : memref<1x8x16x16xf32, #tpu.memory_space<vmem>>, vector<1x1x16x16xf32>
    %813 = vector.shape_cast %812 : vector<1x1x16x16xf32> to vector<16x16xf32>
    %814 = vector.shape_cast %811 : vector<16x16xf32> to vector<1x1x16x16xf32>
    tpu.vector_store %arg8[%c0_121, %c2_122, %c0_123, %c0_124], %814 {strides = array<i32>} : memref<1x8x16x16xf32, #tpu.memory_space<vmem>>, vector<1x1x16x16xf32>,
    %815 = vector.extract_strided_slice %810 {offsets = [0, 0], sizes = [16, 16], strides = [1, 1]} : vector<32x16xf32> to vector<16x16xf32>
    %c0_125 = arith.constant 0 : index
    %c3_126 = arith.constant 3 : index
    %c0_127 = arith.constant 0 : index
    %c0_128 = arith.constant 0 : index
    %816 = vector.load %arg8[%c0_125, %c3_126, %c0_127, %c0_128] : memref<1x8x16x16xf32, #tpu.memory_space<vmem>>, vector<1x1x16x16xf32>
    %817 = vector.shape_cast %816 : vector<1x1x16x16xf32> to vector<16x16xf32>
    %818 = vector.shape_cast %815 : vector<16x16xf32> to vector<1x1x16x16xf32>
    tpu.vector_store %arg8[%c0_125, %c3_126, %c0_127, %c0_128], %818 {strides = array<i32>} : memref<1x8x16x16xf32, #tpu.memory_space<vmem>>, vector<1x1x16x16xf32>,
    %819 = vector.extract_strided_slice %809 {offsets = [16, 0], sizes = [16, 16], strides = [1, 1]} : vector<32x16xf32> to vector<16x16xf32>
    %c0_129 = arith.constant 0 : index
    %c6_130 = arith.constant 6 : index
    %c0_131 = arith.constant 0 : index
    %c0_132 = arith.constant 0 : index
    %820 = vector.load %arg8[%c0_129, %c6_130, %c0_131, %c0_132] : memref<1x8x16x16xf32, #tpu.memory_space<vmem>>, vector<1x1x16x16xf32>
    %821 = vector.shape_cast %820 : vector<1x1x16x16xf32> to vector<16x16xf32>
    %822 = vector.shape_cast %819 : vector<16x16xf32> to vector<1x1x16x16xf32>
    tpu.vector_store %arg8[%c0_129, %c6_130, %c0_131, %c0_132], %822 {strides = array<i32>} : memref<1x8x16x16xf32, #tpu.memory_space<vmem>>, vector<1x1x16x16xf32>,
    %823 = vector.extract_strided_slice %810 {offsets = [16, 0], sizes = [16, 16], strides = [1, 1]} : vector<32x16xf32> to vector<16x16xf32>
    %c0_133 = arith.constant 0 : index
    %c7_134 = arith.constant 7 : index
    %c0_135 = arith.constant 0 : index
    %c0_136 = arith.constant 0 : index
    %824 = vector.load %arg8[%c0_133, %c7_134, %c0_135, %c0_136] : memref<1x8x16x16xf32, #tpu.memory_space<vmem>>, vector<1x1x16x16xf32>
    %825 = vector.shape_cast %824 : vector<1x1x16x16xf32> to vector<16x16xf32>
    %826 = vector.shape_cast %823 : vector<16x16xf32> to vector<1x1x16x16xf32>
    tpu.vector_store %arg8[%c0_133, %c7_134, %c0_135, %c0_136], %826 {strides = array<i32>} : memref<1x8x16x16xf32, #tpu.memory_space<vmem>>, vector<1x1x16x16xf32>,
    return
  }
  func.func @transform_0(%arg0: i32, %arg1: i32) -> i32 {
    %c0_i32 = arith.constant 0 : i32
    %c0_i32_0 = arith.constant 0 : i32
    return %c0_i32 : i32
  }
  func.func @transform_1(%arg0: i32, %arg1: i32) -> (i32, i32) {
    %c0_i32 = arith.constant 0 : i32
    %c0_i32_0 = arith.constant 0 : i32
    %c0_i32_1 = arith.constant 0 : i32
    return %c0_i32, %c0_i32_0 : i32, i32
  }
  func.func @transform_2(%arg0: i32, %arg1: i32) -> (i32, i32) {
    %c0_i32 = arith.constant 0 : i32
    %c0_i32_0 = arith.constant 0 : i32
    %c0_i32_1 = arith.constant 0 : i32
    return %c0_i32, %c0_i32_0 : i32, i32
  }
  func.func @transform_3(%arg0: i32, %arg1: i32) -> (i32, i32, i32, i32) {
    %c0_i32 = arith.constant 0 : i32
    %c0_i32_0 = arith.constant 0 : i32
    %c0_i32_1 = arith.constant 0 : i32
    return %arg0, %c0_i32, %arg1, %c0_i32_0 : i32, i32, i32, i32
  }
  func.func @transform_4(%arg0: i32, %arg1: i32) -> (i32, i32, i32, i32) {
    %c2_i32 = arith.constant 2 : i32
    %0 = arith.muli %arg1, %c2_i32 : i32
    %c1_i32 = arith.constant 1 : i32
    %1 = arith.subi %0, %c1_i32 : i32
    %c0_i32 = arith.constant 0 : i32
    %2 = arith.maxsi %1, %c0_i32 : i32
    %c0_i32_0 = arith.constant 0 : i32
    %c0_i32_1 = arith.constant 0 : i32
    %c0_i32_2 = arith.constant 0 : i32
    return %arg0, %c0_i32_0, %2, %c0_i32_1 : i32, i32, i32, i32
  }
  func.func @transform_5(%arg0: i32, %arg1: i32) -> (i32, i32, i32, i32) {
    %c1_i32 = arith.constant 1 : i32
    %0 = arith.addi %arg1, %c1_i32 : i32
    %c2_i32 = arith.constant 2 : i32
    %1 = arith.muli %0, %c2_i32 : i32
    %c1_i32_0 = arith.constant 1 : i32
    %2 = arith.minsi %1, %c1_i32_0 : i32
    %c0_i32 = arith.constant 0 : i32
    %c0_i32_1 = arith.constant 0 : i32
    %c0_i32_2 = arith.constant 0 : i32
    return %arg0, %c0_i32, %2, %c0_i32_1 : i32, i32, i32, i32
  }
  func.func @transform_6(%arg0: i32, %arg1: i32) -> (i32, i32, i32, i32) {
    %c0_i32 = arith.constant 0 : i32
    %c0_i32_0 = arith.constant 0 : i32
    %c0_i32_1 = arith.constant 0 : i32
    return %arg0, %c0_i32, %arg1, %c0_i32_0 : i32, i32, i32, i32
  }
}

</mosaic_0001>

<bundles_post_ra>
// kernel: tpu_custom_call.1
= control target key start
LH: loop header
LB: loop body
LE: loop exit
PB: predicated region body
PF: predicated region fallthrough
CT: control target
= control target key end

     0   :  { %s9205_s0 = inlined_call_operand.vmem [shape: f32[72], index: 0, kind: input, shape index: {}]   ;;  %s9206_s1 = inlined_call_operand.vmem [shape: f32[32,16], index: 1, kind: input, shape index: {}]   ;;  %s9207_s2 = inlined_call_operand.vmem [shape: f32[32,16], index: 2, kind: input, shape index: {}]   ;;  %s9208_s3 = inlined_call_operand.hbm [shape: f32[2,4,16,64], index: 3, kind: input, shape index: {}]   ;;  %s9209_s4 = inlined_call_operand.hbm [shape: f32[2,4,16,64], index: 4, kind: input, shape index: {}]   ;;  %s9210_s5 = inlined_call_operand.hbm [shape: f32[2,4,16,64], index: 5, kind: input, shape index: {}]   ;;  %s9211_s6 = inlined_call_operand.hbm [shape: f32[2,8,16,16], index: 6, kind: output, shape index: {}]  }
   0x1   :  { %9350 = sst [smem:[#allocation143_spill]] %s9205_s0 }
   0x2   :  { %9351 = sst [smem:[#allocation144_spill]] %s9206_s1 }
   0x3   :  { %9352 = sst [smem:[#allocation145_spill]] %s9207_s2 }
   0x4   :  { %9353 = sst [smem:[#allocation146_spill]] %s9208_s3 }
   0x5   :  { %9354 = sst [smem:[#allocation147_spill]] %s9209_s4 }
   0x6   :  { %9355 = sst [smem:[#allocation148_spill]] %s9210_s5 }
   0x7   :  { %9356 = sst [smem:[#allocation149_spill]] %s9211_s6 }
   0x8   :  { %11 = vsyncpa [#allocation5], 0 }
   0x9   :  { %12 = vsyncpa [#allocation3], 0 }
   0xa   :  { %14 = vsyncpa [#allocation3 + $0x1], 0 }
   0xb   :  { %15 = vsyncpa [#allocation8], 0 }
   0xc   :  { %17 = vsyncpa [#allocation8 + $0x1], 0 }
   0xd   :  { %18 = vsyncpa [#allocation4], 0 }
   0xe   :  { %20 = vsyncpa [#allocation4 + $0x1], 0  ;;  %s6375_s21 = smov 0   ;;  %s6377_s22 = smov 0  }
   0xf   :  { %s6379_s23 = smov 0   ;;  %s6381_s24 = smov 0  }
  0x10   :  { %s6383_s25 = smov 0   ;;  %s6385_s26 = smov 0  }
  0x11 LB: > { %9357 = sst [smem:[#allocation15_spill]] %s6304_s21  ;;  %s38_s27 = sadd.s32 1, %s6320_s25  ;;  %s6324_s26 = sphi %s6385_s26, %s26_s26   ;;  %s6320_s25 = sphi %s6383_s25, %s9778_s25   ;;  %s6316_s24 = sphi %s6381_s24, %s9777_s24   ;;  %s6312_s23 = sphi %s6379_s23, %s9776_s23   ;;  %s6308_s22 = sphi %s6377_s22, %s9775_s22   ;;  %s6304_s21 = sphi %s6375_s21, %s9774_s21  }
  0x12   : > { %9358 = sst [smem:[#allocation16_spill]] %s6308_s22  ;;  %s110_s28 = sadd.s32 1, %s6312_s23 }
  0x13   : > { %9359 = sst [smem:[#allocation17_spill]] %s6312_s23  ;;  %p40_p0 = scmp.ge.s32.totalorder %s38_s27, 2 }
  0x14   : > { %9360 = sst [smem:[#allocation18_spill]] %s6316_s24  ;;  %p117_p1 = scmp.ne.s32.totalorder %s6312_s23, %s6308_s22 }
  0x15   : > { %9361 = sst [smem:[#allocation19_spill]] %s6320_s25  ;;  %p118_p2 = scmp.eq.s32.totalorder %s6324_s26, 0 }
  0x16   : > { %9362 = sst [smem:[#allocation20_spill]] %s6324_s26  ;;  %s9780_s27 = smov (%p40_p0, %s38_s27), 0 }
  0x17   : > { %9363 = sst [smem:[#allocation21_spill]] %s9780_s27  ;;  %p119_p4 = por %p118_p2, %p117_p1 }
  0x18   : > { %p6076_p5 = scmp.lt.s32.totalorder %s6324_s26, 2  ;;  %s105_s29 = ssub.s32 %s6320_s25, %s9780_s27 }
  0x19   : > { %s6420_s30 = sand.u32 1, %s6312_s23   ;;  %p108_p6 = scmp.eq.s32.totalorder %s105_s29, 0 }
  0x1a   : > { %s6423_s7 = sshll.u32 %s6320_s25, 10  ;;  %p6425_p7 = pnand %p6076_p5, %p119_p4 }
  0x1b   : > { %s6430_s9 = scalar_select %p108_p6, %s6312_s23, %s110_s28  }
  0x1c   : > { %s287_s10 = sand.u32 1, %s6324_s26   ;;  %s5338_s11 = sshll.u32 %s6420_s30, 5 }
  0x1d   : > { %9365 = sst [smem:[#allocation22_spill]] %s6430_s9  ;;  %s291_s15 = scalar_lea.vmem [#allocation7], %s5338_s11 }
  0x1e   : > { %s9366_s4 = sld [smem:[#allocation147_spill]]  ;;  %s303_s16 = sshll.u32 %s291_s15, 4  ;;  %s304_s16 = int_to_ptr.vmem [resolvable:$true] %s303_s16 }
  0x1f   : > { %s6438_s17 = scalar_lea.sflag [#allocation8], %s287_s10  ;;  %p9223_p8 = pneg %p6425_p7 }
  0x20   : > { %s6150_s18 = scalar_lea.vmem %s304_s16, 512  ;;  %s6326_s19 = smov [#allocation7]  }
  0x21   : > { %p6151_p9 = scmp.ne.s32.totalorder %s304_s16, %s6150_s18  ;;  %s6155_s20 = sshll.u32 %s6326_s19, 4  ;;  %s6156_s20 = int_to_ptr.vmem [resolvable:$false] %s6155_s20 }
  0x22   : > { %s6157_s28 = scalar_lea.vmem %s6156_s20, 1024  ;;  %p6158_p12 = scmp.lt.s32.totalorder %s304_s16, %s6156_s20 }
  0x23   : > { %p6153_p10 = pnand %p6151_p9, %p9223_p8  ;;  %p6159_p13 = scmp.lt.s32.totalorder %s6157_s28, %s6150_s18 }
  0x24   : > { %s302_s14 = scalar_lea.hbm %s9366_s4, %s6423_s7 }
  0x25   : > { %p6154_p11 = pneg %p6153_p10  ;;  %p6160_p0 = por %p6159_p13, %p6158_p12 }
  0x27   : > { %p6161_p2 = pnand %p6160_p0, %p6154_p11 }
  0x29   : > { %6164 = shalt.err (!%p6161_p2)
}
  0x2a   : > { %s9212_s29 = smov 256   ;;  %s9213_s10 = smov 128  }
  0x2b   : > { %s9215_s12 = smov 8   ;;  %s317_s13 = scalar_lea.vmem [#allocation9], %s5338_s11 }
  0x2c   : > { %6067 = dma.hbm_to_vmem [thread:$0]  (!%p6425_p7), %s302_s14, 512, %s304_s16, %s6438_s17, %s9212_s29, %s9213_s10, %s9215_s12  }
  0x2d   : > { %s329_s15 = sshll.u32 %s317_s13, 4  ;;  %s6454_s18 = sadd.s32 4294967295, %s6324_s26   ;;  %s6451_s15 = int_to_ptr.vmem [resolvable:$true] %s329_s15 }
  0x2e   : > { %s5331_s19 = sadd.s32 4294967294, %s6324_s26   ;;  %p123_p4 = scmp.ne.s32.totalorder %s6308_s22, %s6304_s21 }
  0x2f   : > { %p9222_p5 = scmp.eq.s32.totalorder %s6454_s18, 0  ;;  %p221_p6 = scmp.eq.s32.totalorder %s6454_s18, 1 }
  0x30   : > { %p227_p9 = scmp.eq.s32.totalorder %s5331_s19, 1  ;;  %p5332_p10 = scmp.ge.s32.totalorder %s6324_s26, 1 }
  0x31   : > { %p6464_p11 = por %p9222_p5, %p123_p4  ;;  %p6471_p12 = por %p221_p6, %p117_p1 }
  0x32   : > { %p6475_p13 = por %p227_p9, %p123_p4  ;;  %p234_p0 = scmp.lt.s32.totalorder %s6324_s26, 3 }
  0x33   : > { %s9368_s14 = scalar_select %p6471_p12, 1, 0 }
  0x34   : > { %s9370_s16 = scalar_select %p6475_p13, 1, 0 }
  0x35   : > { %9369 = sst [smem:[#allocation23_spill]] %s9368_s14  ;;  %p6483_p2 = pnand %p5332_p10, %p234_p0 }
  0x36   : > { %9371 = sst [smem:[#allocation24_spill]] %s9370_s16  ;;  %s5335_s29 = sshll.u32 %s6420_s30, 6 }
  0x37   : > { %s9372_s0 = sld [smem:[#allocation143_spill]]  ;;  %p6057_p1 = pneg %p6483_p2 }
  0x38   : > { %s9374_s3 = sld [smem:[#allocation146_spill]]  ;;  %s268_s20 = scalar_lea.vmem [#allocation6], %s5335_s29 }
  0x39   : > { %p6496_p4 = pnand %p6057_p1, %p9222_p5  ;;  %s277_s28 = sshll.u32 %s268_s20, 4  ;;  %s6500_s28 = int_to_ptr.vmem [resolvable:$true] %s277_s28 }
  0x3a   : > { %s9376_s5 = sld [smem:[#allocation148_spill]] }
  0x3b   : > { %p6167_p9 = pneg %p6496_p4 }
  0x3d   : > { %s247_s13 = sshll.u32 %s9372_s0, 4  ;;  %s5514_s0 = sadd.s32 128, %s6423_s7  ;;  %s248_s13 = int_to_ptr.vmem [resolvable:$true] %s247_s13 }
  0x3e   : > { %s276_s4 = scalar_lea.hbm %s9374_s3, %s6423_s7  ;;  %s6165_s26 = scalar_lea.vmem %s248_s13, 16 }
  0x3f   : > { %p6166_p6 = scmp.ne.s32.totalorder %s248_s13, %s6165_s26  ;;  %p6173_p1 = scmp.lt.s32.totalorder %s248_s13, %s248_s13 }
  0x40   : > { %s6506_s23 = scalar_lea.hbm %s9376_s5, %s5514_s0  ;;  %p6174_p3 = scmp.lt.s32.totalorder %s6165_s26, %s6165_s26 }
  0x41   : > { %p6168_p10 = pnand %p6167_p9, %p6166_p6 }
  0x42   : > { %p6175_p5 = por %p6174_p3, %p6173_p1 }
  0x43   : > { %p6169_p0 = pneg %p6168_p10 }
  0x45   : > { %p6176_p8 = pnand %p6175_p5, %p6169_p0 }
  0x47   : > { %6179 = shalt.err (!%p6176_p8)
}
  0x48   : > { %s6330_s29 = smov [#allocation2]   ;;  %s265_s0 = scalar_lea.sflag [#allocation3], %s6420_s30 }
  0x49   : > { %6060 = dma.vmem_to_smem (!%p6496_p4), %s248_s13, 16, %s6330_s29, [#allocation5]  }
  0x4a   : > { %s6193_s25 = scalar_lea.vmem %s6500_s28, 1024  ;;  %p9377_p6 = pneg %p6425_p7 }
  0x4b   : > { %p6194_p13 = scmp.ne.s32.totalorder %s6500_s28, %s6193_s25  ;;  %s6331_s26 = smov [#allocation6]  }
  0x4c   : > { %s6198_s9 = sshll.u32 %s6331_s26, 4  ;;  %s6199_s9 = int_to_ptr.vmem [resolvable:$false] %s6198_s9 }
  0x4d   : > { %p6196_p9 = pnand %p6194_p13, %p9377_p6  ;;  %s6200_s10 = scalar_lea.vmem %s6199_s9, 2048 }
  0x4e   : > { %p6201_p3 = scmp.lt.s32.totalorder %s6500_s28, %s6199_s9  ;;  %p6202_p8 = scmp.lt.s32.totalorder %s6200_s10, %s6193_s25 }
  0x4f   : > { %p6197_p10 = pneg %p6196_p9 }
  0x50   : > { %p6203_p5 = por %p6202_p8, %p6201_p3 }
  0x52   : > { %p6204_p0 = pnand %p6203_p5, %p6197_p10 }
  0x54   : > { %6207 = shalt.err (!%p6204_p0)
}
  0x55   : > { %s9378_s27 = smov 8   ;;  %s9379_s12 = smov 128  }
  0x56   : > { %6064 = dma.hbm_to_vmem [thread:$0]  (!%p6425_p7), %s276_s4, 1024, %s6500_s28, %s265_s0, %s9379_s12, %s9379_s12, %s9378_s27  }
  0x57   : > { %s6221_s20 = scalar_lea.vmem %s6451_s15, 512  ;;  %p9380_p4 = pmov %p9377_p6 }
  0x58   : > { %p6222_p13 = scmp.ne.s32.totalorder %s6451_s15, %s6221_s20  ;;  %s6332_s29 = smov [#allocation9]  }
  0x59   : > { %s6226_s25 = sshll.u32 %s6332_s29, 4  ;;  %s6227_s25 = int_to_ptr.vmem [resolvable:$false] %s6226_s25 }
  0x5a   : > { %p6224_p1 = pnand %p6222_p13, %p9380_p4  ;;  %s6228_s26 = scalar_lea.vmem %s6227_s25, 1024 }
  0x5b   : > { %p6229_p9 = scmp.lt.s32.totalorder %s6451_s15, %s6227_s25  ;;  %p6230_p10 = scmp.lt.s32.totalorder %s6228_s26, %s6221_s20 }
  0x5c   : > { %p6225_p6 = pneg %p6224_p1 }
  0x5d   : > { %p6231_p3 = por %p6230_p10, %p6229_p9 }
  0x5f   : > { %p6232_p8 = pnand %p6231_p3, %p6225_p6 }
  0x61   : > { %6235 = shalt.err (!%p6232_p8)
}
  0x62   : > { %s9381_s4 = smov 256   ;;  %341 = sbr.rel (%p6483_p2) target bundleno = 1144 (0x478), region = 44 }
  0x63   : > { %6070 = dma.hbm_to_vmem [thread:$0]  (!%p6425_p7), %s6506_s23, 512, %s6451_s15, %s6438_s17, %s9381_s4, %s9379_s12, %s9378_s27  }
  0x67   : > { %p9382_p5 = scmp.eq.s32.totalorder %s6454_s18, 0 }
  0x69   : > { %6287 = dma.done.wait (%p9382_p5), [#allocation5], 16   ;;  %p9383_p0 = pmov %p9382_p5 }
  0x6a   : > { %s6551_s7 = sand.u32 1, %s6308_s22  }
  0x6b   : > { %6289 = vsyncadd (%p9383_p0), [#allocation5], 4294967280  ;;  %9384 = sst [smem:[#allocation25_spill]] %s6551_s7  ;;  %s5346_s8 = sshll.u32 %s6551_s7, 6 }
  0x6c   : > { %s348_s28 = scalar_lea.sflag [#allocation3], %s6551_s7  ;;  %s6555_s0 = scalar_lea.vmem [#allocation6], %s5346_s8 }
  0x6d   : > { %6291 = dma.done.wait (%p6464_p11), %s348_s28, 1024  }
  0x6e   : > { %6293 = vsyncadd (%p6464_p11), %s348_s28, 4294966272  ;;  %s356_s23 = sand.u32 1, %s6454_s18   ;;  %s5347_s17 = sshll.u32 %s6551_s7, 5 }
  0x6f   : > { %s357_s15 = scalar_lea.sflag [#allocation8], %s356_s23  ;;  %s6563_s19 = scalar_lea.vmem [#allocation7], %s5347_s17 }
  0x70   : > { %6295 = dma.done.wait (%p6464_p11), %s357_s15, 1024  }
  0x71   : > { %6297 = vsyncadd (%p6464_p11), %s357_s15, 4294966272  ;;  %s369_s9 = scalar_lea.vmem [#allocation9], %s5347_s17 }
  0x72   : > { %374 = sfence }
  0x73   : > { %v419_v0 = vld [vmem:[%s6555_s0] sm:$0xff]  ;;  %s6333_s18 = smov 1   ;;  %v420_v3 = vld [vmem:[%s6555_s0 + $0x8] sm:$0xff]  ;;  %v421_v4 = vld [vmem:[%s6555_s0 + $0x10] sm:$0xff]  ;;  %vm525_vm0 = vcmask 1040384   ;;  %s6334_s11 = smov 97  }
  0x74   : > { %v431_v1 = vld [vmem:[%s369_s9] sm:$0x1]  ;;  %463 = vrot.lane.b32.xlu0 %v419_v0, %s6333_s18  ;;  %v432_v5 = vld [vmem:[%s369_s9 + $0x8] sm:$0x1]  ;;  %v422_v6 = vld [vmem:[%s6555_s0 + $0x18] sm:$0xff]  ;;  %v526_v15 = vrot.slane %v419_v0, 7 }
  0x75   : > { %v447_v2 = vmul.f32 0.0, %v431_v1  ;;  %v448_v7 = vmul.f32 0.0, %v432_v5  ;;  %v423_v8 = vld [vmem:[%s6555_s0 + $0x20] sm:$0xff]  ;;  %v433_v9 = vld [vmem:[%s369_s9 + $0x10] sm:$0x1]  ;;  %v424_v10 = vld [vmem:[%s6555_s0 + $0x28] sm:$0xff] }
  0x76   : > { %v449_v11 = vmul.f32 0.0, %v433_v9  ;;  %v427_v12 = vld [vmem:[%s6563_s19 + $0x7] sm:$0x1]  ;;  %v425_v13 = vld [vmem:[%s6555_s0 + $0x30] sm:$0xff]  ;;  %v434_v14 = vld [vmem:[%s369_s9 + $0x18] sm:$0x1] }
  0x77   : > { %467 = vrot.lane.b32.xlu1 %v447_v2, %s6333_s18  ;;  %v426_v16 = vld [vmem:[%s6555_s0 + $0x38] sm:$0xff]  ;;  %v439_v17 = vmul.f32 0.0, %v427_v12  ;;  %v450_v18 = vmul.f32 0.0, %v434_v14  ;;  %v527_v19 = vrot.slane %v420_v3, 7  ;;  %v428_v20 = vld [vmem:[%s6563_s19 + $0xf] sm:$0x1] }
  0x78   : > { %465 = vrot.lane.b32.xlu0 %v420_v3, %s6333_s18  ;;  %v529_v22 = vrot.slane %v421_v4, 7  ;;  %v440_v24 = vmul.f32 0.0, %v428_v20  ;;  %v530_v25 = vrot.slane %v422_v6, 7  ;;  %v429_v26 = vld [vmem:[%s6563_s19 + $0x17] sm:$0x1]  ;;  %v532_v28 = vrot.slane %v423_v8, 7 }
  0x79   : > { %v542_v21 = vsel %vm525_vm0, %v439_v17, %v526_v15  ;;  %v528_v23 = vsel %vm525_vm0, %v526_v15, %v527_v19  ;;  %v441_v30 = vmul.f32 0.0, %v429_v26  ;;  %v533_v31 = vrot.slane %v424_v10, 7  ;;  %v430_v32 = vld [vmem:[%s6563_s19 + $0x1f] sm:$0x1]  ;;  %s5381_s10 = sld [smem:[#allocation2 + $0x4]]  ;;  %s6335_s30 = smov 127  }
  0x7a   : > { %v543_v27 = vsel %vm525_vm0, %v440_v24, %v529_v22  ;;  %v531_v29 = vsel %vm525_vm0, %v529_v22, %v530_v25  ;;  %v535_v34 = vrot.slane %v425_v13, 7  ;;  %v442_v36 = vmul.f32 0.0, %v430_v32  ;;  %s6601_s27 = sld [smem:[#allocation2 + $0x28]]  ;;  %s9268_s19 = smov 126  }
  0x7b   : > { %469 = vrot.lane.b32.xlu1 %v421_v4, %s6333_s18  ;;  %v544_v33 = vsel %vm525_vm0, %v441_v30, %v532_v28  ;;  %v534_v35 = vsel %vm525_vm0, %v532_v28, %v533_v31  ;;  %v536_v37 = vrot.slane %v426_v16, 7  ;;  %vm499_vm1 = vcmask 7168   ;;  %s6603_s12 = sld [smem:[#allocation2 + $0xd]] }
  0x7c   : > { %471 = vrot.lane.b32.xlu0 %v422_v6, %s6333_s18  ;;  %v545_v38 = vsel %vm525_vm0, %v442_v36, %v535_v34  ;;  %vm512_vm2 = vcmask 269312   ;;  %s5357_s13 = sld [smem:[#allocation2 + $0x1]]  ;;  %vm1551_vm3 = vcmask 1046528   ;;  %vm1575_vm4 = vcmask 261120  }
  0x7d   : > { %v537_v39 = vsel %vm525_vm0, %v535_v34, %v536_v37  ;;  %s6659_s20 = sld [smem:[#allocation2 + $0x25]]  ;;  %vm2816_vm5 = vcmask 130048  }
  0x7e   : > { %s6665_s29 = sld [smem:[#allocation2 + $0xa]] }
  0x7f   : > { %473 = vrot.lane.b32.xlu1 %v448_v7, %s6333_s18  ;;  %v939_v41 = vstv %s5381_s10  ;;  %s6681_s25 = sld [smem:[#allocation2 + $0x2e]] }
  0x80   : > { %475 = vrot.lane.b32.xlu0 %v423_v8, %s6333_s18  ;;  %v953_v49 = vstv %s6601_s27  ;;  %s6690_s26 = sld [smem:[#allocation2 + $0x13]] }
  0x81   : > { %v967_v58 = vstv %s6603_s12  ;;  %s6712_s4 = sld [smem:[#allocation2 + $0x37]] }
  0x82   : > { %v667_v22 = vstv %s5357_s13  ;;  %s6717_s8 = sld [smem:[#allocation2 + $0x1c]] }
  0x83   : > { %477 = vrot.lane.b32.xlu1 %v424_v10, %s6333_s18  ;;  %v681_v30 = vstv %s6659_s20  ;;  %s5364_s28 = sld [smem:[#allocation2 + $0x40]] }
  0x84   : > { %479 = vrot.lane.b32.xlu0 %v449_v11, %s6333_s18  ;;  %s5365_s0 = sld [smem:[#allocation2 + $0x2]] }
  0x85   : > { %s5366_s23 = sld [smem:[#allocation2 + $0x26]] }
  0x86   : > { %s5367_s17 = sld [smem:[#allocation2 + $0xb]] }
  0x87   : > { %481 = vrot.lane.b32.xlu1 %v425_v13, %s6333_s18  ;;  %s5368_s15 = sld [smem:[#allocation2 + $0x2f]] }
  0x88   : > { %483 = vrot.lane.b32.xlu0 %v426_v16, %s6333_s18  ;;  %s5369_s9 = sld [smem:[#allocation2 + $0x14]] }
  0x89   : > { %s5371_s10 = sld [smem:[#allocation2 + $0x1d]] }
  0x8a   : > { %s6780_s27 = sld [smem:[#allocation2 + $0x41]] }
  0x8b   : > { %485 = vrot.lane.b32.xlu1 %v450_v18, %s6333_s18  ;;  %s5409_s18 = sld [smem:[#allocation2 + $0x19]] }
  0x8c   : > { %550 = vrot.lane.b32.xlu0 %v542_v21, %s6334_s11  ;;  %s5397_s12 = sld [smem:[#allocation2 + $0x6]] }
  0x8d   : > { %s5399_s13 = sld [smem:[#allocation2 + $0xf]] }
  0x8e   : > { %s5401_s20 = sld [smem:[#allocation2 + $0x18]] }
  0x8f   : > { %552 = vrot.lane.b32.xlu1 %v528_v23, %s6334_s11  ;;  %s9444_s1 = sld [smem:[#allocation144_spill]] }
  0x90   : > { %554 = vrot.lane.b32.xlu0 %v527_v19, %s6334_s11  ;;  %s7352_s3 = sld [smem:[#allocation2 + $0x3c]] }
  0x91   : > { %s7364_s5 = sld [smem:[#allocation2 + $0x31]] }
  0x92   : > { %s7366_s22 = sld [smem:[#allocation2 + $0x25]] }
  0x93   : > { %556 = vrot.lane.b32.xlu1 %v543_v27, %s6334_s11  ;;  %s7373_s16 = sld [smem:[#allocation2 + $0x13]] }
  0x94   : > { %558 = vrot.lane.b32.xlu0 %v531_v29, %s6334_s11  ;;  %s7376_s21 = sld [smem:[#allocation2 + $0x5]] }
  0x95   : > { %s7383_s6 = sld [smem:[#allocation2 + $0x34]] }
  0x96   : > { %s7385_s14 = sld [smem:[#allocation2 + $0x22]] }
  0x97   : > { %560 = vrot.lane.b32.xlu1 %v530_v25, %s6334_s11  ;;  %s7393_s24 = sld [smem:[#allocation2 + $0x1f]] }
  0x98   : > { %562 = vrot.lane.b32.xlu0 %v544_v33, %s6334_s11  ;;  %s7399_s7 = sld [smem:[#allocation2 + $0x3a]] }
  0x99   : > { %s7405_s2 = sld [smem:[#allocation2 + $0x1c]] }
  0x9b   : > { %564 = vrot.lane.b32.xlu1 %v534_v35, %s6334_s11  ;;  %v695_v35 = vstv %s6665_s29  ;;  %s5403_s29 = sld [smem:[#allocation2 + $0x21]] }
  0x9c   : > { %566 = vrot.lane.b32.xlu0 %v533_v31, %s6334_s11 }
  0x9f   : > { %568 = vrot.lane.b32.xlu1 %v545_v38, %s6334_s11 }
  0xa0   : > { %570 = vrot.lane.b32.xlu0 %v537_v39, %s6334_s11 }
  0xa3   : > { %572 = vrot.lane.b32.xlu1 %v536_v37, %s6334_s11  ;;  %s5370_s11 = sld [smem:[#allocation2 + $0x38]] }
  0xe6   : > { %v464_v40 = vpop.permute.xlu0 %463 }
  0xe7   : > { %v500_v42 = vsel %vm499_vm1, 0.0, %v464_v40 }
  0xe8   : > { %v6607_v43 = vsel %vm512_vm2, %v500_v42, 0.0 }
  0xe9   : > { %9385 = vst [vmem:[#allocation26_spill] sm:$0xff] %v6607_v43  ;;  %v468_v44 = vpop.permute.xlu1 %467  ;;  %v940_v46 = vmul.f32 %v939_v41, %v6607_v43  ;;  %v954_v54 = vmul.f32 %v953_v49, %v6607_v43 }
  0xea   : > { %v502_v45 = vsel %vm499_vm1, 0.0, %v468_v44  ;;  %v466_v48 = vpop.permute.xlu0 %465 }
  0xeb   : > { %v6612_v47 = vsel %vm512_vm2, %v502_v45, 0.0  ;;  %v501_v50 = vsel %vm499_vm1, 0.0, %v466_v48  ;;  %944 = vrot.lane.b32.xlu0 %v940_v46, %s6335_s30 }
  0xec   : > { %9386 = vst [vmem:[#allocation27_spill] sm:$0xff] %v6612_v47  ;;  %v6618_v51 = vsel %vm512_vm2, %v501_v50, 0.0 }
  0xed   : > { %v470_v52 = vpop.permute.xlu1 %469  ;;  %v941_v55 = vmul.f32 %v939_v41, %v6618_v51  ;;  %v955_v63 = vmul.f32 %v953_v49, %v6618_v51 }
  0xee   : > { %v503_v53 = vsel %vm499_vm1, 0.0, %v470_v52  ;;  %v472_v57 = vpop.permute.xlu0 %471  ;;  %v709_v52 = vstv %s6681_s25  ;;  %s6794_s25 = sld [smem:[#allocation2 + $0x31]] }
  0xef   : > { %v6624_v56 = vsel %vm512_vm2, %v503_v53, 0.0  ;;  %v504_v59 = vsel %vm499_vm1, 0.0, %v472_v57  ;;  %958 = vrot.lane.b32.xlu0 %v954_v54, %s6335_s30  ;;  %946 = vrot.lane.b32.xlu1 %v941_v55, %s6335_s30  ;;  %v723_v55 = vstv %s6690_s26  ;;  %s6801_s26 = sld [smem:[#allocation2 + $0x16]] }
  0xf0   : > { %9387 = vst [vmem:[#allocation28_spill] sm:$0xff] %v6624_v56  ;;  %v968_v62 = vmul.f32 %v967_v58, %v6624_v56  ;;  %v6634_v0 = vsel %vm512_vm2, %v504_v59, 0.0 }
  0xf1   : > { %v474_v60 = vpop.permute.xlu1 %473  ;;  %9388 = vst [vmem:[#allocation29_spill] sm:$0xff] %v6634_v0  ;;  %v969_v7 = vmul.f32 %v967_v58, %v6634_v0 }
  0xf2   : > { %v505_v61 = vsel %vm499_vm1, 0.0, %v474_v60  ;;  %v476_v2 = vpop.permute.xlu0 %475 }
  0xf3   : > { %v6637_v1 = vsel %vm512_vm2, %v505_v61, 0.0  ;;  %v506_v3 = vsel %vm499_vm1, 0.0, %v476_v2  ;;  %972 = vrot.lane.b32.xlu0 %v968_v62, %s6335_s30  ;;  %960 = vrot.lane.b32.xlu1 %v955_v63, %s6335_s30 }
  0xf4   : > { %9389 = vst [vmem:[#allocation30_spill] sm:$0xff] %v6637_v1  ;;  %v6643_v4 = vsel %vm512_vm2, %v506_v3, 0.0 }
  0xf5   : > { %v478_v5 = vpop.permute.xlu1 %477 }
  0xf6   : > { %v507_v6 = vsel %vm499_vm1, 0.0, %v478_v5  ;;  %v480_v9 = vpop.permute.xlu0 %479 }
  0xf7   : > { %v6648_v8 = vsel %vm512_vm2, %v507_v6, 0.0  ;;  %v508_v10 = vsel %vm499_vm1, 0.0, %v480_v9  ;;  %974 = vrot.lane.b32.xlu1 %v969_v7, %s6335_s30  ;;  %v737_v9 = vstv %s6712_s4  ;;  %s6822_s4 = sld [smem:[#allocation2 + $0x3a]] }
  0xf8   : > { %v6653_v11 = vsel %vm512_vm2, %v508_v10, 0.0 }
  0xf9   : > { %9390 = vst [vmem:[#allocation31_spill] sm:$0xff] %v6653_v11  ;;  %v482_v12 = vpop.permute.xlu1 %481 }
  0xfa   : > { %v509_v13 = vsel %vm499_vm1, 0.0, %v482_v12  ;;  %v484_v15 = vpop.permute.xlu0 %483 }
  0xfb   : > { %v6657_v14 = vsel %vm512_vm2, %v509_v13, 0.0  ;;  %v510_v16 = vsel %vm499_vm1, 0.0, %v484_v15  ;;  %v751_v13 = vstv %s6717_s8  ;;  %s6839_s8 = sld [smem:[#allocation2 + $0x1f]] }
  0xfc   : > { %v6663_v17 = vsel %vm512_vm2, %v510_v16, 0.0 }
  0xfd   : > { %9391 = vst [vmem:[#allocation32_spill] sm:$0xff] %v6663_v17  ;;  %v486_v18 = vpop.permute.xlu1 %485 }
  0xfe   : > { %v511_v19 = vsel %vm499_vm1, 0.0, %v486_v18  ;;  %v551_v21 = vpop.permute.xlu0 %550 }
  0xff   : > { %v6669_v20 = vsel %vm512_vm2, %v511_v19, 0.0  ;;  %v586_v23 = vsel %vm499_vm1, 0.0, %v551_v21 }
 0x100   : > { %9392 = vst [vmem:[#allocation33_spill] sm:$0xff] %v6669_v20  ;;  %v6673_v24 = vsel %vm512_vm2, %v586_v23, 0.0 }
 0x101   : > { %v553_v25 = vpop.permute.xlu1 %552  ;;  %v668_v27 = vmul.f32 %v667_v22, %v6673_v24  ;;  %v682_v37 = vmul.f32 %v681_v30, %v6673_v24 }
 0x102   : > { %v587_v26 = vsel %vm499_vm1, 0.0, %v553_v25  ;;  %v555_v29 = vpop.permute.xlu0 %554 }
 0x103   : > { %v6678_v28 = vsel %vm512_vm2, %v587_v26, 0.0  ;;  %v588_v31 = vsel %vm499_vm1, 0.0, %v555_v29  ;;  %672 = vrot.lane.b32.xlu0 %v668_v27, %s6335_s30  ;;  %v765_v27 = vstv %s5364_s28  ;;  %s5388_s28 = sld [smem:[#allocation2 + $0x43]] }
 0x104   : > { %v669_v32 = vmul.f32 %v667_v22, %v6678_v28  ;;  %v6687_v33 = vsel %vm512_vm2, %v588_v31, 0.0  ;;  %v683_v41 = vmul.f32 %v681_v30, %v6678_v28  ;;  %v779_v30 = vstv %s5365_s0  ;;  %s6865_s0 = sld [smem:[#allocation2 + $0x5]] }
 0x105   : > { %v557_v34 = vpop.permute.xlu1 %556 }
 0x106   : > { %v589_v36 = vsel %vm499_vm1, 0.0, %v557_v34  ;;  %674 = vrot.lane.b32.xlu1 %v669_v32, %s6335_s30  ;;  %v559_v39 = vpop.permute.xlu0 %558  ;;  %v780_v32 = vmul.f32 %v779_v30, %v6673_v24  ;;  %v793_v34 = vstv %s5366_s23  ;;  %s5405_s23 = sld [smem:[#allocation2 + $0x7]] }
 0x107   : > { %v6696_v38 = vsel %vm512_vm2, %v589_v36, 0.0  ;;  %v590_v40 = vsel %vm499_vm1, 0.0, %v559_v39  ;;  %686 = vrot.lane.b32.xlu0 %v682_v37, %s6335_s30  ;;  %v794_v36 = vmul.f32 %v793_v34, %v6673_v24  ;;  %v807_v37 = vstv %s5367_s17  ;;  %s5475_s17 = sld [smem:[#allocation2 + $0x2a]] }
 0x108   : > { %v696_v42 = vmul.f32 %v695_v35, %v6696_v38  ;;  %v6703_v44 = vsel %vm512_vm2, %v590_v40, 0.0  ;;  %v710_v58 = vmul.f32 %v709_v52, %v6696_v38  ;;  %v795_v39 = vmul.f32 %v793_v34, %v6678_v28 }
 0x109   : > { %v561_v45 = vpop.permute.xlu1 %560  ;;  %v697_v48 = vmul.f32 %v695_v35, %v6703_v44  ;;  %v711_v62 = vmul.f32 %v709_v52, %v6703_v44  ;;  %v781_v35 = vmul.f32 %v779_v30, %v6678_v28  ;;  %v808_v40 = vmul.f32 %v807_v37, %v6696_v38 }
 0x10a   : > { %v591_v46 = vsel %vm499_vm1, 0.0, %v561_v45  ;;  %688 = vrot.lane.b32.xlu1 %v683_v41, %s6335_s30  ;;  %v563_v50 = vpop.permute.xlu0 %562  ;;  %v821_v41 = vstv %s5368_s15  ;;  %s5477_s15 = sld [smem:[#allocation2 + $0x33]] }
 0x10b   : > { %v6709_v49 = vsel %vm512_vm2, %v591_v46, 0.0  ;;  %v592_v53 = vsel %vm499_vm1, 0.0, %v563_v50  ;;  %700 = vrot.lane.b32.xlu0 %v696_v42, %s6335_s30  ;;  %v809_v42 = vmul.f32 %v807_v37, %v6703_v44  ;;  %v822_v45 = vmul.f32 %v821_v41, %v6696_v38 }
 0x10c   : > { %v6723_v59 = vsel %vm512_vm2, %v592_v53, 0.0  ;;  %v835_v46 = vstv %s5369_s9  ;;  %v6782_v50 = vstv %s5409_s18  ;;  %s5479_s9 = sld [smem:[#allocation2 + $0x3c]] }
 0x10d   : > { %v565_v54 = vpop.permute.xlu1 %564  ;;  %9393 = vst [vmem:[#allocation34_spill] sm:$0xff] %v6723_v59  ;;  %v724_v63 = vmul.f32 %v723_v55, %v6723_v59  ;;  %v738_v18 = vmul.f32 %v737_v9, %v6723_v59  ;;  %v836_v52 = vmul.f32 %v835_v46, %v6723_v59  ;;  %v6788_v53 = vmul.f32 %v6782_v50, %v6653_v11  ;;  %s5407_s18 = sld [smem:[#allocation2 + $0x10]] }
 0x10e   : > { %v593_v57 = vsel %vm499_vm1, 0.0, %v565_v54  ;;  %702 = vrot.lane.b32.xlu1 %v697_v48, %s6335_s30  ;;  %v567_v60 = vpop.permute.xlu0 %566  ;;  %v823_v48 = vmul.f32 %v821_v41, %v6703_v44  ;;  %v849_v54 = vstv %s5370_s11  ;;  %s5481_s11 = sld [smem:[#allocation2 + $0x45]] }
 0x10f   : > { %v594_v61 = vsel %vm499_vm1, 0.0, %v567_v60  ;;  %714 = vrot.lane.b32.xlu0 %v710_v58, %s6335_s30  ;;  %v6730_v2 = vsel %vm512_vm2, %v593_v57, 0.0  ;;  %v850_v57 = vmul.f32 %v849_v54, %v6723_v59  ;;  %v863_v58 = vstv %s5371_s10  ;;  %s5406_s10 = sld [smem:[#allocation2 + $0x2b]] }
 0x110   : > { %v6733_v3 = vsel %vm512_vm2, %v594_v61, 0.0  ;;  %v725_v6 = vmul.f32 %v723_v55, %v6730_v2  ;;  %v739_v22 = vmul.f32 %v737_v9, %v6730_v2  ;;  %v837_v55 = vmul.f32 %v835_v46, %v6730_v2 }
 0x111   : > { %9394 = vst [vmem:[#allocation35_spill] sm:$0xff] %v6733_v3  ;;  %v569_v5 = vpop.permute.xlu1 %568  ;;  %v851_v60 = vmul.f32 %v849_v54, %v6730_v2  ;;  %v6811_v9 = vstv %s5403_s29  ;;  %v1009_v54 = vstv %s6822_s4  ;;  %s5412_s29 = sld [smem:[#allocation2 + $0x46]] }
 0x112   : > { %716 = vrot.lane.b32.xlu1 %v711_v62, %s6335_s30  ;;  %v571_v7 = vpop.permute.xlu0 %570  ;;  %v595_v10 = vsel %vm499_vm1, 0.0, %v569_v5  ;;  %v877_v62 = vstv %s6780_s27  ;;  %v6805_v5 = vstv %s5399_s13  ;;  %v3536_v46 = vmul.f32 %v6811_v9, %v6669_v20  ;;  %s5408_s27 = sld [smem:[#allocation2 + $0x34]] }
 0x113   : > { %728 = vrot.lane.b32.xlu0 %v724_v63, %s6335_s30  ;;  %v596_v15 = vsel %vm499_vm1, 0.0, %v571_v7  ;;  %v6746_v19 = vsel %vm512_vm2, %v595_v10, 0.0  ;;  %v6803_v63 = vstv %s5397_s12  ;;  %v3504_v41 = vmul.f32 %v6805_v5, %v6637_v1  ;;  %s5411_s12 = sld [smem:[#allocation2 + $0x22]] }
 0x114   : > { %9395 = vst [vmem:[#allocation36_spill] sm:$0xff] %v6746_v19  ;;  %v752_v23 = vmul.f32 %v751_v13, %v6746_v19  ;;  %v6755_v25 = vsel %vm512_vm2, %v596_v15, 0.0  ;;  %v766_v29 = vmul.f32 %v765_v27, %v6746_v19  ;;  %v864_v61 = vmul.f32 %v863_v58, %v6746_v19  ;;  %s5410_s13 = sld [smem:[#allocation2 + $0x3d]] }
 0x115   : > { %v573_v12 = vpop.permute.xlu1 %572  ;;  %v753_v26 = vmul.f32 %v751_v13, %v6755_v25  ;;  %v767_v31 = vmul.f32 %v765_v27, %v6755_v25  ;;  %v865_v7 = vmul.f32 %v863_v58, %v6755_v25  ;;  %v878_v10 = vmul.f32 %v877_v62, %v6746_v19  ;;  %s5414_s4 = sld [smem:[#allocation2 + $0x2c]] }
 0x116   : > { %v597_v16 = vsel %vm499_vm1, 0.0, %v573_v12  ;;  %730 = vrot.lane.b32.xlu1 %v725_v6, %s6335_s30  ;;  %v6807_v6 = vstv %s5401_s20  ;;  %v3486_v12 = vmul.f32 %v6803_v63, %v6607_v43  ;;  %v3502_v13 = vmul.f32 %v6805_v5, %v6624_v56  ;;  %s5413_s20 = sld [smem:[#allocation2 + $0x8]] }
 0x117   : > { %v6749_v21 = vsel %vm512_vm2, %v597_v16, 0.0  ;;  %742 = vrot.lane.b32.xlu0 %v738_v18, %s6335_s30  ;;  %v3518_v15 = vmul.f32 %v6807_v6, %v6643_v4  ;;  %v981_v16 = vstv %s6794_s25  ;;  %v3487_v18 = vmul.f32 %v6803_v63, %v6618_v51  ;;  %s5415_s25 = sld [smem:[#allocation2 + $0x11]] }
 0x118   : > { %v3534_v27 = vmul.f32 %v6811_v9, %v6657_v14  ;;  %v983_v37 = vmul.f32 %v981_v16, %v6634_v0  ;;  %v1010_v58 = vmul.f32 %v1009_v54, %v6643_v4 }
 0x11a   : > { %744 = vrot.lane.b32.xlu1 %v739_v22, %s6335_s30  ;;  %v3503_v22 = vmul.f32 %v6805_v5, %v6634_v0 }
 0x11b   : > { %756 = vrot.lane.b32.xlu0 %v752_v23, %s6335_s30  ;;  %v879_v23 = vmul.f32 %v877_v62, %v6755_v25  ;;  %v1011_v62 = vmul.f32 %v1009_v54, %v6648_v8  ;;  %v6920_v54 = vstv %s5406_s10  ;;  %s7288_s10 = sld [smem:[#allocation2 + $0x30]] }
 0x11c   : > { %v3506_v30 = vadd.f32 %v3503_v22, %v3487_v18  ;;  %v6882_v22 = vstv %s5405_s23  ;;  %s5416_s23 = sld [smem:[#allocation2 + $0x35]] }
 0x11e   : > { %758 = vrot.lane.b32.xlu1 %v753_v26, %s6335_s30  ;;  %v3505_v26 = vadd.f32 %v3502_v13, %v3486_v12 }
 0x11f   : > { %770 = vrot.lane.b32.xlu0 %v766_v29, %s6335_s30  ;;  %v3519_v29 = vmul.f32 %v6807_v6, %v6648_v8 }
 0x120   : > { %v3521_v34 = vadd.f32 %v3518_v15, %v3505_v26  ;;  %v1051_v15 = vstv %s6865_s0  ;;  %v1229_v26 = vmul.f32 %v6882_v22, %v6678_v28  ;;  %s7039_s0 = sld [smem:[#allocation2 + $0x17]] }
 0x121   : > { %v1052_v18 = vmul.f32 %v1051_v15, %v6607_v43 }
 0x122   : > { %772 = vrot.lane.b32.xlu1 %v767_v31, %s6335_s30  ;;  %v3535_v31 = vmul.f32 %v6811_v9, %v6663_v17 }
 0x123   : > { %784 = vrot.lane.b32.xlu0 %v780_v32, %s9268_s19  ;;  %v982_v32 = vmul.f32 %v981_v16, %v6624_v56 }
 0x126   : > { %786 = vrot.lane.b32.xlu1 %v781_v35, %s9268_s19  ;;  %v995_v35 = vstv %s6801_s26  ;;  %s6996_s26 = sld [smem:[#allocation2 + $0xe]] }
 0x127   : > { %798 = vrot.lane.b32.xlu0 %v794_v36, %s9268_s19  ;;  %v3522_v36 = vadd.f32 %v3519_v29, %v3506_v30  ;;  %v1230_v29 = vmul.f32 %v6882_v22, %v6687_v33  ;;  %v6895_v30 = vstv %s5477_s15  ;;  %s7079_s15 = sld [smem:[#allocation2 + $0x32]] }
 0x128   : > { %9400 = vst [vmem:[#allocation41_spill] sm:$0xff] %v6895_v30 }
 0x12a   : > { %800 = vrot.lane.b32.xlu1 %v795_v39, %s9268_s19  ;;  %v6843_v39 = vadd.f32 %v3534_v27, %v3521_v34  ;;  %v6890_v27 = vstv %s5475_s17  ;;  %s5419_s17 = sld [smem:[#allocation2 + $0x23]] }
 0x12b   : > { %812 = vrot.lane.b32.xlu0 %v808_v40, %s9268_s19  ;;  %v3488_v40 = vmul.f32 %v6803_v63, %v6612_v47  ;;  %9399 = vst [vmem:[#allocation40_spill] sm:$0xff] %v6890_v27  ;;  %v3496_v34 = vmul.f32 %v6890_v27, %v6612_v47 }
 0x12c   : > { %9396 = vst [vmem:[#allocation37_spill] sm:$0xff] %v6843_v39 }
 0x12e   : > { %814 = vrot.lane.b32.xlu1 %v809_v42, %s9268_s19  ;;  %v6849_v42 = vadd.f32 %v3535_v31, %v3522_v36  ;;  %v6897_v31 = vstv %s5479_s9  ;;  %s7085_s9 = sld [smem:[#allocation2 + $0x20]] }
 0x12f   : > { %826 = vrot.lane.b32.xlu0 %v822_v45, %s9268_s19  ;;  %v3520_v45 = vmul.f32 %v6807_v6, %v6653_v11  ;;  %9401 = vst [vmem:[#allocation42_spill] sm:$0xff] %v6897_v31  ;;  %v3528_v36 = vmul.f32 %v6897_v31, %v6653_v11 }
 0x130   : > { %9397 = vst [vmem:[#allocation38_spill] sm:$0xff] %v6849_v42 }
 0x132   : > { %828 = vrot.lane.b32.xlu1 %v823_v48, %s9268_s19  ;;  %v996_v48 = vmul.f32 %v995_v35, %v6643_v4 }
 0x133   : > { %840 = vrot.lane.b32.xlu0 %v836_v52, %s9268_s19  ;;  %v3507_v52 = vadd.f32 %v3504_v41, %v3488_v40  ;;  %v6910_v40 = vstv %s5481_s11  ;;  %s7117_s11 = sld [smem:[#allocation2 + $0x3b]] }
 0x134   : > { %9402 = vst [vmem:[#allocation43_spill] sm:$0xff] %v6910_v40 }
 0x136   : > { %842 = vrot.lane.b32.xlu1 %v837_v55, %s9268_s19  ;;  %v997_v55 = vmul.f32 %v995_v35, %v6648_v8  ;;  %v3512_v35 = vmul.f32 %v6895_v30, %v6637_v1 }
 0x137   : > { %854 = vrot.lane.b32.xlu0 %v850_v57, %s9268_s19  ;;  %v3523_v57 = vadd.f32 %v3520_v45, %v3507_v52  ;;  %v3544_v45 = vmul.f32 %v6910_v40, %v6669_v20 }
 0x138   : > { %v3515_v41 = vadd.f32 %v3512_v35, %v3496_v34 }
 0x13a   : > { %856 = vrot.lane.b32.xlu1 %v851_v60, %s9268_s19  ;;  %v6862_v60 = vadd.f32 %v3536_v46, %v3523_v57  ;;  %v1248_v57 = vmul.f32 %v6920_v54, %v6673_v24 }
 0x13b   : > { %868 = vrot.lane.b32.xlu0 %v864_v61, %s9268_s19  ;;  %v1023_v61 = vstv %s6839_s8  ;;  %s5417_s8 = sld [smem:[#allocation2 + $0x1a]] }
 0x13c   : > { %9398 = vst [vmem:[#allocation39_spill] sm:$0xff] %v6862_v60  ;;  %v1025_v12 = vmul.f32 %v1023_v61, %v6663_v17  ;;  %v1407_v60 = vstv %s5414_s4  ;;  %s7151_s4 = sld [smem:[#allocation2 + $0x47]] }
 0x13e   : > { %870 = vrot.lane.b32.xlu1 %v865_v7, %s9268_s19  ;;  %v1024_v7 = vmul.f32 %v1023_v61, %v6657_v14  ;;  %v1249_v61 = vmul.f32 %v6920_v54, %v6678_v28 }
 0x13f   : > { %882 = vrot.lane.b32.xlu0 %v878_v10, %s9268_s19  ;;  %v1037_v10 = vstv %s5388_s28  ;;  %s7033_s28 = sld [smem:[#allocation2 + $0x29]] }
 0x140   : > { %v1038_v13 = vmul.f32 %v1037_v10, %v6657_v14  ;;  %v1039_v16 = vmul.f32 %v1037_v10, %v6663_v17  ;;  %v1309_v10 = vmul.f32 %v6782_v50, %v6730_v2 }
 0x142   : > { %884 = vrot.lane.b32.xlu1 %v879_v23, %s9268_s19  ;;  %v1228_v23 = vmul.f32 %v6882_v22, %v6673_v24 }
 0x143   : > { %986 = vrot.lane.b32.xlu0 %v982_v32, %s6335_s30  ;;  %v6899_v32 = vstv %s5407_s18  ;;  %s5418_s18 = sld [smem:[#allocation2 + $0x3e]] }
 0x144   : > { %v1269_v46 = vmul.f32 %v6899_v32, %v6703_v44  ;;  %v1270_v52 = vmul.f32 %v6899_v32, %v6709_v49 }
 0x146   : > { %988 = vrot.lane.b32.xlu1 %v983_v37, %s6335_s30  ;;  %v1268_v37 = vmul.f32 %v6899_v32, %v6696_v38 }
 0x147   : > { %1000 = vrot.lane.b32.xlu0 %v996_v48, %s6335_s30  ;;  %v3531_v48 = vadd.f32 %v3528_v36, %v3515_v41 }
 0x14a   : > { %1002 = vrot.lane.b32.xlu1 %v997_v55, %s6335_s30  ;;  %v6922_v55 = vadd.f32 %v3544_v45, %v3531_v48 }
 0x14b   : > { %1014 = vrot.lane.b32.xlu0 %v1010_v58, %s6335_s30 }
 0x14c   : > { %9403 = vst [vmem:[#allocation44_spill] sm:$0xff] %v6922_v55 }
 0x14e   : > { %1016 = vrot.lane.b32.xlu1 %v1011_v62, %s6335_s30 }
 0x14f   : > { %1028 = vrot.lane.b32.xlu0 %v1024_v7, %s6335_s30  ;;  %v1308_v7 = vmul.f32 %v6782_v50, %v6723_v59 }
 0x152   : > { %1030 = vrot.lane.b32.xlu1 %v1025_v12, %s6335_s30 }
 0x153   : > { %1042 = vrot.lane.b32.xlu0 %v1038_v13, %s6335_s30  ;;  %v1250_v13 = vmul.f32 %v6920_v54, %v6687_v33 }
 0x156   : > { %1044 = vrot.lane.b32.xlu1 %v1039_v16, %s6335_s30  ;;  %v1287_v16 = vstv %s5408_s27  ;;  %s5459_s27 = sld [smem:[#allocation2 + $0x28]] }
 0x157   : > { %1056 = vrot.lane.b32.xlu0 %v1052_v18, %s9268_s19  ;;  %v1289_v35 = vmul.f32 %v1287_v16, %v6703_v44  ;;  %v1290_v48 = vmul.f32 %v1287_v16, %v6709_v49 }
 0x15a   : > { %1234 = vrot.lane.b32.xlu1 %v1228_v23, %s6335_s30  ;;  %v1310_v23 = vmul.f32 %v6782_v50, %v6733_v3 }
 0x15b   : > { %1236 = vrot.lane.b32.xlu0 %v1229_v26, %s6335_s30  ;;  %v1288_v26 = vmul.f32 %v1287_v16, %v6696_v38 }
 0x15d   : > { %v6927_v58 = vpop.permute.xlu0 %944 }
 0x15e   : > { %1238 = vrot.lane.b32.xlu1 %v1230_v29, %s6335_s30  ;;  %v1347_v29 = vstv %s5411_s12  ;;  %s7296_s12 = sld [smem:[#allocation2 + $0x39]] }
 0x15f   : > { %1274 = vrot.lane.b32.xlu0 %v1268_v37, %s6335_s30  ;;  %v1348_v37 = vmul.f32 %v1347_v29, %v6746_v19  ;;  %v1349_v45 = vmul.f32 %v1347_v29, %v6755_v25 }
 0x161   : > { %v6932_v62 = vpop.permute.xlu1 %946  ;;  %v6940_v12 = vpop.permute.xlu0 %958 }
 0x162   : > { %1276 = vrot.lane.b32.xlu1 %v1269_v46, %s6335_s30  ;;  %9404 = vst [vmem:[#allocation45_spill] sm:$0xff] %v6932_v62  ;;  %9405 = vst [vmem:[#allocation46_spill] sm:$0xff] %v6940_v12 }
 0x163   : > { %1278 = vrot.lane.b32.xlu0 %v1270_v52, %s6335_s30  ;;  %v1327_v52 = vstv %s5410_s13  ;;  %s7303_s13 = sld [smem:[#allocation2 + $0x42]] }
 0x164   : > { %v1329_v16 = vmul.f32 %v1327_v52, %v6730_v2 }
 0x165   : > { %v6945_v18 = vpop.permute.xlu1 %960  ;;  %v6952_v34 = vpop.permute.xlu0 %972 }
 0x166   : > { %1254 = vrot.lane.b32.xlu1 %v1248_v57, %s6335_s30  ;;  %9406 = vst [vmem:[#allocation47_spill] sm:$0xff] %v6945_v18 }
 0x167   : > { %1256 = vrot.lane.b32.xlu0 %v1249_v61, %s6335_s30  ;;  %v1350_v61 = vmul.f32 %v1347_v29, %v6749_v21 }
 0x169   : > { %v6956_v36 = vpop.permute.xlu1 %974 }
 0x16a   : > { %1314 = vrot.lane.b32.xlu1 %v1308_v7, %s6335_s30  ;;  %9407 = vst [vmem:[#allocation48_spill] sm:$0xff] %v6956_v36 }
 0x16b   : > { %1316 = vrot.lane.b32.xlu0 %v1309_v10, %s6335_s30  ;;  %v1328_v10 = vmul.f32 %v1327_v52, %v6723_v59 }
 0x16e   : > { %1258 = vrot.lane.b32.xlu1 %v1250_v13, %s6335_s30  ;;  %v1387_v13 = vstv %s5413_s20  ;;  %s7305_s20 = sld [smem:[#allocation2]] }
 0x16f   : > { %1318 = vrot.lane.b32.xlu0 %v1310_v23, %s6335_s30  ;;  %v1388_v29 = vmul.f32 %v1387_v13, %v6673_v24 }
 0x172   : > { %1294 = vrot.lane.b32.xlu1 %v1288_v26, %s6335_s30 }
 0x173   : > { %1296 = vrot.lane.b32.xlu0 %v1289_v35, %s6335_s30 }
 0x175   : > { %v6960_v41 = vpop.permute.xlu0 %672 }
 0x176   : > { %1354 = vrot.lane.b32.xlu1 %v1348_v37, %s6335_s30  ;;  %v1389_v37 = vmul.f32 %v1387_v13, %v6678_v28 }
 0x177   : > { %1356 = vrot.lane.b32.xlu0 %v1349_v45, %s6335_s30 }
 0x178   : > { %v6965_v46 = vpop.permute.xlu1 %674 }
 0x179   : > { %9408 = vst [vmem:[#allocation49_spill] sm:$0xff] %v6965_v46  ;;  %v6968_v57 = vpop.permute.xlu0 %686 }
 0x17a   : > { %9409 = vst [vmem:[#allocation50_spill] sm:$0xff] %v6968_v57  ;;  %1298 = vrot.lane.b32.xlu1 %v1290_v48, %s6335_s30  ;;  %v1330_v48 = vmul.f32 %v1327_v52, %v6733_v3 }
 0x17b   : > { %1358 = vrot.lane.b32.xlu0 %v1350_v61, %s6335_s30 }
 0x17c   : > { %v6973_v7 = vpop.permute.xlu1 %688 }
 0x17d   : > { %9410 = vst [vmem:[#allocation51_spill] sm:$0xff] %v6973_v7  ;;  %v6976_v23 = vpop.permute.xlu0 %700  ;;  %v1135_v7 = vstv %s7085_s9  ;;  %s7278_s9 = sld [smem:[#allocation2 + $0x15]] }
 0x17e   : > { %9411 = vst [vmem:[#allocation52_spill] sm:$0xff] %v6976_v23  ;;  %1334 = vrot.lane.b32.xlu1 %v1328_v10, %s6335_s30  ;;  %v1390_v10 = vmul.f32 %v1387_v13, %v6687_v33  ;;  %v1137_v12 = vmul.f32 %v1135_v7, %v6663_v17 }
 0x17f   : > { %1336 = vrot.lane.b32.xlu0 %v1329_v16, %s6335_s30  ;;  %v1367_v16 = vstv %s5412_s29  ;;  %s5462_s29 = sld [smem:[#allocation2 + $0x16]] }
 0x180   : > { %v6981_v26 = vpop.permute.xlu1 %702  ;;  %v1368_v52 = vmul.f32 %v1367_v16, %v6746_v19  ;;  %v1369_v31 = vmul.f32 %v1367_v16, %v6755_v25  ;;  %v1370_v39 = vmul.f32 %v1367_v16, %v6749_v21 }
 0x181   : > { %9412 = vst [vmem:[#allocation53_spill] sm:$0xff] %v6981_v26  ;;  %v6984_v35 = vpop.permute.xlu0 %714 }
 0x182   : > { %9413 = vst [vmem:[#allocation54_spill] sm:$0xff] %v6984_v35  ;;  %1394 = vrot.lane.b32.xlu1 %v1388_v29, %s9268_s19 }
 0x183   : > { %1396 = vrot.lane.b32.xlu0 %v1389_v37, %s9268_s19  ;;  %v1053_v37 = vmul.f32 %v1051_v15, %v6618_v51  ;;  %v1079_v15 = vstv %s6996_s26  ;;  %s7317_s26 = sld [smem:[#allocation2 + $0x12]]  ;;  %v915_v36 = vstv %s7278_s9 }
 0x184   : > { %v6989_v45 = vpop.permute.xlu1 %716  ;;  %v1080_v42 = vmul.f32 %v1079_v15, %v6624_v56  ;;  %s8495_s9 = sld [smem:[#allocation2 + $0x14]] }
 0x185   : > { %9414 = vst [vmem:[#allocation55_spill] sm:$0xff] %v6989_v45  ;;  %v6992_v61 = vpop.permute.xlu0 %728 }
 0x186   : > { %9415 = vst [vmem:[#allocation56_spill] sm:$0xff] %v6992_v61  ;;  %1338 = vrot.lane.b32.xlu1 %v1330_v48, %s6335_s30  ;;  %v1427_v48 = vstv %s5415_s25  ;;  %s7311_s25 = sld [smem:[#allocation2 + $0x9]] }
 0x187   : > { %1398 = vrot.lane.b32.xlu0 %v1390_v10, %s9268_s19  ;;  %v1428_v27 = vmul.f32 %v1427_v48, %v6696_v38  ;;  %v1429_v30 = vmul.f32 %v1427_v48, %v6703_v44 }
 0x188   : > { %v6999_v29 = vpop.permute.xlu1 %730 }
 0x189   : > { %9416 = vst [vmem:[#allocation57_spill] sm:$0xff] %v6999_v29  ;;  %v7004_v40 = vpop.permute.xlu0 %742 }
 0x18a   : > { %9417 = vst [vmem:[#allocation58_spill] sm:$0xff] %v7004_v40  ;;  %1058 = vrot.lane.b32.xlu1 %v1053_v37, %s9268_s19 }
 0x18b   : > { %1374 = vrot.lane.b32.xlu0 %v1368_v52, %s6335_s30 }
 0x18c   : > { %v7009_v13 = vpop.permute.xlu1 %744 }
 0x18d   : > { %9418 = vst [vmem:[#allocation59_spill] sm:$0xff] %v7009_v13  ;;  %v7013_v10 = vpop.permute.xlu0 %756  ;;  %v1107_v13 = vstv %s7039_s0  ;;  %s5460_s0 = sld [smem:[#allocation2 + $0xd]] }
 0x18e   : > { %1376 = vrot.lane.b32.xlu1 %v1369_v31, %s6335_s30  ;;  %9419 = vst [vmem:[#allocation60_spill] sm:$0xff] %v7013_v10 }
 0x18f   : > { %1434 = vrot.lane.b32.xlu0 %v1428_v27, %s9268_s19  ;;  %v1430_v27 = vmul.f32 %v1427_v48, %v6709_v49  ;;  %v1467_v48 = vstv %s5417_s8  ;;  %s7190_s8 = sld [smem:[#allocation2 + $0x44]] }
 0x190   : > { %v7018_v37 = vpop.permute.xlu1 %758 }
 0x191   : > { %9420 = vst [vmem:[#allocation61_spill] sm:$0xff] %v7018_v37  ;;  %v7022_v52 = vpop.permute.xlu0 %770 }
 0x192   : > { %1436 = vrot.lane.b32.xlu1 %v1429_v30, %s9268_s19  ;;  %9421 = vst [vmem:[#allocation62_spill] sm:$0xff] %v7022_v52  ;;  %v1065_v52 = vstv %s7033_s28  ;;  %s5458_s28 = sld [smem:[#allocation2 + $0x4]] }
 0x193   : > { %1084 = vrot.lane.b32.xlu0 %v1080_v42, %s9268_s19  ;;  %v1081_v42 = vmul.f32 %v1079_v15, %v6634_v0  ;;  %v1468_v15 = vmul.f32 %v1467_v48, %v6723_v59 }
 0x194   : > { %v7026_v31 = vpop.permute.xlu1 %772 }
 0x195   : > { %9422 = vst [vmem:[#allocation63_spill] sm:$0xff] %v7026_v31  ;;  %v7029_v55 = vpop.permute.xlu0 %784 }
 0x196   : > { %9423 = vst [vmem:[#allocation64_spill] sm:$0xff] %v7029_v55  ;;  %1378 = vrot.lane.b32.xlu1 %v1370_v39, %s6335_s30  ;;  %v1408_v39 = vmul.f32 %v1407_v60, %v6673_v24 }
 0x197   : > { %1438 = vrot.lane.b32.xlu0 %v1430_v27, %s9268_s19  ;;  %v1409_v27 = vmul.f32 %v1407_v60, %v6678_v28 }
 0x198   : > { %v7036_v30 = vpop.permute.xlu1 %786 }
 0x199   : > { %9424 = vst [vmem:[#allocation65_spill] sm:$0xff] %v7036_v30  ;;  %v7041_v16 = vpop.permute.xlu0 %798 }
 0x19a   : > { %9425 = vst [vmem:[#allocation66_spill] sm:$0xff] %v7041_v16  ;;  %1086 = vrot.lane.b32.xlu1 %v1081_v42, %s9268_s19  ;;  %v1469_v42 = vmul.f32 %v1467_v48, %v6730_v2 }
 0x19b   : > { %1414 = vrot.lane.b32.xlu0 %v1408_v39, %s9268_s19  ;;  %v1066_v39 = vmul.f32 %v1065_v52, %v6607_v43 }
 0x19c   : > { %v7046_v11 = vpop.permute.xlu1 %800 }
 0x19d   : > { %9426 = vst [vmem:[#allocation67_spill] sm:$0xff] %v7046_v11  ;;  %v7049_v31 = vpop.permute.xlu0 %812  ;;  %v1108_v11 = vmul.f32 %v1107_v13, %v6643_v4 }
 0x19e   : > { %9427 = vst [vmem:[#allocation68_spill] sm:$0xff] %v7049_v31  ;;  %1416 = vrot.lane.b32.xlu1 %v1409_v27, %s9268_s19 }
 0x19f   : > { %1474 = vrot.lane.b32.xlu0 %v1468_v15, %s9268_s19  ;;  %v1410_v15 = vmul.f32 %v1407_v60, %v6687_v33  ;;  %v1109_v60 = vmul.f32 %v1107_v13, %v6648_v8 }
 0x1a0   : > { %v7055_v16 = vpop.permute.xlu1 %814 }
 0x1a1   : > { %9428 = vst [vmem:[#allocation69_spill] sm:$0xff] %v7055_v16  ;;  %v7059_v40 = vpop.permute.xlu0 %826 }
 0x1a2   : > { %9429 = vst [vmem:[#allocation70_spill] sm:$0xff] %v7059_v40  ;;  %1476 = vrot.lane.b32.xlu1 %v1469_v42, %s9268_s19  ;;  %v1470_v42 = vmul.f32 %v1467_v48, %v6733_v3 }
 0x1a3   : > { %1070 = vrot.lane.b32.xlu0 %v1066_v39, %s9268_s19  ;;  %v1067_v39 = vmul.f32 %v1065_v52, %v6618_v51  ;;  %v1507_v52 = vstv %s5419_s17  ;;  %s7270_s17 = sld [smem:[#allocation2 + $0x3]] }
 0x1a4   : > { %v7064_v27 = vpop.permute.xlu1 %828  ;;  %v1508_v13 = vmul.f32 %v1507_v52, %v6746_v19 }
 0x1a5   : > { %9430 = vst [vmem:[#allocation71_spill] sm:$0xff] %v7064_v27  ;;  %v7067_v45 = vpop.permute.xlu0 %840  ;;  %v1447_v27 = vstv %s5416_s23  ;;  %s7264_s23 = sld [smem:[#allocation2 + $0x1]] }
 0x1a6   : > { %9431 = vst [vmem:[#allocation72_spill] sm:$0xff] %v7067_v45  ;;  %1112 = vrot.lane.b32.xlu1 %v1108_v11, %s9268_s19 }
 0x1a7   : > { %1418 = vrot.lane.b32.xlu0 %v1410_v15, %s9268_s19  ;;  %v1448_v15 = vmul.f32 %v1447_v27, %v6696_v38 }
 0x1a8   : > { %v7072_v40 = vpop.permute.xlu1 %842 }
 0x1a9   : > { %9432 = vst [vmem:[#allocation73_spill] sm:$0xff] %v7072_v40  ;;  %v7075_v35 = vpop.permute.xlu0 %854 }
 0x1aa   : > { %9433 = vst [vmem:[#allocation74_spill] sm:$0xff] %v7075_v35  ;;  %1478 = vrot.lane.b32.xlu1 %v1470_v42, %s9268_s19 }
 0x1ab   : > { %1072 = vrot.lane.b32.xlu0 %v1067_v39, %s9268_s19  ;;  %v1449_v39 = vmul.f32 %v1447_v27, %v6703_v44 }
 0x1ac   : > { %v7082_v11 = vpop.permute.xlu1 %856 }
 0x1ad   : > { %9434 = vst [vmem:[#allocation75_spill] sm:$0xff] %v7082_v11  ;;  %v7087_v48 = vpop.permute.xlu0 %868  ;;  %v1093_v11 = vstv %s7079_s15  ;;  %s7272_s15 = sld [smem:[#allocation2 + $0xc]] }
 0x1ae   : > { %9435 = vst [vmem:[#allocation76_spill] sm:$0xff] %v7087_v48  ;;  %1114 = vrot.lane.b32.xlu1 %v1109_v60, %s9268_s19  ;;  %v1509_v60 = vmul.f32 %v1507_v52, %v6755_v25 }
 0x1af   : > { %1454 = vrot.lane.b32.xlu0 %v1448_v15, %s9268_s19  ;;  %v1094_v15 = vmul.f32 %v1093_v11, %v6624_v56 }
 0x1b0   : > { %v7092_v42 = vpop.permute.xlu1 %870 }
 0x1b1   : > { %9436 = vst [vmem:[#allocation77_spill] sm:$0xff] %v7092_v42  ;;  %v7095_v35 = vpop.permute.xlu0 %882 }
 0x1b2   : > { %9437 = vst [vmem:[#allocation78_spill] sm:$0xff] %v7095_v35  ;;  %1456 = vrot.lane.b32.xlu1 %v1449_v39, %s9268_s19  ;;  %v1136_v35 = vmul.f32 %v1135_v7, %v6657_v14 }
 0x1b3   : > { %1514 = vrot.lane.b32.xlu0 %v1508_v13, %s9268_s19  ;;  %v1450_v13 = vmul.f32 %v1447_v27, %v6709_v49  ;;  %v612_v27 = vld [vmem:[%s9444_s1 + $0x10] sm:$0xff] }
 0x1b4   : > { %v7101_v18 = vpop.permute.xlu1 %884 }
 0x1b5   : > { %9438 = vst [vmem:[#allocation79_spill] sm:$0xff] %v7101_v18  ;;  %v7105_v57 = vpop.permute.xlu0 %986  ;;  %v1510_v18 = vmul.f32 %v1507_v52, %v6749_v21 }
 0x1b6   : > { %9439 = vst [vmem:[#allocation80_spill] sm:$0xff] %v7105_v57  ;;  %1516 = vrot.lane.b32.xlu1 %v1509_v60, %s9268_s19 }
 0x1b7   : > { %1098 = vrot.lane.b32.xlu0 %v1094_v15, %s9268_s19  ;;  %v1095_v15 = vmul.f32 %v1093_v11, %v6634_v0  ;;  %v610_v11 = vld [vmem:[%s9444_s1] sm:$0xff] }
 0x1b8   : > { %v7110_v39 = vpop.permute.xlu1 %988  ;;  %v7149_v16 = vand.u32 4294901760, %v610_v11 }
 0x1b9   : > { %9440 = vst [vmem:[#allocation81_spill] sm:$0xff] %v7110_v39  ;;  %v7113_v42 = vpop.permute.xlu0 %1000  ;;  %v1487_v39 = vstv %s5418_s18  ;;  %s7280_s18 = sld [smem:[#allocation2 + $0x1e]] }
 0x1ba   : > { %9441 = vst [vmem:[#allocation82_spill] sm:$0xff] %v7113_v42  ;;  %1140 = vrot.lane.b32.xlu1 %v1136_v35, %s9268_s19  ;;  %v613_v35 = vld [vmem:[%s9444_s1 + $0x18] sm:$0xff]  ;;  %9449 = vst [vmem:[#allocation89_spill] sm:$0xff] %v7149_v16  ;;  %v1488_v7 = vmul.f32 %v1487_v39, %v6723_v59 }
 0x1bb   : > { %1458 = vrot.lane.b32.xlu0 %v1450_v13, %s9268_s19  ;;  %v611_v13 = vld [vmem:[%s9444_s1 + $0x8] sm:$0xff]  ;;  %v7136_v52 = vand.u32 4294901760, %v613_v35  ;;  %s7350_s1 = sld [smem:[#allocation2 + $0x33]] }
 0x1bc   : > { %v7120_v60 = vpop.permute.xlu1 %1002 }
 0x1bd   : > { %9442 = vst [vmem:[#allocation83_spill] sm:$0xff] %v7120_v60  ;;  %v7123_v57 = vpop.permute.xlu0 %1014  ;;  %9445 = vst [vmem:[#allocation85_spill] sm:$0xff] %v7136_v52  ;;  %v7154_v20 = vsub.f32 %v613_v35, %v7136_v52  ;;  %5709 = vmatprep.subr.mxu0 %v7136_v52  ;;  %v1121_v35 = vstv %s7117_s11  ;;  %s7286_s11 = sld [smem:[#allocation2 + $0x27]] }
 0x1be   : > { %9443 = vst [vmem:[#allocation84_spill] sm:$0xff] %v7123_v57  ;;  %1518 = vrot.lane.b32.xlu1 %v1510_v18, %s9268_s19  ;;  %v7138_v57 = vand.u32 4294901760, %v612_v27  ;;  %v7140_v18 = vand.u32 4294901760, %v611_v13  ;;  %5710 = vmatpush3.msra.mxu0 %v7136_v52 }
 0x1bf   : > { %1100 = vrot.lane.b32.xlu0 %v1095_v15, %s9268_s19  ;;  %9450 = vst [vmem:[#allocation90_spill] sm:$0xff] %v7154_v20 }
 0x1c0   : > { %9446 = vst [vmem:[#allocation86_spill] sm:$0xff] %v7138_v57  ;;  %9447 = vst [vmem:[#allocation87_spill] sm:$0xff] %v7140_v18  ;;  %v7146_v40 = vpop.permute.xlu1 %1016  ;;  %v7157_v30 = vsub.f32 %v612_v27, %v7138_v57  ;;  %v7160_v48 = vsub.f32 %v611_v13, %v7140_v18  ;;  %v7173_v27 = vand.u32 4294901760, %v7154_v20  ;;  %5711 = vmatprep.subr.mxu0 %v7138_v57 }
 0x1c1   : > { %9448 = vst [vmem:[#allocation88_spill] sm:$0xff] %v7146_v40  ;;  %v7163_v15 = vpop.permute.xlu0 %1028  ;;  %v7168_v40 = vsub.f32 %v610_v11, %v7149_v16  ;;  %v1489_v11 = vmul.f32 %v1487_v39, %v6730_v2  ;;  %5712 = vmatpush3.msra.mxu0 %v7138_v57  ;;  %v1122_v57 = vmul.f32 %v1121_v35, %v6643_v4  ;;  %v7437_v10 = vstv %s7350_s1  ;;  %s9551_s1 = smov 126  }
 0x1c2   : > { %9451 = vst [vmem:[#allocation91_spill] sm:$0xff] %v7157_v30  ;;  %9452 = vst [vmem:[#allocation92_spill] sm:$0xff] %v7160_v48  ;;  %1142 = vrot.lane.b32.xlu1 %v1137_v12, %s9268_s19  ;;  %v7176_v13 = vand.u32 4294901760, %v7157_v30  ;;  %v7179_v37 = vand.u32 4294901760, %v7160_v48  ;;  %v1725_v45 = vsub.f32 %v7154_v20, %v7173_v27  ;;  %5713 = vmatprep.subr.mxu0 %v7140_v18 }
 0x1c3   : > { %9453 = vst [vmem:[#allocation93_spill] sm:$0xff] %v7163_v15  ;;  %9454 = vst [vmem:[#allocation94_spill] sm:$0xff] %v7168_v40  ;;  %1494 = vrot.lane.b32.xlu0 %v1488_v7, %s9268_s19  ;;  %v7187_v60 = vand.u32 4294901760, %v7168_v40  ;;  %5714 = vmatpush3.msra.mxu0 %v7140_v18  ;;  %v2877_v18 = vstv %s7264_s23  ;;  %s7336_s23 = sld [smem:[#allocation2 + $0x3f]]  ;;  %v7440_v15 = vstv %s7352_s3 }
 0x1c4   : > { %9455 = vst [vmem:[#allocation95_spill] sm:$0xff] %v7173_v27  ;;  %9456 = vst [vmem:[#allocation96_spill] sm:$0xff] %v7176_v13  ;;  %v7183_v12 = vpop.permute.xlu1 %1030  ;;  %v1732_v29 = vsub.f32 %v7157_v30, %v7176_v13  ;;  %v1739_v7 = vsub.f32 %v7160_v48, %v7179_v37  ;;  %v7204_v31 = vand.u32 4294901760, %v1725_v45  ;;  %5715 = vmatprep.subr.mxu0 %v7149_v16  ;;  %s7895_s3 = sld [smem:[#allocation2 + $0x3d]] }
 0x1c5   : > { %9457 = vst [vmem:[#allocation97_spill] sm:$0xff] %v7179_v37  ;;  %9458 = vst [vmem:[#allocation98_spill] sm:$0xff] %v7183_v12  ;;  %v7199_v12 = vpop.permute.xlu0 %1042  ;;  %v1746_v13 = vsub.f32 %v7168_v40, %v7187_v60  ;;  %v1490_v48 = vmul.f32 %v1487_v39, %v6733_v3  ;;  %5716 = vmatpush3.msra.mxu0 %v7149_v16  ;;  %v1149_v40 = vstv %s7190_s8  ;;  %s7326_s8 = sld [smem:[#allocation2 + $0x24]] }
 0x1c6   : > { %9459 = vst [vmem:[#allocation99_spill] sm:$0xff] %v7187_v60  ;;  %9460 = vst [vmem:[#allocation100_spill] sm:$0xff] %v7199_v12  ;;  %1496 = vrot.lane.b32.xlu1 %v1489_v11, %s9268_s19  ;;  %v7206_v27 = vand.u32 4294901760, %v1732_v29  ;;  %v1527_v11 = vstv %s7151_s4  ;;  %5723 = vmatprep.subr.mxu1 %v7204_v31  ;;  %v7218_v45 = vand.u32 4294901760, %v1739_v7  ;;  %s7319_s4 = sld [smem:[#allocation2 + $0x1b]] }
 0x1c7   : > { %9461 = vst [vmem:[#allocation101_spill] sm:$0xff] %v7204_v31  ;;  %1126 = vrot.lane.b32.xlu0 %v1122_v57, %s9268_s19  ;;  %5737 = vmatprep.subr.mxu0 %v7154_v20  ;;  %v1123_v57 = vmul.f32 %v1121_v35, %v6648_v8  ;;  %v7227_v39 = vand.u32 4294901760, %v1746_v13  ;;  %v1528_v7 = vmul.f32 %v1527_v11, %v6746_v19 }
 0x1c8   : > { %9462 = vst [vmem:[#allocation102_spill] sm:$0xff] %v7206_v27  ;;  %v7212_v37 = vpop.permute.xlu1 %1044  ;;  %9464 = vst [vmem:[#allocation104_spill] sm:$0xff] %v7218_v45  ;;  %5724 = vmatpush3.msra.mxu1 %v7204_v31  ;;  %v1529_v35 = vmul.f32 %v1527_v11, %v6755_v25 }
 0x1c9   : > { %9463 = vst [vmem:[#allocation103_spill] sm:$0xff] %v7212_v37  ;;  %v7221_v29 = vpop.permute.xlu0 %1056  ;;  %5725 = vmatprep.subr.mxu1 %v7206_v27  ;;  %9466 = vst [vmem:[#allocation106_spill] sm:$0xff] %v7227_v39  ;;  %v2878_v37 = vmul.f32 %v2877_v18, %v6607_v43 }
 0x1ca   : > { %9465 = vst [vmem:[#allocation105_spill] sm:$0xff] %v7221_v29  ;;  %1498 = vrot.lane.b32.xlu1 %v1490_v48, %s9268_s19  ;;  %5726 = vmatpush3.msra.mxu1 %v7206_v27  ;;  %v897_v29 = vstv %s7286_s11  ;;  %s5467_s11 = sld [smem:[#allocation2 + $0x29]] }
 0x1cb   : > { %1128 = vrot.lane.b32.xlu0 %v1123_v57, %s9268_s19  ;;  %5727 = vmatprep.subr.mxu1 %v7218_v45  ;;  %v1150_v57 = vmul.f32 %v1149_v40, %v6657_v14  ;;  %v899_v61 = vmul.f32 %v897_v29, %v6618_v51 }
 0x1cc   : > { %v7230_v60 = vpop.permute.xlu1 %1234  ;;  %5728 = vmatpush3.msra.mxu1 %v7218_v45  ;;  %v3165_v45 = vstv %s5458_s28  ;;  %s7328_s28 = sld [smem:[#allocation2 + $0x2d]] }
 0x1cd   : > { %v7236_v48 = vpop.permute.xlu0 %1236  ;;  %5729 = vmatprep.subr.mxu1 %v7227_v39 }
 0x1ce   : > { %1534 = vrot.lane.b32.xlu1 %v1528_v7, %s9268_s19  ;;  %5730 = vmatpush3.msra.mxu1 %v7227_v39  ;;  %v1530_v7 = vmul.f32 %v1527_v11, %v6749_v21  ;;  %v3166_v39 = vmul.f32 %v3165_v45, %v6673_v24  ;;  %v3205_v11 = vstv %s5460_s0  ;;  %s7334_s0 = sld [smem:[#allocation2 + $0x36]] }
 0x1cf   : > { %1536 = vrot.lane.b32.xlu0 %v1529_v35, %s9268_s19  ;;  %5751 = vmatprep.subr.mxu1 %v7136_v52  ;;  %v1151_v35 = vmul.f32 %v1149_v40, %v6663_v17  ;;  %v3168_v40 = vmul.f32 %v3165_v45, %v6687_v33 }
 0x1d0   : > { %v7243_v13 = vpop.permute.xlu1 %1238 }
 0x1d1   : > { %9467 = vst [vmem:[#allocation107_spill] sm:$0xff] %v7243_v13  ;;  %v7248_v27 = vpop.permute.xlu0 %1274  ;;  %v7463_v13 = vstv %s7393_s24  ;;  %s8378_s24 = sld [smem:[#allocation2 + $0x39]] }
 0x1d2   : > { %1154 = vrot.lane.b32.xlu1 %v1150_v57, %s9268_s19  ;;  %v3167_v57 = vmul.f32 %v3165_v45, %v6678_v28  ;;  %v3207_v45 = vmul.f32 %v3205_v11, %v6703_v44 }
 0x1d3   : > { %1538 = vrot.lane.b32.xlu0 %v1530_v7, %s9268_s19 }
 0x1d4   : > { %v7253_v31 = vpop.permute.xlu1 %1276 }
 0x1d5   : > { %v7256_v30 = vpop.permute.xlu0 %1278 }
 0x1d6   : > { %9468 = vst [vmem:[#allocation108_spill] sm:$0xff] %v7256_v30  ;;  %1156 = vrot.lane.b32.xlu1 %v1151_v35, %s9268_s19  ;;  %v3206_v35 = vmul.f32 %v3205_v11, %v6696_v38  ;;  %s7344_s19 = sld [smem:[#allocation2 + $0x2a]]  ;;  %v7432_v30 = vstv %s7364_s5 }
 0x1d7   : > { %3172 = vrot.lane.b32.xlu0 %v3166_v39, %s6335_s30  ;;  %s7922_s5 = sld [smem:[#allocation2 + $0x8]] }
 0x1d8   : > { %v7261_v20 = vpop.permute.xlu1 %1254 }
 0x1d9   : > { %9469 = vst [vmem:[#allocation109_spill] sm:$0xff] %v7261_v20  ;;  %v7266_v7 = vpop.permute.xlu0 %1256 }
 0x1da   : > { %9470 = vst [vmem:[#allocation110_spill] sm:$0xff] %v7266_v7  ;;  %3174 = vrot.lane.b32.xlu1 %v3167_v57, %s6335_s30 }
 0x1db   : > { %3176 = vrot.lane.b32.xlu0 %v3168_v40, %s6335_s30  ;;  %v3550_v40 = vmul.f32 %v6882_v22, %v6607_v43 }
 0x1dc   : > { %v7275_v39 = vpop.permute.xlu1 %1314  ;;  %v7429_v62 = vstv %s7344_s19  ;;  %s8420_s19 = sld [smem:[#allocation2 + $0x42]] }
 0x1dd   : > { %v7282_v16 = vpop.permute.xlu0 %1316 }
 0x1de   : > { %3212 = vrot.lane.b32.xlu1 %v3206_v35, %s6335_s30  ;;  %v3551_v35 = vmul.f32 %v6882_v22, %v6618_v51 }
 0x1df   : > { %3214 = vrot.lane.b32.xlu0 %v3207_v45, %s6335_s30 }
 0x1e0   : > { %v7291_v57 = vpop.permute.xlu1 %1258 }
 0x1e1   : > { %9471 = vst [vmem:[#allocation111_spill] sm:$0xff] %v7291_v57  ;;  %v7298_v52 = vpop.permute.xlu0 %1318  ;;  %v3552_v57 = vmul.f32 %v6882_v22, %v6612_v47 }
 0x1e2   : > { %9472 = vst [vmem:[#allocation112_spill] sm:$0xff] %v7298_v52  ;;  %3556 = vrot.lane.b32.xlu1 %v3550_v40, %s6335_s30  ;;  %v3208_v40 = vmul.f32 %v3205_v11, %v6709_v49  ;;  %v7452_v52 = vstv %s7376_s21  ;;  %s7946_s21 = sld [smem:[#allocation2 + $0x2]] }
 0x1e3   : > { %3558 = vrot.lane.b32.xlu0 %v3551_v35, %s6335_s30  ;;  %9488 = vst [vmem:[#allocation128_spill] sm:$0xff] %v7452_v52 }
 0x1e4   : > { %v7308_v45 = vpop.permute.xlu1 %1294 }
 0x1e5   : > { %9473 = vst [vmem:[#allocation113_spill] sm:$0xff] %v7308_v45  ;;  %v7313_v12 = vpop.permute.xlu0 %1296  ;;  %v3185_v45 = vstv %s5459_s27  ;;  %s7342_s27 = sld [smem:[#allocation2 + $0xa]] }
 0x1e6   : > { %9474 = vst [vmem:[#allocation114_spill] sm:$0xff] %v7313_v12  ;;  %2882 = vrot.lane.b32.xlu1 %v2878_v37, %s6335_s30  ;;  %v2879_v37 = vmul.f32 %v2877_v18, %v6618_v51  ;;  %v3186_v22 = vmul.f32 %v3185_v45, %v6673_v24  ;;  %v3187_v18 = vmul.f32 %v3185_v45, %v6678_v28 }
 0x1e7   : > { %3216 = vrot.lane.b32.xlu0 %v3208_v40, %s6335_s30  ;;  %v3245_v40 = vstv %s5462_s29  ;;  %s7358_s29 = sld [smem:[#allocation2 + $0x45]]  ;;  %v3188_v26 = vmul.f32 %v3185_v45, %v6687_v33 }
 0x1e8   : > { %v7322_v35 = vpop.permute.xlu1 %1354  ;;  %v3248_v55 = vmul.f32 %v3245_v40, %v6733_v3 }
 0x1e9   : > { %9475 = vst [vmem:[#allocation115_spill] sm:$0xff] %v7322_v35  ;;  %v7330_v12 = vpop.permute.xlu0 %1356 }
 0x1ea   : > { %9476 = vst [vmem:[#allocation116_spill] sm:$0xff] %v7330_v12  ;;  %3560 = vrot.lane.b32.xlu1 %v3552_v57, %s6335_s30 }
 0x1eb   : > { %2884 = vrot.lane.b32.xlu0 %v2879_v37, %s6335_s30  ;;  %v3246_v37 = vmul.f32 %v3245_v40, %v6723_v59 }
 0x1ec   : > { %v7339_v11 = vpop.permute.xlu1 %1298 }
 0x1ed   : > { %9477 = vst [vmem:[#allocation117_spill] sm:$0xff] %v7339_v11  ;;  %v7346_v7 = vpop.permute.xlu0 %1358 }
 0x1ee   : > { %9478 = vst [vmem:[#allocation118_spill] sm:$0xff] %v7346_v7  ;;  %3192 = vrot.lane.b32.xlu1 %v3186_v22, %s6335_s30  ;;  %v3247_v22 = vmul.f32 %v3245_v40, %v6730_v2  ;;  %v7472_v40 = vstv %s7399_s7  ;;  %s8401_s7 = sld [smem:[#allocation2 + $0x2c]] }
 0x1ef   : > { %3194 = vrot.lane.b32.xlu0 %v3187_v18, %s6335_s30  ;;  %v3590_v18 = vmul.f32 %v6899_v32, %v6624_v56  ;;  %9492 = vst [vmem:[#allocation132_spill] sm:$0xff] %v7472_v40 }
 0x1f0   : > { %v7355_v57 = vpop.permute.xlu1 %1334 }
 0x1f1   : > { %9479 = vst [vmem:[#allocation119_spill] sm:$0xff] %v7355_v57  ;;  %v7360_v11 = vpop.permute.xlu0 %1336  ;;  %v2905_v57 = vstv %s7342_s27  ;;  %s7391_s27 = sld [smem:[#allocation2 + $0x2e]] }
 0x1f2   : > { %9480 = vst [vmem:[#allocation120_spill] sm:$0xff] %v7360_v11  ;;  %3252 = vrot.lane.b32.xlu1 %v3246_v37, %s6335_s30  ;;  %v2906_v7 = vmul.f32 %v2905_v57, %v6624_v56  ;;  %v2907_v46 = vmul.f32 %v2905_v57, %v6634_v0 }
 0x1f3   : > { %3254 = vrot.lane.b32.xlu0 %v3247_v22, %s6335_s30  ;;  %v3591_v22 = vmul.f32 %v6899_v32, %v6634_v0 }
 0x1f4   : > { %v7369_v20 = vpop.permute.xlu1 %1394 }
 0x1f5   : > { %9481 = vst [vmem:[#allocation121_spill] sm:$0xff] %v7369_v20  ;;  %v7378_v37 = vpop.permute.xlu0 %1396 }
 0x1f6   : > { %9482 = vst [vmem:[#allocation122_spill] sm:$0xff] %v7378_v37  ;;  %3596 = vrot.lane.b32.xlu1 %v3590_v18, %s6335_s30 }
 0x1f7   : > { %3598 = vrot.lane.b32.xlu0 %v3591_v22, %s6335_s30  ;;  %v891_v22 = vstv %s7270_s17  ;;  %s7434_s17 = sld [smem:[#allocation2 + $0x43]] }
 0x1f8   : > { %v7388_v11 = vpop.permute.xlu1 %1338  ;;  %v893_v52 = vmul.f32 %v891_v22, %v6618_v51 }
 0x1f9   : > { %9483 = vst [vmem:[#allocation123_spill] sm:$0xff] %v7388_v11  ;;  %v7395_v18 = vpop.permute.xlu0 %1398  ;;  %v903_v11 = vstv %s7272_s15  ;;  %s8480_s15 = sld [smem:[#allocation2 + $0x26]] }
 0x1fa   : > { %9484 = vst [vmem:[#allocation124_spill] sm:$0xff] %v7395_v18  ;;  %2910 = vrot.lane.b32.xlu1 %v2906_v7, %s6335_s30  ;;  %v909_v18 = vstv %s7288_s10  ;;  %v921_v7 = vstv %s7296_s12  ;;  %v904_v57 = vmul.f32 %v903_v11, %v6624_v56  ;;  %s5470_s10 = sld [smem:[#allocation2 + $0x17]] }
 0x1fb   : > { %3196 = vrot.lane.b32.xlu0 %v3188_v26, %s6335_s30  ;;  %v3592_v26 = vmul.f32 %v6899_v32, %v6637_v1  ;;  %v910_v20 = vmul.f32 %v909_v18, %v6624_v56  ;;  %v898_v56 = vmul.f32 %v897_v29, %v6607_v43  ;;  %v3570_v29 = vmul.f32 %v6920_v54, %v6607_v43  ;;  %s5489_s12 = sld [smem:[#allocation2 + $0x46]] }
 0x1fc   : > { %v7411_v45 = vpop.permute.xlu1 %1058 }
 0x1fd   : > { %9485 = vst [vmem:[#allocation125_spill] sm:$0xff] %v7411_v45  ;;  %v7421_v37 = vpop.permute.xlu0 %1374  ;;  %v3226_v45 = vmul.f32 %v7432_v30, %v6696_v38  ;;  %v7498_v35 = vstv %s7434_s17  ;;  %s8317_s17 = sld [smem:[#allocation2 + $0x27]] }
 0x1fe   : > { %9486 = vst [vmem:[#allocation126_spill] sm:$0xff] %v7421_v37  ;;  %3256 = vrot.lane.b32.xlu1 %v3248_v55, %s6335_s30  ;;  %v7443_v55 = vstv %s7358_s29  ;;  %v7455_v37 = vstv %s7383_s6  ;;  %9495 = vst [vmem:[#allocation135_spill] sm:$0xff] %v7498_v35  ;;  %s7939_s6 = sld [smem:[#allocation2 + $0x37]] }
 0x1ff   : > { %3600 = vrot.lane.b32.xlu0 %v3592_v26, %s6335_s30  ;;  %9489 = vst [vmem:[#allocation129_spill] sm:$0xff] %v7455_v37  ;;  %v7466_v26 = vstv %s7385_s14  ;;  %v892_v37 = vmul.f32 %v891_v22, %v6607_v43  ;;  %v912_v22 = vadd.f32 %v910_v20, %v898_v56  ;;  %v3287_v56 = vmul.f32 %v7463_v13, %v6755_v25  ;;  %s9626_s14 = sld [smem:[#allocation145_spill]] }
 0x200   : > { %v7446_v32 = vpop.permute.xlu1 %1376  ;;  %9491 = vst [vmem:[#allocation131_spill] sm:$0xff] %v7466_v26  ;;  %v916_v26 = vmul.f32 %v915_v36, %v6643_v4  ;;  %v9498_v20 = vstv %s7303_s13  ;;  %s8303_s29 = sld [smem:[#allocation2 + $0x12]] }
 0x201   : > { %9487 = vst [vmem:[#allocation127_spill] sm:$0xff] %v7446_v32  ;;  %v7457_v1 = vpop.permute.xlu0 %1434  ;;  %v3227_v32 = vmul.f32 %v7432_v30, %v6703_v44  ;;  %v906_v40 = vadd.f32 %v904_v57, %v892_v37  ;;  %v934_v37 = vmul.f32 %v9498_v20, %v6657_v14  ;;  %v9499_v57 = vstv %s7311_s25 }
 0x202   : > { %9490 = vst [vmem:[#allocation130_spill] sm:$0xff] %v7457_v1  ;;  %2912 = vrot.lane.b32.xlu1 %v2907_v46, %s6335_s30  ;;  %v905_v1 = vmul.f32 %v903_v11, %v6634_v0  ;;  %v911_v46 = vmul.f32 %v909_v18, %v6634_v0  ;;  %v922_v11 = vmul.f32 %v921_v7, %v6643_v4  ;;  %v9502_v20 = vstv %s7280_s18 }
 0x203   : > { %3232 = vrot.lane.b32.xlu0 %v3226_v45, %s6335_s30  ;;  %v917_v18 = vmul.f32 %v915_v36, %v6648_v8  ;;  %v923_v45 = vmul.f32 %v921_v7, %v6648_v8  ;;  %v9496_v36 = vstv %s7280_s18  ;;  %s8606_s18 = sld [smem:[#allocation2 + $0x3b]] }
 0x204   : > { %v7479_v42 = vpop.permute.xlu1 %1436  ;;  %v928_v12 = vmul.f32 %v9496_v36, %v6657_v14  ;;  %v907_v7 = vadd.f32 %v905_v1, %v893_v52  ;;  %v913_v23 = vadd.f32 %v911_v46, %v899_v61  ;;  %v632_v36 = vmul.f32 %v9499_v57, %v6696_v38 }
 0x205   : > { %9493 = vst [vmem:[#allocation133_spill] sm:$0xff] %v7479_v42  ;;  %v7490_v0 = vpop.permute.xlu0 %1084  ;;  %v3286_v42 = vmul.f32 %v7463_v13, %v6746_v19  ;;  %v9500_v1 = vstv %s7366_s22  ;;  %v918_v52 = vadd.f32 %v916_v26, %v906_v40  ;;  %v924_v46 = vadd.f32 %v922_v11, %v912_v22 }
 0x206   : > { %9494 = vst [vmem:[#allocation134_spill] sm:$0xff] %v7490_v0  ;;  %3234 = vrot.lane.b32.xlu1 %v3227_v32, %s6335_s30  ;;  %v2892_v61 = vmul.f32 %v9500_v1, %v6607_v43  ;;  %v925_v35 = vadd.f32 %v923_v45, %v913_v23  ;;  %v929_v57 = vmul.f32 %v9502_v20, %v6663_v17  ;;  %v9503_v1 = vstv %s7303_s13  ;;  %s5492_s13 = sld [smem:[#allocation2 + $0x11]] }
 0x207   : > { %3292 = vrot.lane.b32.xlu0 %v3286_v42, %s6335_s30  ;;  %v7519_v42 = vmul.f32 %v6920_v54, %v6612_v47  ;;  %v935_v47 = vmul.f32 %v9503_v1, %v6663_v17  ;;  %v9504_v40 = vstv %s7305_s20  ;;  %v9505_v11 = vstv %s7317_s26 }
 0x208   : > { %v7504_v32 = vpop.permute.xlu1 %1378  ;;  %v620_v26 = vmul.f32 %v9504_v40, %v6673_v24  ;;  %v644_v23 = vmul.f32 %v9505_v11, %v6723_v59  ;;  %v9506_v45 = vstv %s7311_s25  ;;  %v3571_v1 = vmul.f32 %v6920_v54, %v6618_v51  ;;  %s8239_s25 = sld [smem:[#allocation2 + $0xb]] }
 0x209   : > { %9497 = vst [vmem:[#allocation136_spill] sm:$0xff] %v7504_v32  ;;  %v919_v32 = vadd.f32 %v917_v18, %v907_v7  ;;  %v7521_v0 = vpop.permute.xlu0 %1438  ;;  %v7536_v18 = vadd.f32 %v928_v12, %v918_v52  ;;  %v633_v22 = vmul.f32 %v9506_v45, %v6703_v44  ;;  %v9507_v7 = vstv %s7328_s28 }
 0x20a   : > { %9501 = vst [vmem:[#allocation137_spill] sm:$0xff] %v7521_v0  ;;  %3294 = vrot.lane.b32.xlu1 %v3287_v56, %s6335_s30  ;;  %v638_v56 = vmul.f32 %v9507_v7, %v6696_v38  ;;  %v7549_v40 = vadd.f32 %v934_v37, %v924_v46  ;;  %v634_v11 = vadd.f32 %v632_v36, %v620_v26  ;;  %v9510_v12 = vstv %s7319_s4 }
 0x20b   : > { %3576 = vrot.lane.b32.xlu0 %v3570_v29, %s6335_s30  ;;  %v656_v52 = vmul.f32 %v9510_v12, %v6746_v19  ;;  %v9511_v45 = vstv %s7305_s20  ;;  %v9512_v7 = vstv %s7317_s26  ;;  %v9513_v29 = vstv %s7326_s8  ;;  %s8227_s20 = sld [smem:[#allocation2 + $0x40]] }
 0x20c   : > { %v7545_v20 = vpop.permute.xlu1 %1086  ;;  %9509 = vst [vmem:[#allocation139_spill] sm:$0xff] %v7549_v40  ;;  %v621_v43 = vmul.f32 %v9511_v45, %v6678_v28  ;;  %v645_v0 = vmul.f32 %v9512_v7, %v6730_v2  ;;  %v626_v17 = vmul.f32 %v9513_v29, %v6673_v24  ;;  %v3630_v36 = vmul.f32 %v6782_v50, %v6643_v4  ;;  %s5452_s26 = sld [smem:[#allocation2 + $0xc]] }
 0x20d   : > { %9508 = vst [vmem:[#allocation138_spill] sm:$0xff] %v7545_v20  ;;  %v9514_v20 = vstv %s7334_s0  ;;  %v7566_v37 = vpop.permute.xlu0 %1414  ;;  %v7571_v46 = vadd.f32 %v929_v57, %v919_v32  ;;  %v7573_v26 = vadd.f32 %v935_v47, %v925_v35  ;;  %v646_v12 = vadd.f32 %v644_v23, %v634_v11 }
 0x20e   : > { %v650_v54 = vmul.f32 %v9514_v20, %v6723_v59  ;;  %9515 = vst [vmem:[#allocation140_spill] sm:$0xff] %v7566_v37  ;;  %3578 = vrot.lane.b32.xlu1 %v3571_v1, %s6335_s30  ;;  %v9517_v45 = vstv %s7328_s28  ;;  %v635_v29 = vadd.f32 %v633_v22, %v621_v43  ;;  %v9518_v20 = vstv %s7319_s4  ;;  %s8253_s4 = sld [smem:[#allocation2 + $0x3]] }
 0x20f   : > { %9516 = vst [vmem:[#allocation141_spill] sm:$0xff] %v7573_v26  ;;  %v639_v7 = vmul.f32 %v9517_v45, %v6703_v44  ;;  %v657_v40 = vmul.f32 %v9518_v20, %v6755_v25  ;;  %v640_v37 = vadd.f32 %v638_v56, %v626_v17  ;;  %3636 = vrot.lane.b32.xlu0 %v3630_v36, %s6335_s30  ;;  %v9520_v47 = vstv %s7336_s23  ;;  %s8266_s28 = sld [smem:[#allocation2 + $0x1e]] }
 0x210   : > { %v7582_v1 = vpop.permute.xlu1 %1416  ;;  %v3631_v32 = vmul.f32 %v6782_v50, %v6648_v8  ;;  %v7586_v57 = vadd.f32 %v656_v52, %v646_v12  ;;  %v662_v35 = vmul.f32 %v9520_v47, %v6746_v19  ;;  %v9521_v23 = vstv %s7326_s8  ;;  %s8261_s8 = sld [smem:[#allocation2 + $0x15]] }
 0x211   : > { %9519 = vst [vmem:[#allocation142_spill] sm:$0xff] %v7582_v1  ;;  %v627_v43 = vmul.f32 %v9521_v23, %v6678_v28  ;;  %v1181_v22 = vmul.f32 %v6805_v5, %v6703_v44  ;;  %v647_v17 = vadd.f32 %v645_v0, %v635_v29  ;;  %v652_v56 = vadd.f32 %v650_v54, %v640_v37  ;;  %v7601_v52 = vpop.permute.xlu0 %1474  ;;  %s8295_s23 = sld [smem:[#allocation2]] }
 0x212   : > { %v9522_v11 = vstv %s7334_s0  ;;  %v1180_v50 = vmul.f32 %v6805_v5, %v6696_v38  ;;  %3638 = vrot.lane.b32.xlu1 %v3631_v32, %s6335_s30  ;;  %v9523_v45 = vmov %v9520_v47  ;;  %v1165_v47 = vmul.f32 %v6803_v63, %v6678_v28  ;;  %s8288_s0 = sld [smem:[#allocation2 + $0x9]] }
 0x213   : > { %v651_v36 = vmul.f32 %v9522_v11, %v6730_v2  ;;  %v641_v12 = vadd.f32 %v639_v7, %v627_v43  ;;  %v663_v20 = vmul.f32 %v9523_v45, %v6755_v25  ;;  %v1197_v0 = vmul.f32 %v6807_v6, %v6730_v2  ;;  %2896 = vrot.lane.b32.xlu0 %v2892_v61, %s6335_s30 }
 0x214   : > { %v7611_v54 = vadd.f32 %v657_v40, %v647_v17  ;;  %v1164_v37 = vmul.f32 %v6803_v63, %v6673_v24  ;;  %v1196_v29 = vmul.f32 %v6807_v6, %v6723_v59  ;;  %v7618_v7 = vpop.permute.xlu1 %1476  ;;  %v9524_v32 = vstv %s7373_s16 }
 0x215   : > { %v2934_v23 = vmul.f32 %v9524_v32, %v6643_v4  ;;  %v7623_v43 = vadd.f32 %v662_v35, %v652_v56  ;;  %v1184_v11 = vadd.f32 %v1181_v22, %v1165_v47  ;;  %v1213_v40 = vmul.f32 %v6811_v9, %v6755_v25  ;;  %v7631_v61 = vpop.permute.xlu0 %1070 }
 0x216   : > { %v1182_v17 = vmul.f32 %v6805_v5, %v6709_v49  ;;  %v653_v45 = vadd.f32 %v651_v36, %v641_v12  ;;  %v1183_v1 = vadd.f32 %v1180_v50, %v1164_v37  ;;  %v1212_v26 = vmul.f32 %v6811_v9, %v6746_v19 }
 0x217   : > { %2938 = vrot.lane.b32.xlu1 %v2934_v23, %s6335_s30  ;;  %v3228_v35 = vmul.f32 %v7432_v30, %v6709_v49  ;;  %v1200_v56 = vadd.f32 %v1197_v0, %v1184_v11  ;;  %v1166_v22 = vmul.f32 %v6803_v63, %v6687_v33  ;;  %v1198_v47 = vmul.f32 %v6807_v6, %v6733_v3 }
 0x218   : > { %v1188_v5 = vmul.f32 %v7437_v10, %v6696_v38  ;;  %v7642_v36 = vadd.f32 %v663_v20, %v653_v45  ;;  %v1199_v50 = vadd.f32 %v1196_v29, %v1183_v1  ;;  %v1214_v12 = vmul.f32 %v6811_v9, %v6749_v21  ;;  %v7647_v37 = vpop.permute.xlu1 %1112 }
 0x219   : > { %3236 = vrot.lane.b32.xlu0 %v3228_v35, %s6335_s30  ;;  %v3288_v30 = vmul.f32 %v7463_v13, %v6749_v21  ;;  %v1216_v63 = vadd.f32 %v1213_v40, %v1200_v56  ;;  %v1185_v0 = vadd.f32 %v1182_v17, %v1166_v22  ;;  %v1172_v6 = vmul.f32 %v7429_v62, %v6673_v24  ;;  %v7661_v23 = vpop.permute.xlu0 %1418 }
 0x21a   : > { %v1189_v20 = vmul.f32 %v7437_v10, %v6703_v44  ;;  %v1215_v32 = vadd.f32 %v1212_v26, %v1199_v50  ;;  %v1204_v1 = vmul.f32 %v7440_v15, %v6723_v59  ;;  %v1220_v9 = vmul.f32 %v7443_v55, %v6746_v19 }
 0x21b   : > { %v1190_v29 = vmul.f32 %v7437_v10, %v6709_v49  ;;  %3296 = vrot.lane.b32.xlu1 %v3288_v30, %s6335_s30  ;;  %v1244_v13 = vadd.f32 %v7236_v48, %v1216_v63  ;;  %v1201_v11 = vadd.f32 %v1198_v47, %v1185_v0  ;;  %v1191_v40 = vadd.f32 %v1188_v5, %v1172_v6 }
 0x21c   : > { %v1173_v26 = vmul.f32 %v7429_v62, %v6678_v28  ;;  %v1243_v17 = vadd.f32 %v7230_v60, %v1215_v32  ;;  %v1205_v45 = vmul.f32 %v7440_v15, %v6730_v2  ;;  %v1174_v10 = vmul.f32 %v7429_v62, %v6687_v33  ;;  %v7676_v48 = vpop.permute.xlu1 %1478 }
 0x21d   : > { %v1206_v35 = vmul.f32 %v7440_v15, %v6733_v3  ;;  %3580 = vrot.lane.b32.xlu0 %v7519_v42, %s6335_s30  ;;  %v1217_v56 = vadd.f32 %v1214_v12, %v1201_v11  ;;  %v1284_v22 = vadd.f32 %v7253_v31, %v1244_v13  ;;  %v1221_v60 = vmul.f32 %v7443_v55, %v6755_v25  ;;  %v7684_v15 = vpop.permute.xlu0 %1072 }
 0x21e   : > { %v1192_v47 = vadd.f32 %v1189_v20, %v1173_v26  ;;  %v1283_v5 = vadd.f32 %v7248_v27, %v1243_v17  ;;  %v1193_v50 = vadd.f32 %v1190_v29, %v1174_v10  ;;  %v1222_v62 = vmul.f32 %v7443_v55, %v6749_v21  ;;  %v9530_v26 = vld [vmem:[#allocation132_spill] sm:$0xff]  ;;  %v9532_v10 = vld [vmem:[#allocation82_spill] sm:$0xff] }
 0x21f   : > { %3640 = vrot.lane.b32.xlu1 %v6788_v53, %s6335_s30  ;;  %v9525_v42 = vstv %s7366_s22  ;;  %v950_v31 = vadd.f32 %v6927_v58, %v7536_v18  ;;  %v678_v30 = vadd.f32 %v6960_v41, %v7586_v57  ;;  %v1207_v63 = vadd.f32 %v1204_v1, %v1191_v40  ;;  %v9527_v58 = vld [vmem:[#allocation52_spill] sm:$0xff]  ;;  %s8372_s22 = sld [smem:[#allocation2 + $0x36]] }
 0x220   : > { %v2893_v12 = vmul.f32 %v9525_v42, %v6618_v51  ;;  %v1324_v27 = vadd.f32 %v7282_v16, %v1284_v22  ;;  %v1208_v0 = vadd.f32 %v1205_v45, %v1192_v47  ;;  %v1323_v55 = vadd.f32 %v7275_v39, %v1283_v5  ;;  %v7698_v20 = vpop.permute.xlu1 %1114  ;;  %v9528_v41 = vld [vmem:[#allocation116_spill] sm:$0xff]  ;;  %v9529_v39 = vld [vmem:[#allocation115_spill] sm:$0xff]  ;;  %v9534_v47 = vld [vmem:[#allocation122_spill] sm:$0xff] }
 0x221   : > { %v1209_v6 = vadd.f32 %v1206_v35, %v1193_v50  ;;  %v9526_v53 = vstv %s7373_s16  ;;  %v978_v29 = vadd.f32 %v6952_v34, %v950_v31  ;;  %v706_v18 = vadd.f32 %v9527_v58, %v678_v30  ;;  %v7713_v40 = vpop.permute.xlu0 %1454  ;;  %v9531_v34 = vld [vmem:[#allocation56_spill] sm:$0xff]  ;;  %v9533_v35 = vld [vmem:[#allocation107_spill] sm:$0xff]  ;;  %v9535_v5 = vld [vmem:[#allocation121_spill] sm:$0xff]  ;;  %s8389_s16 = sld [smem:[#allocation2 + $0x3f]] }
 0x222   : > { %2898 = vrot.lane.b32.xlu0 %v2893_v12, %s6335_s30  ;;  %v2935_v32 = vmul.f32 %v9526_v53, %v6648_v8  ;;  %v7705_v13 = vadd.f32 %v1220_v9, %v1207_v63  ;;  %v1364_v57 = vadd.f32 %v9528_v41, %v1324_v27  ;;  %v7708_v16 = vadd.f32 %v1221_v60, %v1208_v0  ;;  %v9536_v12 = vld [vmem:[#allocation128_spill] sm:$0xff]  ;;  %v9540_v53 = vld [vmem:[#allocation133_spill] sm:$0xff] }
 0x223   : > { %v7710_v1 = vadd.f32 %v1222_v62, %v1209_v6  ;;  %v1363_v11 = vadd.f32 %v9529_v39, %v1323_v55  ;;  %v3266_v17 = vmul.f32 %v9530_v26, %v6723_v59  ;;  %v734_v45 = vadd.f32 %v9531_v34, %v706_v18  ;;  %v9537_v63 = vld [vmem:[#allocation60_spill] sm:$0xff]  ;;  %v9542_v18 = vld [vmem:[#allocation49_spill] sm:$0xff] }
 0x224   : > { %2940 = vrot.lane.b32.xlu1 %v2935_v32, %s6335_s30  ;;  %v1006_v9 = vadd.f32 %v9532_v10, %v978_v29  ;;  %v1245_v22 = vadd.f32 %v9533_v35, %v1217_v56  ;;  %v1404_v60 = vadd.f32 %v9534_v47, %v1364_v57  ;;  %v7724_v62 = vpop.permute.xlu1 %1456  ;;  %v3267_v42 = vmul.f32 %v9530_v26, %v6730_v2  ;;  %v9538_v56 = vld [vmem:[#allocation93_spill] sm:$0xff]  ;;  %v9539_v55 = vld [vmem:[#allocation108_spill] sm:$0xff]  ;;  %v9543_v57 = vld [vmem:[#allocation130_spill] sm:$0xff] }
 0x225   : > { %v1403_v50 = vadd.f32 %v9535_v5, %v1363_v11  ;;  %v3326_v31 = vmul.f32 %v9536_v12, %v6673_v24  ;;  %v3327_v30 = vmul.f32 %v9536_v12, %v6678_v28  ;;  %v762_v27 = vadd.f32 %v9537_v63, %v734_v45  ;;  %v9541_v29 = vld [vmem:[#allocation45_spill] sm:$0xff]  ;;  %v1515_v11 = vpop.permute.xlu0 %1514  ;;  %v9546_v10 = vld [vmem:[#allocation64_spill] sm:$0xff] }
 0x226   : > { %3272 = vrot.lane.b32.xlu0 %v3266_v17, %s6335_s30  ;;  %v1034_v0 = vadd.f32 %v9538_v56, %v1006_v9  ;;  %v1285_v6 = vadd.f32 %v9539_v55, %v1245_v22  ;;  %v1444_v32 = vadd.f32 %v9540_v53, %v1404_v60  ;;  %v951_v58 = vadd.f32 %v9541_v29, %v7571_v46  ;;  %v9544_v17 = vld [vmem:[#allocation28_spill] sm:$0xff]  ;;  %v9545_v34 = vld [vmem:[#allocation129_spill] sm:$0xff] }
 0x227   : > { %v679_v41 = vadd.f32 %v9542_v18, %v7611_v54  ;;  %v1443_v39 = vadd.f32 %v9543_v57, %v1403_v50  ;;  %v3610_v45 = vmul.f32 %v9545_v34, %v9544_v17  ;;  %v790_v9 = vadd.f32 %v9546_v10, %v762_v27  ;;  %v9547_v35 = vld [vmem:[#allocation105_spill] sm:$0xff]  ;;  %v9548_v47 = vld [vmem:[#allocation112_spill] sm:$0xff]  ;;  %v9554_v18 = vld [vmem:[#allocation118_spill] sm:$0xff] }
 0x228   : > { %3274 = vrot.lane.b32.xlu1 %v3267_v42, %s6335_s30  ;;  %v1062_v22 = vadd.f32 %v9547_v35, %v1034_v0  ;;  %v1325_v60 = vadd.f32 %v9548_v47, %v1285_v6  ;;  %v1484_v5 = vadd.f32 %v7618_v7, %v1444_v32  ;;  %v9549_v46 = vld [vmem:[#allocation48_spill] sm:$0xff]  ;;  %v9550_v56 = vld [vmem:[#allocation53_spill] sm:$0xff]  ;;  %v1517_v42 = vpop.permute.xlu1 %1516  ;;  %v9555_v57 = vld [vmem:[#allocation134_spill] sm:$0xff] }
 0x229   : > { %v979_v63 = vadd.f32 %v9549_v46, %v951_v58  ;;  %v707_v54 = vadd.f32 %v9550_v56, %v679_v41  ;;  %v1483_v50 = vadd.f32 %v7601_v52, %v1443_v39  ;;  %v9552_v55 = vld [vmem:[#allocation29_spill] sm:$0xff]  ;;  %v9553_v29 = vld [vmem:[#allocation68_spill] sm:$0xff]  ;;  %v7760_v41 = vpop.permute.xlu0 %1098  ;;  %v9557_v52 = vld [vmem:[#allocation131_spill] sm:$0xff] }
 0x22a   : > { %3332 = vrot.lane.b32.xlu0 %v3326_v31, %s9551_s1  ;;  %v3611_v53 = vmul.f32 %v9545_v34, %v9552_v55  ;;  %v818_v27 = vadd.f32 %v9553_v29, %v790_v9  ;;  %v1365_v0 = vadd.f32 %v9554_v18, %v1325_v60  ;;  %v1090_v6 = vadd.f32 %v9555_v57, %v1062_v22  ;;  %v9556_v7 = vld [vmem:[#allocation57_spill] sm:$0xff]  ;;  %v9558_v39 = vld [vmem:[#allocation32_spill] sm:$0xff]  ;;  %v9560_v60 = vld [vmem:[#allocation83_spill] sm:$0xff] }
 0x22b   : > { %v7757_v10 = vadd.f32 %v1517_v42, %v1484_v5  ;;  %v735_v32 = vadd.f32 %v9556_v7, %v707_v54  ;;  %v1523_v58 = vadd.f32 %v1515_v11, %v1483_v50  ;;  %v3670_v31 = vmul.f32 %v9557_v52, %v6657_v14  ;;  %v9559_v35 = vld [vmem:[#allocation72_spill] sm:$0xff]  ;;  %v9562_v11 = vld [vmem:[#allocation61_spill] sm:$0xff]  ;;  %v9565_v57 = vld [vmem:[#allocation98_spill] sm:$0xff] }
 0x22c   : > { %3334 = vrot.lane.b32.xlu1 %v3327_v30, %s9551_s1  ;;  %v3671_v9 = vmul.f32 %v9557_v52, %v9558_v39  ;;  %v846_v47 = vadd.f32 %v9559_v35, %v818_v27  ;;  %v1007_v22 = vadd.f32 %v9560_v60, %v979_v63  ;;  %v9561_v5 = vld [vmem:[#allocation124_spill] sm:$0xff]  ;;  %v1118_v56 = vadd.f32 %v7647_v37, %v1090_v6  ;;  %v1141_v30 = vpop.permute.xlu1 %1140  ;;  %v9566_v7 = vld [vmem:[#allocation137_spill] sm:$0xff] }
 0x22d   : > { %v1405_v46 = vadd.f32 %v9561_v5, %v1365_v0  ;;  %v763_v54 = vadd.f32 %v9562_v11, %v735_v32  ;;  %v1553_v50 = vrot.slane %v7757_v10, 1  ;;  %v9563_v42 = vstv %s7391_s27  ;;  %v9564_v18 = vld [vmem:[#allocation76_spill] sm:$0xff]  ;;  %v7780_v37 = vpop.permute.xlu0 %1458 }
 0x22e   : > { %3616 = vrot.lane.b32.xlu0 %v3610_v45, %s6335_s30  ;;  %v2920_v29 = vmul.f32 %v9563_v42, %v9544_v17  ;;  %v874_v27 = vadd.f32 %v9564_v18, %v846_v47  ;;  %v1035_v63 = vadd.f32 %v9565_v57, %v1007_v22  ;;  %v1146_v0 = vadd.f32 %v1141_v30, %v1118_v56  ;;  %v9568_v47 = vld [vmem:[#allocation65_spill] sm:$0xff]  ;;  %v9570_v30 = vld [vmem:[#allocation30_spill] sm:$0xff] }
 0x22f   : > { %v1445_v35 = vadd.f32 %v9566_v7, %v1405_v46  ;;  %v1552_v60 = vrot.slane %v1523_v58, 1  ;;  %v9567_v6 = vstv %s7405_s2  ;;  %v3268_v10 = vmul.f32 %v9530_v26, %v6733_v3  ;;  %v9569_v22 = vld [vmem:[#allocation125_spill] sm:$0xff]  ;;  %v9573_v57 = vld [vmem:[#allocation138_spill] sm:$0xff]  ;;  %s7866_s2 = sld [smem:[#allocation2 + $0xe]] }
 0x230   : > { %3618 = vrot.lane.b32.xlu1 %v3611_v53, %s6335_s30  ;;  %v2962_v45 = vmul.f32 %v9567_v6, %v6657_v14  ;;  %v3328_v32 = vmul.f32 %v9536_v12, %v6687_v33  ;;  %v791_v5 = vadd.f32 %v9568_v47, %v763_v54  ;;  %v1063_v11 = vadd.f32 %v9569_v22, %v1035_v63  ;;  %v1519_v56 = vpop.permute.xlu1 %1518  ;;  %v9571_v42 = vld [vmem:[#allocation33_spill] sm:$0xff]  ;;  %v9578_v47 = vld [vmem:[#allocation135_spill] sm:$0xff] }
 0x231   : > { %v1485_v58 = vadd.f32 %v7676_v48, %v1445_v35  ;;  %v1546_v46 = vadd.f32 %v1146_v0, %v874_v27  ;;  %v1554_v53 = vsel %vm1551_vm3, %v1552_v60, %v1553_v50  ;;  %v3612_v26 = vmul.f32 %v9545_v34, %v9570_v30  ;;  %v9572_v54 = vld [vmem:[#allocation69_spill] sm:$0xff]  ;;  %v9574_v27 = vld [vmem:[#allocation139_spill] sm:$0xff]  ;;  %v9575_v35 = vld [vmem:[#allocation46_spill] sm:$0xff]  ;;  %v7805_v60 = vpop.permute.xlu0 %1100 }
 0x232   : > { %3676 = vrot.lane.b32.xlu0 %v3670_v31, %s6335_s30  ;;  %v7799_v12 = vmul.f32 %v9557_v52, %v9571_v42  ;;  %v819_v18 = vadd.f32 %v9572_v54, %v791_v5  ;;  %v1091_v63 = vadd.f32 %v9573_v57, %v1063_v11  ;;  %v964_v0 = vadd.f32 %v9575_v35, %v9574_v27  ;;  %v9579_v22 = vld [vmem:[#allocation73_spill] sm:$0xff]  ;;  %v9582_v57 = vld [vmem:[#allocation51_spill] sm:$0xff] }
 0x233   : > { %v1559_v48 = vadd.f32 %v1554_v53, %v1546_v46  ;;  %v1525_v7 = vadd.f32 %v1519_v56, %v1485_v58  ;;  %v9576_v31 = vstv %s7391_s27  ;;  %v9577_v52 = vmov %v9567_v6  ;;  %v9580_v58 = vld [vmem:[#allocation109_spill] sm:$0xff]  ;;  %v9581_v56 = vld [vmem:[#allocation50_spill] sm:$0xff]  ;;  %v9587_v42 = vld [vmem:[#allocation47_spill] sm:$0xff]  ;;  %s8309_s27 = sld [smem:[#allocation2 + $0x1b]] }
 0x234   : > { %3678 = vrot.lane.b32.xlu1 %v3671_v9, %s6335_s30  ;;  %v7811_v34 = vmul.f32 %v9576_v31, %v9552_v55  ;;  %v7816_v6 = vmul.f32 %v9577_v52, %v9558_v39  ;;  %v7820_v5 = vmul.f32 %v9578_v47, %v6746_v19  ;;  %v847_v11 = vadd.f32 %v9579_v22, %v819_v18  ;;  %v1143_v52 = vpop.permute.xlu1 %1142  ;;  %v9583_v18 = vld [vmem:[#allocation77_spill] sm:$0xff] }
 0x235   : > { %v1263_v46 = vadd.f32 %v9580_v58, %v7705_v13  ;;  %v1119_v53 = vadd.f32 %v7698_v20, %v1091_v63  ;;  %v1577_v9 = vsel %vm1575_vm4, %v1559_v48, 0  ;;  %v692_v54 = vadd.f32 %v9581_v56, %v7623_v43  ;;  %v9584_v13 = vld [vmem:[#allocation110_spill] sm:$0xff]  ;;  %v9585_v20 = vld [vmem:[#allocation113_spill] sm:$0xff] }
 0x236   : > { %v693_v27 = vadd.f32 %v9582_v57, %v7642_v36  ;;  %v7831_v35 = vand.u32 4294901760, %v1577_v9  ;;  %v1555_v31 = vrot.slane %v1525_v7, 1  ;;  %2924 = vrot.lane.b32.xlu0 %v2920_v29, %s6335_s30  ;;  %v875_v22 = vadd.f32 %v9583_v18, %v847_v11  ;;  %v9586_v30 = vld [vmem:[#allocation141_spill] sm:$0xff]  ;;  %v9588_v56 = vld [vmem:[#allocation54_spill] sm:$0xff]  ;;  %v1495_v7 = vpop.permute.xlu0 %1494  ;;  %v9589_v29 = vld [vmem:[#allocation55_spill] sm:$0xff] }
 0x237   : > { %v1264_v58 = vadd.f32 %v9584_v13, %v7708_v16  ;;  %v1303_v63 = vadd.f32 %v9585_v20, %v1263_v46  ;;  %v1147_v48 = vadd.f32 %v1143_v52, %v1119_v53  ;;  %v965_v43 = vadd.f32 %v9587_v42, %v9586_v30  ;;  %v9590_v57 = vld [vmem:[#allocation114_spill] sm:$0xff]  ;;  %v9591_v18 = vld [vmem:[#allocation119_spill] sm:$0xff]  ;;  %v9593_v30 = vld [vmem:[#allocation80_spill] sm:$0xff] }
 0x238   : > { %v720_v19 = vadd.f32 %v9588_v56, %v692_v54  ;;  %v7842_v36 = vsub.f32 %v1577_v9, %v7831_v35  ;;  %2966 = vrot.lane.b32.xlu1 %v2962_v45, %s6335_s30  ;;  %5731 = vmatprep.mubr.f32.mxu1 %v7831_v35  ;;  %v721_v11 = vadd.f32 %v9589_v29, %v693_v27  ;;  %v9592_v52 = vld [vmem:[#allocation58_spill] sm:$0xff]  ;;  %v1497_v9 = vpop.permute.xlu1 %1496  ;;  %v9594_v20 = vld [vmem:[#allocation111_spill] sm:$0xff]  ;;  %v9595_v56 = vld [vmem:[#allocation120_spill] sm:$0xff] }
 0x239   : > { %v1304_v16 = vadd.f32 %v9590_v57, %v1264_v58  ;;  %v1343_v46 = vadd.f32 %v9591_v18, %v1303_v63  ;;  %v1547_v53 = vadd.f32 %v1147_v48, %v875_v22  ;;  %v992_v42 = vadd.f32 %v9593_v30, %v964_v0  ;;  %v9596_v29 = vld [vmem:[#allocation126_spill] sm:$0xff]  ;;  %v9597_v48 = vld [vmem:[#allocation59_spill] sm:$0xff]  ;;  %v9599_v18 = vld [vmem:[#allocation84_spill] sm:$0xff] }
 0x23a   : > { %v748_v13 = vadd.f32 %v9592_v52, %v720_v19  ;;  %v1556_v54 = vsel %vm1551_vm3, %v1553_v50, %v1555_v31  ;;  %3276 = vrot.lane.b32.xlu0 %v3268_v10, %s6335_s30  ;;  %v7854_v45 = vand.u32 4294901760, %v7842_v36  ;;  %v1265_v27 = vadd.f32 %v9594_v20, %v7710_v1  ;;  %v9598_v57 = vld [vmem:[#allocation62_spill] sm:$0xff]  ;;  %v1127_v31 = vpop.permute.xlu0 %1126  ;;  %v9600_v1 = vld [vmem:[#allocation117_spill] sm:$0xff] }
 0x23b   : > { %v1344_v58 = vadd.f32 %v9595_v56, %v1304_v16  ;;  %v1383_v63 = vadd.f32 %v9596_v29, %v1343_v46  ;;  %v1560_v22 = vadd.f32 %v1556_v54, %v1547_v53  ;;  %v749_v19 = vadd.f32 %v9597_v48, %v721_v11  ;;  %v9601_v16 = vld [vmem:[#allocation127_spill] sm:$0xff]  ;;  %v9602_v46 = vld [vmem:[#allocation140_spill] sm:$0xff]  ;;  %v9604_v20 = vld [vmem:[#allocation81_spill] sm:$0xff] }
 0x23c   : > { %v776_v0 = vadd.f32 %v9598_v57, %v748_v13  ;;  %v1020_v50 = vadd.f32 %v9599_v18, %v992_v42  ;;  %3336 = vrot.lane.b32.xlu1 %v3328_v32, %s9551_s1  ;;  %v1660_v10 = vsub.f32 %v7842_v36, %v7854_v45  ;;  %v1305_v52 = vadd.f32 %v9600_v1, %v1265_v27  ;;  %v9603_v54 = vld [vmem:[#allocation63_spill] sm:$0xff]  ;;  %v1499_v32 = vpop.permute.xlu1 %1498  ;;  %v9605_v48 = vld [vmem:[#allocation100_spill] sm:$0xff] }
 0x23d   : > { %v1384_v30 = vadd.f32 %v9601_v16, %v1344_v58  ;;  %v1423_v53 = vadd.f32 %v9602_v46, %v1383_v63  ;;  %v1580_v11 = vsel %vm1575_vm4, %v1560_v22, 0  ;;  %v777_v13 = vadd.f32 %v9603_v54, %v749_v19  ;;  %v9606_v27 = vld [vmem:[#allocation123_spill] sm:$0xff]  ;;  %v9607_v58 = vld [vmem:[#allocation142_spill] sm:$0xff]  ;;  %v9609_v19 = vld [vmem:[#allocation88_spill] sm:$0xff] }
 0x23e   : > { %v993_v42 = vadd.f32 %v9604_v20, %v965_v43  ;;  %v7874_v56 = vand.u32 4294901760, %v1580_v11  ;;  %3620 = vrot.lane.b32.xlu0 %v3612_v26, %s6335_s30  ;;  %v7877_v29 = vand.u32 4294901760, %v1660_v10  ;;  %v1048_v57 = vadd.f32 %v9605_v48, %v1020_v50  ;;  %v9608_v22 = vld [vmem:[#allocation66_spill] sm:$0xff]  ;;  %v1129_v54 = vpop.permute.xlu0 %1128  ;;  %v9610_v26 = vld [vmem:[#allocation136_spill] sm:$0xff]  ;;  %v9613_v20 = vld [vmem:[#allocation103_spill] sm:$0xff] }
 0x23f   : > { %v1345_v18 = vadd.f32 %v9606_v27, %v1305_v52  ;;  %v1424_v1 = vadd.f32 %v9607_v58, %v1384_v30  ;;  %v1463_v63 = vadd.f32 %v7713_v40, %v1423_v53  ;;  %v804_v16 = vadd.f32 %v9608_v22, %v776_v0  ;;  %v9611_v0 = vld [vmem:[#allocation67_spill] sm:$0xff]  ;;  %v9612_v53 = vld [vmem:[#allocation70_spill] sm:$0xff] }
 0x240   : > { %v1021_v46 = vadd.f32 %v9609_v19, %v993_v42  ;;  %v7886_v43 = vsub.f32 %v1580_v11, %v7874_v56  ;;  %3680 = vrot.lane.b32.xlu1 %v7799_v12, %s6335_s30  ;;  %5717 = vmatprep.mubr.f32.mxu0 %v7877_v29  ;;  %v1076_v10 = vadd.f32 %v7631_v61, %v1048_v57  ;;  %v1535_v42 = vpop.permute.xlu1 %1534  ;;  %v9615_v27 = vld [vmem:[#allocation86_spill] sm:$0xff]  ;;  %v7916_v22 = vstv %s7866_s2  ;;  %v9618_v19 = vld [vmem:[#allocation71_spill] sm:$0xff]  ;;  %s8327_s2 = sld [smem:[#allocation2 + $0x32]] }
 0x241   : > { %v1385_v50 = vadd.f32 %v9610_v26, %v1345_v18  ;;  %v1464_v52 = vadd.f32 %v7724_v62, %v1424_v1  ;;  %v1503_v40 = vadd.f32 %v1495_v7, %v1463_v63  ;;  %5732 = vmatmul.mubr.f32.vlgmr.msra.gmra.mxu1 %v7874_v56  ;;  %v805_v30 = vadd.f32 %v9611_v0, %v777_v13  ;;  %v9614_v62 = vld [vmem:[#allocation85_spill] sm:$0xff]  ;;  %v9616_v18 = vld [vmem:[#allocation74_spill] sm:$0xff] }
 0x242   : > { %v832_v11 = vadd.f32 %v9612_v53, %v804_v16  ;;  %v1049_v12 = vadd.f32 %v9613_v20, %v1021_v46  ;;  %2926 = vrot.lane.b32.xlu0 %v7811_v34, %s6335_s30  ;;  %v7903_v61 = vand.u32 4294901760, %v7886_v43  ;;  %5752 = vmatpush3.msra.mxu1 %v9614_v62  ;;  %v1104_v48 = vadd.f32 %v7760_v41, %v1076_v10  ;;  %v1537_v63 = vpop.permute.xlu0 %1536  ;;  %v9619_v46 = vld [vmem:[#allocation78_spill] sm:$0xff]  ;;  %v9620_v53 = vld [vmem:[#allocation89_spill] sm:$0xff] }
 0x243   : > { %v1425_v7 = vadd.f32 %v7661_v23, %v1385_v50  ;;  %v1504_v57 = vadd.f32 %v1497_v9, %v1464_v52  ;;  %v1543_v13 = vadd.f32 %v1535_v42, %v1503_v40  ;;  %5753 = vmatprep.subr.mxu1 %v9615_v27  ;;  %v3307_v16 = vmul.f32 %v9578_v47, %v6755_v25 }
 0x244   : > { %v860_v58 = vadd.f32 %v9616_v18, %v832_v11  ;;  %v1077_v1 = vadd.f32 %v7684_v15, %v1049_v12  ;;  %2968 = vrot.lane.b32.xlu1 %v7816_v6, %s6335_s30  ;;  %v1670_v34 = vsub.f32 %v7886_v43, %v7903_v61  ;;  %5754 = vmatpush3.msra.mxu1 %v9615_v27  ;;  %v9617_v15 = vld [vmem:[#allocation87_spill] sm:$0xff]  ;;  %v1155_v10 = vpop.permute.xlu1 %1154 }
 0x245   : > { %v1465_v23 = vadd.f32 %v7780_v37, %v1425_v7  ;;  %v1132_v41 = vadd.f32 %v1127_v31, %v1104_v48  ;;  %v1544_v9 = vadd.f32 %v1537_v63, %v1504_v57  ;;  %5755 = vmatprep.subr.mxu1 %v9617_v15  ;;  %v833_v6 = vadd.f32 %v9618_v19, %v805_v30  ;;  %v9621_v30 = vld [vmem:[#allocation75_spill] sm:$0xff] }
 0x246   : > { %v888_v26 = vadd.f32 %v9619_v46, %v860_v58  ;;  %v1105_v50 = vadd.f32 %v7805_v60, %v1077_v1  ;;  %3312 = vrot.lane.b32.xlu0 %v7820_v5, %s6335_s30  ;;  %v7930_v37 = vand.u32 4294901760, %v1670_v34  ;;  %5756 = vmatpush3.msra.mxu1 %v9617_v15  ;;  %v1566_v52 = vrot.slane %v1543_v13, 1  ;;  %v1539_v12 = vpop.permute.xlu0 %1538  ;;  %v9623_v13 = vld [vmem:[#allocation79_spill] sm:$0xff] }
 0x247   : > { %v1505_v31 = vadd.f32 %v1499_v32, %v1465_v23  ;;  %v1567_v40 = vrot.slane %v1544_v9, 1  ;;  %v1160_v0 = vadd.f32 %v1155_v10, %v1132_v41  ;;  %5757 = vmatprep.subr.mxu1 %v9620_v53  ;;  %v861_v11 = vadd.f32 %v9621_v30, %v833_v6  ;;  %v9624_v34 = vld [vmem:[#allocation91_spill] sm:$0xff]  ;;  %v617_v9 = vld [vmem:[%s9626_s14 + $0x18] sm:$0xff]  ;;  %v616_v30 = vld [vmem:[%s9626_s14 + $0x10] sm:$0xff] }
 0x248   : > { %v1133_v20 = vadd.f32 %v1129_v54, %v1105_v50  ;;  %3314 = vrot.lane.b32.xlu1 %v3307_v16, %s6335_s30  ;;  %5718 = vmatmul.mubr.f32.vlgmr.msra.gmra.mxu0 %v7930_v37  ;;  %v3366_v60 = vmul.f32 %v7916_v22, %v6696_v38  ;;  %v7943_v7 = vstv %s7895_s3  ;;  %v9622_v54 = vld [vmem:[#allocation90_spill] sm:$0xff]  ;;  %v1157_v48 = vpop.permute.xlu1 %1156  ;;  %v3367_v57 = vmul.f32 %v7916_v22, %v6703_v44  ;;  %s8335_s3 = sld [smem:[#allocation2 + $0x30]] }
 0x249   : > { %v1568_v5 = vsel %vm1551_vm3, %v1566_v52, %v1567_v40  ;;  %v1561_v32 = vadd.f32 %v1160_v0, %v888_v26  ;;  %v1545_v42 = vadd.f32 %v1539_v12, %v1505_v31  ;;  %5758 = vmatpush3.msra.mxu1 %v9620_v53  ;;  %5738 = vmatpush3.msra.mxu0 %v9622_v54  ;;  %v7967_v46 = vstv %s7922_s5  ;;  %v9627_v26 = vld [vmem:[#allocation92_spill] sm:$0xff]  ;;  %v9632_v12 = vld [vmem:[#allocation26_spill] sm:$0xff]  ;;  %s8343_s5 = sld [smem:[#allocation2 + $0x24]] }
 0x24a   : > { %3372 = vrot.lane.b32.xlu0 %v3366_v60, %s9551_s1  ;;  %5779 = vmatprep.subr.mxu1 %v9614_v62  ;;  %v889_v18 = vadd.f32 %v9623_v13, %v861_v11  ;;  %v1161_v63 = vadd.f32 %v1157_v48, %v1133_v20  ;;  %v7955_v23 = vpop.permute.xlu0 %3172  ;;  %v3650_v41 = vmul.f32 %v7943_v7, %v6643_v4  ;;  %v7979_v0 = vand.u32 4294901760, %v617_v9 }
 0x24b   : > { %v1573_v58 = vadd.f32 %v1568_v5, %v1561_v32  ;;  %v1569_v1 = vrot.slane %v1545_v42, 1  ;;  %5739 = vmatprep.subr.mxu0 %v9624_v34  ;;  %9625 = vst [vmem:[#allocation52_spill] sm:$0xff] %v7955_v23  ;;  %v3651_v31 = vmul.f32 %v7943_v7, %v6648_v8  ;;  %v3710_v60 = vmul.f32 %v7967_v46, %v9632_v12 }
 0x24c   : > { %3374 = vrot.lane.b32.xlu1 %v3367_v57, %s9551_s1  ;;  %5740 = vmatpush3.msra.mxu0 %v9624_v34  ;;  %v1562_v6 = vadd.f32 %v1161_v63, %v889_v18  ;;  %v7973_v10 = vpop.permute.xlu1 %3174  ;;  %9630 = vst [vmem:[#allocation115_spill] sm:$0xff] %v7979_v0  ;;  %v9298_v32 = vstv %s7939_s6  ;;  %v9300_v42 = vstv %s7946_s21  ;;  %v3711_v13 = vmul.f32 %v7967_v46, %v6618_v51 }
 0x24d   : > { %v1583_v16 = vsel %vm1575_vm4, %v1573_v58, 0  ;;  %v1570_v19 = vsel %vm1551_vm3, %v1567_v40, %v1569_v1  ;;  %5741 = vmatprep.subr.mxu0 %v9627_v26  ;;  %9628 = vst [vmem:[#allocation116_spill] sm:$0xff] %v7973_v10  ;;  %v9629_v40 = vld [vmem:[#allocation94_spill] sm:$0xff]  ;;  %v9634_v58 = vld [vmem:[#allocation95_spill] sm:$0xff]  ;;  %v8008_v1 = vand.u32 4294901760, %v616_v30  ;;  %v8011_v63 = vsub.f32 %v617_v9, %v7979_v0 }
 0x24e   : > { %v7970_v50 = vand.u32 4294901760, %v1583_v16  ;;  %3656 = vrot.lane.b32.xlu0 %v3650_v41, %s6335_s30  ;;  %5742 = vmatpush3.msra.mxu0 %v9627_v26  ;;  %v1574_v52 = vadd.f32 %v1570_v19, %v1562_v6  ;;  %v7987_v20 = vpop.permute.xlu0 %3176  ;;  %v615_v41 = vld [vmem:[%s9626_s14 + $0x8] sm:$0xff]  ;;  %v2948_v6 = vmul.f32 %v9298_v32, %v6643_v4  ;;  %v9658_v54 = vstv %s7946_s21  ;;  %s8365_s21 = sld [smem:[#allocation2 + $0x20]] }
 0x24f   : > { %5743 = vmatprep.subr.mxu0 %v9629_v40  ;;  %9631 = vst [vmem:[#allocation132_spill] sm:$0xff] %v7987_v20  ;;  %9635 = vst [vmem:[#allocation82_spill] sm:$0xff] %v8008_v1  ;;  %v8043_v32 = vand.u32 4294901760, %v615_v41 }
 0x250   : > { %v7985_v11 = vsub.f32 %v1583_v16, %v7970_v50  ;;  %3658 = vrot.lane.b32.xlu1 %v3651_v31, %s6335_s30  ;;  %5734 = vmatprep.mubr.f32.mxu1 %v7970_v50  ;;  %v1586_v5 = vsel %vm1575_vm4, %v1574_v52, 0  ;;  %v8000_v57 = vpop.permute.xlu1 %3212  ;;  %9636 = vst [vmem:[#allocation107_spill] sm:$0xff] %v8011_v63  ;;  %v2990_v31 = vmul.f32 %v9300_v42, %v9632_v12  ;;  %v8049_v42 = vand.u32 4294901760, %v8011_v63 }
 0x251   : > { %5744 = vmatpush3.msra.mxu0 %v9629_v40  ;;  %v7997_v48 = vand.u32 4294901760, %v1586_v5  ;;  %9633 = vst [vmem:[#allocation56_spill] sm:$0xff] %v8000_v57  ;;  %9639 = vst [vmem:[#allocation128_spill] sm:$0xff] %v8043_v32  ;;  %v614_v40 = vld [vmem:[%s9626_s14] sm:$0xff]  ;;  %v8074_v10 = vsub.f32 %v615_v41, %v8043_v32  ;;  %v9647_v41 = vld [vmem:[#allocation31_spill] sm:$0xff] }
 0x252   : > { %3716 = vrot.lane.b32.xlu0 %v3710_v60, %s9551_s1  ;;  %v8005_v18 = vand.u32 4294901760, %v7985_v11  ;;  %5765 = vmatprep.subr.mxu0 %v9634_v58  ;;  %v8019_v19 = vpop.permute.xlu0 %3214  ;;  %9640 = vst [vmem:[#allocation60_spill] sm:$0xff] %v8049_v42  ;;  %v8060_v26 = vand.u32 4294901760, %v614_v40 }
 0x253   : > { %v8017_v16 = vsub.f32 %v1586_v5, %v7997_v48  ;;  %9637 = vst [vmem:[#allocation122_spill] sm:$0xff] %v8019_v19  ;;  %5735 = vmatmul.mubr.f32.gmra.mxu1 %v7997_v48  ;;  %9644 = vst [vmem:[#allocation45_spill] sm:$0xff] %v8074_v10 }
 0x254   : > { %3718 = vrot.lane.b32.xlu1 %v3711_v13, %s9551_s1  ;;  %v1680_v9 = vsub.f32 %v7985_v11, %v8005_v18  ;;  %5759 = vmatprep.mubr.f32.mxu1 %v7854_v45  ;;  %v8033_v52 = vpop.permute.xlu1 %3556  ;;  %v8041_v13 = vsub.f32 %v616_v30, %v8008_v1  ;;  %v3308_v30 = vmul.f32 %v9578_v47, %v6749_v21 }
 0x255   : > { %v8038_v5 = vand.u32 4294901760, %v8017_v16  ;;  %9641 = vst [vmem:[#allocation93_spill] sm:$0xff] %v8060_v26  ;;  %v2339_v47 = vsub.f32 %v8011_v63, %v8049_v42 }
 0x256   : > { %2952 = vrot.lane.b32.xlu0 %v2948_v6, %s6335_s30  ;;  %v8035_v60 = vand.u32 4294901760, %v1680_v9  ;;  %9638 = vst [vmem:[#allocation121_spill] sm:$0xff] %v8041_v13  ;;  %v8051_v6 = vpop.permute.xlu0 %3558  ;;  %v8071_v57 = vand.u32 4294901760, %v8041_v13 }
 0x257   : > { %v1690_v9 = vsub.f32 %v8017_v16, %v8038_v5  ;;  %5760 = vmatmul.mubr.f32.vlgmr.msra.gmra.mxu1 %v7903_v61 }
 0x258   : > { %2994 = vrot.lane.b32.xlu1 %v2990_v31, %s9551_s1  ;;  %5720 = vmatprep.mubr.f32.mxu0 %v8035_v60  ;;  %v8064_v34 = vpop.permute.xlu1 %2882  ;;  %v3368_v31 = vmul.f32 %v7916_v22, %v6709_v49  ;;  %9643 = vst [vmem:[#allocation133_spill] sm:$0xff] %v8071_v57  ;;  %v8087_v22 = vsub.f32 %v614_v40, %v8060_v26  ;;  %v9649_v40 = vld [vmem:[#allocation27_spill] sm:$0xff] }
 0x259   : > { %5762 = vmatprep.mubr.f32.mxu1 %v8005_v18  ;;  %5780 = vmatpush3.msra.mxu1 %v9614_v62  ;;  %9642 = vst [vmem:[#allocation108_spill] sm:$0xff] %v8064_v34  ;;  %v8068_v19 = vand.u32 4294901760, %v1690_v9  ;;  %v3652_v9 = vmul.f32 %v7943_v7, %v9647_v41  ;;  %v3712_v20 = vmul.f32 %v7967_v46, %v9649_v40  ;;  %v8104_v34 = vand.u32 4294901760, %v2339_v47 }
 0x25a   : > { %3316 = vrot.lane.b32.xlu0 %v3308_v30, %s6335_s30  ;;  %5781 = vmatprep.subr.mxu1 %v9615_v27  ;;  %v8081_v23 = vpop.permute.xlu0 %3216  ;;  %9646 = vst [vmem:[#allocation130_spill] sm:$0xff] %v8087_v22  ;;  %v8113_v41 = vand.u32 4294901760, %v8087_v22 }
 0x25b   : > { %5782 = vmatpush3.msra.mxu1 %v9615_v27  ;;  %9645 = vst [vmem:[#allocation49_spill] sm:$0xff] %v8081_v23  ;;  %5721 = vmatmul.mubr.f32.gmra.mxu0 %v8068_v19  ;;  %v2346_v23 = vsub.f32 %v8041_v13, %v8071_v57  ;;  %9650 = vst [vmem:[#allocation129_spill] sm:$0xff] %v8104_v34 }
 0x25c   : > { %3376 = vrot.lane.b32.xlu1 %v3368_v31, %s9551_s1  ;;  %5763 = vmatmul.mubr.f32.gmra.mxu1 %v8038_v5  ;;  %v8093_v30 = vpop.permute.xlu1 %3560  ;;  %v8098_v31 = vand.u32 4294901760, %v8074_v10  ;;  %9652 = vst [vmem:[#allocation105_spill] sm:$0xff] %v8113_v41 }
 0x25d   : > { %5783 = vmatprep.subr.mxu1 %v9617_v15  ;;  %5745 = vmatprep.mubr.f32.mxu0 %v7842_v36  ;;  %v8117_v46 = vand.u32 4294901760, %v2346_v23  ;;  %v2360_v23 = vsub.f32 %v8087_v22, %v8113_v41 }
 0x25e   : > { %9648 = vst [vmem:[#allocation28_spill] sm:$0xff] %v8098_v31  ;;  %5784 = vmatpush3.msra.mxu1 %v9617_v15  ;;  %5787 = vmatprep.mubr.f32.mxu1 %v7831_v35  ;;  %v8108_v7 = vpop.permute.xlu0 %2884 }
 0x25f   : > { %3660 = vrot.lane.b32.xlu0 %v3652_v9, %s6335_s30  ;;  %5785 = vmatprep.subr.mxu1 %v9620_v53  ;;  %9651 = vst [vmem:[#allocation64_spill] sm:$0xff] %v8108_v7  ;;  %9653 = vst [vmem:[#allocation112_spill] sm:$0xff] %v8117_v46  ;;  %v2353_v9 = vsub.f32 %v8074_v10, %v8098_v31 }
 0x260   : > { %5786 = vmatpush3.msra.mxu1 %v9620_v53  ;;  %3720 = vrot.lane.b32.xlu1 %v3712_v20, %s9551_s1  ;;  %v8119_v47 = vpop.permute.xlu1 %3192  ;;  %v9655_v20 = vstv %s7939_s6  ;;  %s8351_s6 = sld [smem:[#allocation2 + $0x2d]] }
 0x261   : > { %5746 = vmatmul.mubr.f32.vlgmr.msra.gmra.mxu0 %v7886_v43  ;;  %5788 = vmatmul.mubr.f32.vlgmr.msra.gmra.mxu1 %v7874_v56  ;;  %9654 = vst [vmem:[#allocation48_spill] sm:$0xff] %v8119_v47  ;;  %v2949_v40 = vmul.f32 %v9655_v20, %v6648_v8  ;;  %v9657_v47 = vld [vmem:[#allocation96_spill] sm:$0xff]  ;;  %v2991_v20 = vmul.f32 %v9658_v54, %v6618_v51  ;;  %v8141_v53 = vand.u32 4294901760, %v2353_v9  ;;  %v8155_v54 = vand.u32 4294901760, %v2360_v23  ;;  %v9664_v23 = vld [vmem:[#allocation99_spill] sm:$0xff] }
 0x262   : > { %5807 = vmatprep.subr.mxu1 %v8104_v34  ;;  %5748 = vmatprep.mubr.f32.mxu0 %v7985_v11  ;;  %v8130_v7 = vpop.permute.xlu0 %3194 }
 0x263   : > { %5766 = vmatpush3.msra.mxu0 %v9634_v58  ;;  %5790 = vmatprep.mubr.f32.mxu1 %v7970_v50  ;;  %9656 = vst [vmem:[#allocation53_spill] sm:$0xff] %v8130_v7  ;;  %9659 = vst [vmem:[#allocation29_spill] sm:$0xff] %v8141_v53  ;;  %v9662_v7 = vld [vmem:[#allocation97_spill] sm:$0xff] }
 0x264   : > { %5808 = vmatpush3.msra.mxu1 %v8104_v34  ;;  %2954 = vrot.lane.b32.xlu0 %v2949_v40, %s6335_s30  ;;  %v8143_v58 = vpop.permute.xlu1 %3252  ;;  %v8147_v40 = vstv %s5467_s11  ;;  %9663 = vst [vmem:[#allocation134_spill] sm:$0xff] %v8155_v54  ;;  %s8642_s11 = sld [smem:[#allocation2 + $0x35]] }
 0x265   : > { %5767 = vmatprep.subr.mxu0 %v9657_v47  ;;  %5809 = vmatprep.subr.mxu1 %v8117_v46  ;;  %9660 = vst [vmem:[#allocation68_spill] sm:$0xff] %v8143_v58  ;;  %v3346_v9 = vmul.f32 %v8147_v40, %v6673_v24  ;;  %v8203_v58 = vstv %s5489_s12  ;;  %s8694_s12 = sld [smem:[#allocation2 + $0x2f]] }
 0x266   : > { %5768 = vmatpush3.msra.mxu0 %v9657_v47  ;;  %5810 = vmatpush3.msra.mxu1 %v8117_v46  ;;  %v8151_v34 = vpop.permute.xlu0 %3254  ;;  %v8175_v47 = vstv %s5470_s10  ;;  %s8673_s10 = sld [smem:[#allocation2 + $0x23]] }
 0x267   : > { %2996 = vrot.lane.b32.xlu1 %v2991_v20, %s9551_s1  ;;  %5749 = vmatmul.mubr.f32.gmra.mxu0 %v8017_v16  ;;  %9661 = vst [vmem:[#allocation118_spill] sm:$0xff] %v8151_v34 }
 0x268   : > { %5769 = vmatprep.subr.mxu0 %v9662_v7  ;;  %5791 = vmatmul.mubr.f32.gmra.mxu1 %v7997_v48  ;;  %v8161_v46 = vpop.permute.xlu1 %3596 }
 0x269   : > { %5811 = vmatprep.subr.mxu1 %v8141_v53  ;;  %5770 = vmatpush3.msra.mxu0 %v9662_v7  ;;  %v3347_v7 = vmul.f32 %v8147_v40, %v6678_v28 }
 0x26a   : > { %5773 = vmatprep.mubr.f32.mxu0 %v7831_v35  ;;  %5812 = vmatpush3.msra.mxu1 %v8141_v53  ;;  %v8167_v20 = vpop.permute.xlu0 %3598 }
 0x26b   : > { %5815 = vmatprep.mubr.f32.mxu1 %v7831_v35  ;;  %3352 = vrot.lane.b32.xlu0 %v3346_v9, %s9551_s1 }
 0x26c   : > { %5771 = vmatprep.subr.mxu0 %v9664_v23  ;;  %5813 = vmatprep.subr.mxu1 %v8155_v54  ;;  %v8177_v53 = vpop.permute.xlu1 %2910 }
 0x26d   : > { %5772 = vmatpush3.msra.mxu0 %v9664_v23  ;;  %5814 = vmatpush3.msra.mxu1 %v8155_v54  ;;  %v3406_v54 = vmul.f32 %v8175_v47, %v6723_v59  ;;  %v3407_v23 = vmul.f32 %v8175_v47, %v6730_v2 }
 0x26e   : > { %3354 = vrot.lane.b32.xlu1 %v3347_v7, %s9551_s1  ;;  %5774 = vmatmul.mubr.f32.vlgmr.msra.gmra.mxu0 %v7874_v56  ;;  %v8183_v9 = vpop.permute.xlu0 %3196 }
 0x26f   : > { %5793 = vmatprep.subr.mxu0 %v7979_v0  ;;  %5816 = vmatmul.mubr.f32.vlgmr.msra.gmra.mxu1 %v7874_v56  ;;  %9665 = vst [vmem:[#allocation57_spill] sm:$0xff] %v8183_v9 }
 0x270   : > { %5835 = vmatprep.subr.mxu1 %v7979_v0  ;;  %5776 = vmatprep.mubr.f32.mxu0 %v7970_v50  ;;  %v8191_v7 = vpop.permute.xlu1 %3256 }
 0x271   : > { %5794 = vmatpush3.msra.mxu0 %v7979_v0  ;;  %5818 = vmatprep.mubr.f32.mxu1 %v7970_v50  ;;  %9666 = vst [vmem:[#allocation131_spill] sm:$0xff] %v8191_v7  ;;  %v3690_v7 = vmul.f32 %v8203_v58, %v6657_v14 }
 0x272   : > { %5836 = vmatpush3.msra.mxu1 %v7979_v0  ;;  %3412 = vrot.lane.b32.xlu0 %v3406_v54, %s9551_s1  ;;  %v8199_v34 = vpop.permute.xlu0 %3600 }
 0x273   : > { %5795 = vmatprep.subr.mxu0 %v8008_v1  ;;  %5837 = vmatprep.subr.mxu1 %v8008_v1 }
 0x274   : > { %5796 = vmatpush3.msra.mxu0 %v8008_v1  ;;  %5838 = vmatpush3.msra.mxu1 %v8008_v1  ;;  %v8207_v54 = vpop.permute.xlu1 %2912 }
 0x275   : > { %3414 = vrot.lane.b32.xlu1 %v3407_v23, %s9551_s1  ;;  %5777 = vmatmul.mubr.f32.gmra.mxu0 %v7997_v48  ;;  %9667 = vst [vmem:[#allocation32_spill] sm:$0xff] %v8207_v54  ;;  %v3691_v54 = vmul.f32 %v8203_v58, %v9558_v39 }
 0x276   : > { %5797 = vmatprep.subr.mxu0 %v8043_v32  ;;  %5819 = vmatmul.mubr.f32.gmra.mxu1 %v7997_v48  ;;  %v8215_v9 = vpop.permute.xlu0 %3232 }
 0x277   : > { %5839 = vmatprep.subr.mxu1 %v8043_v32  ;;  %5798 = vmatpush3.msra.mxu0 %v8043_v32  ;;  %9668 = vst [vmem:[#allocation72_spill] sm:$0xff] %v8215_v9  ;;  %v2829_v9 = vstv %s8295_s23  ;;  %s9766_s23 = sld [smem:[#allocation18_spill]] }
 0x278   : > { %5801 = vmatprep.mubr.f32.mxu0 %v7877_v29  ;;  %5840 = vmatpush3.msra.mxu1 %v8043_v32  ;;  %v8221_v23 = vpop.permute.xlu1 %3234  ;;  %v8231_v29 = vstv %s5492_s13  ;;  %s8699_s13 = sld [smem:[#allocation2 + $0x1d]] }
 0x279   : > { %5843 = vmatprep.mubr.f32.mxu1 %v7854_v45  ;;  %3696 = vrot.lane.b32.xlu0 %v3690_v7, %s6335_s30  ;;  %9669 = vst [vmem:[#allocation83_spill] sm:$0xff] %v8221_v23 }
 0x27a   : > { %5799 = vmatprep.subr.mxu0 %v8060_v26  ;;  %5841 = vmatprep.subr.mxu1 %v8060_v26  ;;  %v8233_v45 = vpop.permute.xlu0 %3292 }
 0x27b   : > { %5800 = vmatpush3.msra.mxu0 %v8060_v26  ;;  %5842 = vmatpush3.msra.mxu1 %v8060_v26  ;;  %9670 = vst [vmem:[#allocation124_spill] sm:$0xff] %v8233_v45  ;;  %v3750_v45 = vmul.f32 %v8231_v29, %v9544_v17 }
 0x27c   : > { %3698 = vrot.lane.b32.xlu1 %v3691_v54, %s6335_s30  ;;  %5802 = vmatmul.mubr.f32.vlgmr.msra.gmra.mxu0 %v7930_v37  ;;  %v8241_v7 = vpop.permute.xlu1 %3294 }
 0x27d   : > { %5821 = vmatprep.subr.mxu0 %v8011_v63  ;;  %5844 = vmatmul.mubr.f32.vlgmr.msra.gmra.mxu1 %v7903_v61  ;;  %9671 = vst [vmem:[#allocation61_spill] sm:$0xff] %v8241_v7  ;;  %v3751_v61 = vmul.f32 %v8231_v29, %v9552_v55 }
 0x27e   : > { %5863 = vmatprep.subr.mxu1 %v7979_v0  ;;  %5804 = vmatprep.mubr.f32.mxu0 %v8035_v60  ;;  %v8249_v37 = vpop.permute.xlu0 %3576 }
 0x27f   : > { %5822 = vmatpush3.msra.mxu0 %v8011_v63  ;;  %5846 = vmatprep.mubr.f32.mxu1 %v8005_v18  ;;  %9672 = vst [vmem:[#allocation76_spill] sm:$0xff] %v8249_v37  ;;  %v9320_v18 = vstv %s8227_s20 }
 0x280   : > { %5864 = vmatpush3.msra.mxu1 %v7979_v0  ;;  %3756 = vrot.lane.b32.xlu0 %v3750_v45, %s9551_s1  ;;  %v8259_v60 = vpop.permute.xlu1 %3578  ;;  %v2976_v45 = vmul.f32 %v9320_v18, %v6657_v14  ;;  %v3133_v18 = vstv %s8261_s8  ;;  %v9675_v0 = vld [vmem:[#allocation39_spill] sm:$0xff]  ;;  %s5449_s8 = sld [smem:[#allocation2 + $0x41]] }
 0x281   : > { %5823 = vmatprep.subr.mxu0 %v8041_v13  ;;  %5865 = vmatprep.subr.mxu1 %v8008_v1  ;;  %9673 = vst [vmem:[#allocation98_spill] sm:$0xff] %v8259_v60 }
 0x282   : > { %5824 = vmatpush3.msra.mxu0 %v8041_v13  ;;  %5866 = vmatpush3.msra.mxu1 %v8008_v1  ;;  %v8270_v54 = vpop.permute.xlu0 %3636  ;;  %v9325_v13 = vstv %s8239_s25  ;;  %v9674_v1 = vld [vmem:[#allocation36_spill] sm:$0xff] }
 0x283   : > { %3758 = vrot.lane.b32.xlu1 %v3751_v61, %s9551_s1  ;;  %5805 = vmatmul.mubr.f32.gmra.mxu0 %v8068_v19  ;;  %v3018_v61 = vmul.f32 %v9325_v13, %v9544_v17  ;;  %v3348_v13 = vmul.f32 %v8147_v40, %v6687_v33 }
 0x284   : > { %5825 = vmatprep.subr.mxu0 %v8074_v10  ;;  %5847 = vmatmul.mubr.f32.gmra.mxu1 %v8038_v5  ;;  %v8280_v63 = vpop.permute.xlu1 %3638  ;;  %v3117_v5 = vstv %s5452_s26  ;;  %s8755_s26 = sld [smem:[#allocation2 + $0x38]] }
 0x285   : > { %5867 = vmatprep.subr.mxu1 %v8043_v32  ;;  %5826 = vmatpush3.msra.mxu0 %v8074_v10  ;;  %v3118_v10 = vmul.f32 %v3117_v5, %v6696_v38  ;;  %v3120_v37 = vmul.f32 %v3117_v5, %v6709_v49 }
 0x286   : > { %5829 = vmatprep.mubr.f32.mxu0 %v7842_v36  ;;  %5868 = vmatpush3.msra.mxu1 %v8043_v32  ;;  %v8286_v19 = vpop.permute.xlu0 %2896  ;;  %v3149_v32 = vstv %s8266_s28 }
 0x287   : > { %5871 = vmatprep.mubr.f32.mxu1 %v7831_v35  ;;  %2980 = vrot.lane.b32.xlu0 %v2976_v45, %s6335_s30  ;;  %v3101_v45 = vstv %s8253_s4  ;;  %v8358_v23 = vmul.f32 %v3149_v32, %v6755_v25  ;;  %s5497_s4 = sld [smem:[#allocation2 + $0x47]] }
 0x288   : > { %5827 = vmatprep.subr.mxu0 %v8087_v22  ;;  %5869 = vmatprep.subr.mxu1 %v8060_v26 }
 0x289   : > { %5828 = vmatpush3.msra.mxu0 %v8087_v22  ;;  %5870 = vmatpush3.msra.mxu1 %v8060_v26  ;;  %v8299_v36 = vpop.permute.xlu1 %2938  ;;  %v3134_v26 = vmul.f32 %v3133_v18, %v6723_v59 }
 0x28a   : > { %3022 = vrot.lane.b32.xlu1 %v3018_v61, %s9551_s1  ;;  %5830 = vmatmul.mubr.f32.vlgmr.msra.gmra.mxu0 %v7886_v43  ;;  %v3408_v43 = vmul.f32 %v8175_v47, %v6733_v3  ;;  %v3102_v61 = vmul.f32 %v3101_v45, %v6673_v24  ;;  %v3567_v47 = vadd.f32 %v8093_v30, %v9675_v0  ;;  %v2841_v0 = vstv %s8288_s0 }
 0x28b   : > { %5849 = vmatprep.subr.mxu0 %v8049_v42  ;;  %5872 = vmatmul.mubr.f32.vlgmr.msra.gmra.mxu1 %v7874_v56  ;;  %v8315_v22 = vpop.permute.xlu0 %3236 }
 0x28c   : > { %5832 = vmatprep.mubr.f32.mxu0 %v7985_v11  ;;  %5850 = vmatpush3.msra.mxu0 %v8049_v42  ;;  %v3150_v11 = vmul.f32 %v3149_v32, %v9674_v1  ;;  %v3103_v42 = vmul.f32 %v3101_v45, %v6678_v28  ;;  %v3121_v60 = vadd.f32 %v3118_v10, %v3102_v61  ;;  %v9676_v10 = vld [vmem:[#allocation33_spill] sm:$0xff] }
 0x28d   : > { %5874 = vmatprep.mubr.f32.mxu1 %v7970_v50  ;;  %3356 = vrot.lane.b32.xlu0 %v3348_v13, %s9551_s1  ;;  %v8329_v40 = vpop.permute.xlu1 %3296  ;;  %v3119_v13 = vmul.f32 %v3117_v5, %v6703_v44  ;;  %v3607_v30 = vadd.f32 %v8199_v34, %v3567_v47  ;;  %v9677_v5 = vld [vmem:[#allocation44_spill] sm:$0xff]  ;;  %v9678_v34 = vld [vmem:[#allocation30_spill] sm:$0xff]  ;;  %v3104_v47 = vmul.f32 %v3101_v45, %v6687_v33 }
 0x28e   : > { %5851 = vmatprep.subr.mxu0 %v8071_v57  ;;  %3416 = vrot.lane.b32.xlu1 %v3408_v43, %s9551_s1  ;;  %v3692_v43 = vmul.f32 %v8203_v58, %v9676_v10  ;;  %v2842_v10 = vmul.f32 %v2841_v0, %v9544_v17 }
 0x28f   : > { %5852 = vmatpush3.msra.mxu0 %v8071_v57  ;;  %5875 = vmatmul.mubr.f32.gmra.mxu1 %v7997_v48  ;;  %v3581_v7 = vpop.permute.xlu0 %3580  ;;  %v3135_v57 = vmul.f32 %v3133_v18, %v6730_v2  ;;  %v3122_v45 = vadd.f32 %v3119_v13, %v3103_v42  ;;  %v9683_v42 = vstv %s8239_s25  ;;  %v8399_v13 = vstv %s8327_s2  ;;  %s5495_s25 = sld [smem:[#allocation2 + $0x3e]] }
 0x290   : > { %5833 = vmatmul.mubr.f32.gmra.mxu0 %v8017_v16  ;;  %5853 = vmatprep.subr.mxu0 %v8098_v31  ;;  %v8354_v61 = vadd.f32 %v3581_v7, %v9677_v5  ;;  %v3752_v16 = vmul.f32 %v8231_v29, %v9678_v34  ;;  %v3136_v7 = vmul.f32 %v3133_v18, %v6733_v3  ;;  %v2853_v5 = vstv %s8303_s29 }
 0x291   : > { %5854 = vmatpush3.msra.mxu0 %v8098_v31  ;;  %5857 = vmatprep.mubr.f32.mxu0 %v7831_v35  ;;  %v3641_v58 = vpop.permute.xlu1 %3640  ;;  %v3137_v31 = vadd.f32 %v3134_v26, %v3121_v60  ;;  %v3152_v29 = vmul.f32 %v3149_v32, %v6749_v21  ;;  %v2865_v34 = vstv %s8309_s27  ;;  %v9681_v26 = vstv %s8227_s20  ;;  %v9682_v60 = vld [vmem:[#allocation101_spill] sm:$0xff]  ;;  %s5473_s20 = sld [smem:[#allocation2 + $0x44]]  ;;  %s5515_s27 = sshll.u32 %s9766_s23, 11 }
 0x292   : > { %3700 = vrot.lane.b32.xlu0 %v3692_v43, %s6335_s30  ;;  %5855 = vmatprep.subr.mxu0 %v8113_v41  ;;  %v8374_v35 = vadd.f32 %v3641_v58, %v3607_v30  ;;  %v3123_v43 = vadd.f32 %v3120_v37, %v3104_v47  ;;  %v2977_v32 = vmul.f32 %v9681_v26, %v9558_v39 }
 0x293   : > { %5856 = vmatpush3.msra.mxu0 %v8113_v41  ;;  %3760 = vrot.lane.b32.xlu1 %v3752_v16, %s9551_s1  ;;  %v2830_v30 = vmul.f32 %v2829_v9, %v9632_v12  ;;  %v2854_v58 = vmul.f32 %v2853_v5, %v6643_v4  ;;  %v3019_v37 = vmul.f32 %v9683_v42, %v9552_v55  ;;  %v8411_v41 = vstv %s8317_s17 }
 0x294   : > { %9679 = vst [vmem:[#allocation137_spill] sm:$0xff] %v8374_v35  ;;  %v8382_v18 = vpop.permute.xlu0 %2898  ;;  %5858 = vmatmul.mubr.f32.vlgmr.msra.gmra.mxu0 %v7874_v56  ;;  %5891 = vmatprep.subr.mxu1 %v9682_v60  ;;  %v8406_v16 = vadd.f32 %v3150_v11, %v3137_v31  ;;  %v8408_v47 = vadd.f32 %v3135_v57, %v3122_v45 }
 0x295   : > { %9680 = vst [vmem:[#allocation65_spill] sm:$0xff] %v8382_v18  ;;  %5860 = vmatprep.mubr.f32.mxu0 %v7970_v50  ;;  %5892 = vmatpush3.msra.mxu1 %v9682_v60  ;;  %v3139_v26 = vadd.f32 %v3136_v7, %v3123_v43  ;;  %v9685_v50 = vld [vmem:[#allocation102_spill] sm:$0xff]  ;;  %v2844_v42 = vadd.f32 %v2842_v10, %v2830_v30  ;;  %v9342_v10 = vstv %s8351_s6  ;;  %v9686_v7 = vld [vmem:[#allocation104_spill] sm:$0xff]  ;;  %v8442_v43 = vstv %s8365_s21 }
 0x296   : > { %v8403_v56 = vpop.permute.xlu1 %2940  ;;  %2982 = vrot.lane.b32.xlu0 %v2977_v32, %s6335_s30  ;;  %5893 = vmatprep.subr.mxu1 %v9685_v50  ;;  %v2866_v35 = vmul.f32 %v2865_v34, %v6657_v14  ;;  %v2843_v18 = vmul.f32 %v2841_v0, %v9552_v55  ;;  %v2831_v11 = vmul.f32 %v2829_v9, %v6618_v51  ;;  %s8433_s30 = sld [smem:[#allocation2 + $0x1a]]  ;;  %v9344_v30 = vstv %s8372_s22 }
 0x297   : > { %9684 = vst [vmem:[#allocation125_spill] sm:$0xff] %v8403_v56  ;;  %v8418_v56 = vstv %s8335_s3  ;;  %3024 = vrot.lane.b32.xlu1 %v3019_v37, %s9551_s1  ;;  %5894 = vmatpush3.msra.mxu1 %v9685_v50  ;;  %v8426_v31 = vadd.f32 %v3152_v29, %v3139_v26  ;;  %v3386_v0 = vmul.f32 %v8399_v13, %v6696_v38  ;;  %v8462_v50 = vstv %s8378_s24  ;;  %s6337_s24 = smov [#allocation10]  }
 0x298   : > { %v8423_v57 = vpop.permute.xlu0 %3272  ;;  %5861 = vmatmul.mubr.f32.gmra.mxu0 %v7997_v48  ;;  %5895 = vmatprep.subr.mxu1 %v9686_v7  ;;  %v2856_v45 = vadd.f32 %v2854_v58, %v2844_v42  ;;  %v8437_v29 = vmul.f32 %v2853_v5, %v6648_v8  ;;  %v3387_v9 = vmul.f32 %v8399_v13, %v6703_v44  ;;  %v9343_v5 = vstv %s8343_s5  ;;  %v9688_v58 = vld [vmem:[#allocation106_spill] sm:$0xff] }
 0x299   : > { %5896 = vmatpush3.msra.mxu1 %v9686_v7  ;;  %5877 = vmatprep.subr.mxu0 %v9614_v62  ;;  %v8449_v32 = vmul.f32 %v2865_v34, %v9558_v39  ;;  %v8453_v60 = vmul.f32 %v8411_v41, %v6673_v24  ;;  %v8459_v26 = vadd.f32 %v2843_v18, %v2831_v11  ;;  %v8511_v18 = vstv %s8420_s19 }
 0x29a   : > { %v8444_v48 = vpop.permute.xlu1 %3274  ;;  %3392 = vrot.lane.b32.xlu0 %v3386_v0, %s9551_s1  ;;  %5897 = vmatprep.subr.mxu1 %v9688_v58  ;;  %v2868_v37 = vadd.f32 %v2866_v35, %v2856_v45  ;;  %v2848_v34 = vmul.f32 %v9342_v10, %v9544_v17  ;;  %v8473_v42 = vmul.f32 %v8418_v56, %v6696_v38  ;;  %v8493_v45 = vstv %s8401_s7 }
 0x29b   : > { %9687 = vst [vmem:[#allocation69_spill] sm:$0xff] %v8444_v48  ;;  %3394 = vrot.lane.b32.xlu1 %v3387_v9, %s9551_s1  ;;  %5898 = vmatpush3.msra.mxu1 %v9688_v58  ;;  %v3128_v35 = vmul.f32 %v8418_v56, %v6709_v49  ;;  %v3446_v11 = vmul.f32 %v8442_v43, %v9674_v1  ;;  %v9691_v58 = vld [vmem:[#allocation37_spill] sm:$0xff] }
 0x29c   : > { %v8468_v24 = vpop.permute.xlu0 %3332  ;;  %5878 = vmatpush3.msra.mxu0 %v9614_v62  ;;  %5919 = vmatprep.subr.mxu1 %v9614_v62  ;;  %v2836_v0 = vmul.f32 %v9343_v5, %v9632_v12  ;;  %v2860_v38 = vmul.f32 %v9344_v30, %v6643_v4  ;;  %v3447_v7 = vmul.f32 %v8442_v43, %v6755_v25 }
 0x29d   : > { %9689 = vst [vmem:[#allocation138_spill] sm:$0xff] %v8468_v24  ;;  %5879 = vmatprep.subr.mxu0 %v9615_v27  ;;  %v3565_v10 = vadd.f32 %v8033_v52, %v9691_v58  ;;  %v8504_v5 = vmul.f32 %v8462_v50, %v6723_v59  ;;  %v3112_v30 = vmul.f32 %v8411_v41, %v6687_v33  ;;  %v9692_v24 = vstv %s8389_s16  ;;  %v9693_v33 = vld [vmem:[#allocation38_spill] sm:$0xff] }
 0x29e   : > { %v8497_v9 = vpop.permute.xlu1 %3334  ;;  %3452 = vrot.lane.b32.xlu0 %v3446_v11, %s9551_s1  ;;  %5880 = vmatpush3.msra.mxu0 %v9615_v27  ;;  %v3144_v62 = vmul.f32 %v8462_v50, %v6733_v3  ;;  %v2872_v52 = vmul.f32 %v9692_v24, %v6657_v14  ;;  %v3566_v11 = vadd.f32 %v8051_v6, %v9693_v33  ;;  %v8528_v59 = vstv %s8433_s30  ;;  %v9694_v6 = vld [vmem:[#allocation89_spill] sm:$0xff] }
 0x29f   : > { %9690 = vst [vmem:[#allocation139_spill] sm:$0xff] %v8497_v9  ;;  %v2850_v9 = vadd.f32 %v2848_v34, %v2836_v0  ;;  %3454 = vrot.lane.b32.xlu1 %v3447_v7, %s9551_s1  ;;  %5881 = vmatprep.subr.mxu0 %v9617_v15  ;;  %v3605_v27 = vadd.f32 %v8161_v46, %v3565_v10 }
 0x2a0   : > { %v8519_v58 = vpop.permute.xlu0 %3616  ;;  %v3730_v48 = vmul.f32 %v8493_v45, %v9632_v12  ;;  %5882 = vmatpush3.msra.mxu0 %v9617_v15  ;;  %v3131_v34 = vadd.f32 %v3128_v35, %v3112_v30  ;;  %v3160_v24 = vmul.f32 %v8511_v18, %v6749_v21  ;;  %v3731_v7 = vmul.f32 %v8493_v45, %v6618_v51  ;;  %v9695_v15 = vld [vmem:[#allocation90_spill] sm:$0xff] }
 0x2a1   : > { %v2862_v0 = vadd.f32 %v2860_v38, %v2850_v9  ;;  %5883 = vmatprep.subr.mxu0 %v9694_v6  ;;  %v3111_v46 = vmul.f32 %v8411_v41, %v6678_v28  ;;  %v3606_v10 = vadd.f32 %v8167_v20, %v3566_v11  ;;  %v3645_v33 = vadd.f32 %v8270_v54, %v3605_v27  ;;  %v9696_v28 = vld [vmem:[#allocation108_spill] sm:$0xff] }
 0x2a2   : > { %v8535_v3 = vpop.permute.xlu1 %3618  ;;  %3736 = vrot.lane.b32.xlu0 %v3730_v48, %s9551_s1  ;;  %5884 = vmatpush3.msra.mxu0 %v9694_v6  ;;  %v3147_v30 = vadd.f32 %v3144_v62, %v3131_v34  ;;  %v3790_v38 = vmul.f32 %v8528_v59, %v6643_v4  ;;  %v2888_v41 = vadd.f32 %v9696_v28, %v2868_v37  ;;  %v3003_v20 = vstv %s8480_s15 }
 0x2a3   : > { %v2874_v35 = vadd.f32 %v2872_v52, %v2862_v0  ;;  %3738 = vrot.lane.b32.xlu1 %v3731_v7, %s9551_s1  ;;  %5905 = vmatprep.subr.mxu0 %v9695_v15  ;;  %v3646_v27 = vadd.f32 %v8280_v63, %v3606_v10  ;;  %v3127_v62 = vmul.f32 %v8418_v56, %v6703_v44  ;;  %v3045_v11 = vstv %s8495_s9  ;;  %v9697_v0 = vld [vmem:[#allocation132_spill] sm:$0xff] }
 0x2a4   : > { %v3677_v9 = vpop.permute.xlu0 %3676  ;;  %v3163_v48 = vadd.f32 %v3160_v24, %v3147_v30  ;;  %v3791_v52 = vmul.f32 %v8528_v59, %v6648_v8  ;;  %v3183_v7 = vadd.f32 %v9697_v0, %v8426_v31  ;;  %v2916_v37 = vadd.f32 %v8177_v53, %v2888_v41 }
 0x2a5   : > { %v8551_v54 = vadd.f32 %v3677_v9, %v3645_v33  ;;  %v2902_v63 = vadd.f32 %v8286_v19, %v2874_v35  ;;  %v2857_v44 = vadd.f32 %v8437_v29, %v8459_v26  ;;  %v3129_v56 = vadd.f32 %v8473_v42, %v8453_v60  ;;  %v9699_v33 = vld [vmem:[#allocation49_spill] sm:$0xff] }
 0x2a6   : > { %v3679_v34 = vpop.permute.xlu1 %3678  ;;  %3796 = vrot.lane.b32.xlu0 %v3790_v38, %s9551_s1  ;;  %v9698_v24 = vstv %s8351_s6  ;;  %v3004_v53 = vmul.f32 %v3003_v20, %v9632_v12  ;;  %v3223_v30 = vadd.f32 %v9699_v33, %v3183_v7  ;;  %v9700_v35 = vld [vmem:[#allocation57_spill] sm:$0xff]  ;;  %v2944_v29 = vadd.f32 %v8299_v36, %v2916_v37 }
 0x2a7   : > { %v8563_v10 = vadd.f32 %v3679_v34, %v3646_v27  ;;  %v2849_v31 = vmul.f32 %v9698_v24, %v9552_v55  ;;  %3798 = vrot.lane.b32.xlu1 %v3791_v52, %s9551_s1  ;;  %v3203_v38 = vadd.f32 %v9700_v35, %v3163_v48  ;;  %v3158_v60 = vmul.f32 %v8511_v18, %v9674_v1  ;;  %v9702_v52 = vld [vmem:[#allocation131_spill] sm:$0xff] }
 0x2a8   : > { %v2925_v19 = vpop.permute.xlu0 %2924  ;;  %v3143_v42 = vmul.f32 %v8462_v50, %v6730_v2  ;;  %v9701_v9 = vstv %s8343_s5  ;;  %v3046_v41 = vmul.f32 %v3045_v11, %v6643_v4  ;;  %v3263_v48 = vadd.f32 %v9702_v52, %v3223_v30  ;;  %s9768_s5 = sld [smem:[#allocation149_spill]] }
 0x2a9   : > { %v8579_v26 = vadd.f32 %v2925_v19, %v2902_v63  ;;  %v2837_v28 = vmul.f32 %v9701_v9, %v6618_v51  ;;  %v3243_v34 = vadd.f32 %v8315_v22, %v3203_v38  ;;  %v9703_v36 = vstv %s8372_s22  ;;  %v9706_v9 = vld [vmem:[#allocation40_spill] sm:$0xff] }
 0x2aa   : > { %v2967_v27 = vpop.permute.xlu1 %2966  ;;  %v2861_v0 = vmul.f32 %v9703_v36, %v6648_v8  ;;  %3008 = vrot.lane.b32.xlu0 %v3004_v53, %s9551_s1  ;;  %v3145_v50 = vadd.f32 %v8504_v5, %v3129_v56  ;;  %v3130_v37 = vadd.f32 %v3127_v62, %v3111_v46  ;;  %v3159_v63 = vmul.f32 %v8511_v18, %v6755_v25  ;;  %v9705_v46 = vld [vmem:[#allocation41_spill] sm:$0xff] }
 0x2ab   : > { %v8597_v7 = vadd.f32 %v2967_v27, %v2944_v29  ;;  %v9704_v24 = vstv %s8389_s16  ;;  %3050 = vrot.lane.b32.xlu1 %v3046_v41, %s9551_s1  ;;  %v3303_v33 = vadd.f32 %v8329_v40, %v3263_v48  ;;  %v2851_v30 = vadd.f32 %v2849_v31, %v2837_v28  ;;  %v9708_v28 = vld [vmem:[#allocation43_spill] sm:$0xff]  ;;  %s6240_s16 = sshll.u32 %s6337_s24, 4  ;;  %s6241_s16 = int_to_ptr.vmem [resolvable:$false] %s6240_s16 }
 0x2ac   : > { %v2873_v19 = vmul.f32 %v9704_v24, %v9558_v39  ;;  %v3277_v22 = vpop.permute.xlu0 %3276  ;;  %v3388_v53 = vmul.f32 %v8399_v13, %v6709_v49  ;;  %v3154_v5 = vadd.f32 %v8358_v23, %v8408_v47  ;;  %v3146_v18 = vadd.f32 %v3143_v42, %v3130_v37  ;;  %v9707_v47 = vld [vmem:[#allocation42_spill] sm:$0xff]  ;;  %v9710_v27 = vld [vmem:[#allocation27_spill] sm:$0xff]  ;;  %v9713_v24 = vld [vmem:[#allocation48_spill] sm:$0xff]  ;;  %s6242_s7 = scalar_lea.vmem %s6241_s16, 4096 }
 0x2ad   : > { %v8611_v35 = vadd.f32 %v3277_v22, %v3243_v34  ;;  %v3510_v62 = vmul.f32 %v9705_v46, %v9544_v17  ;;  %v3448_v56 = vmul.f32 %v8442_v43, %v6749_v21  ;;  %v2869_v29 = vadd.f32 %v8449_v32, %v2857_v44  ;;  %v9709_v32 = vld [vmem:[#allocation64_spill] sm:$0xff] }
 0x2ae   : > { %v3337_v38 = vpop.permute.xlu1 %3336  ;;  %v3161_v40 = vadd.f32 %v3158_v60, %v3145_v50  ;;  %v2863_v31 = vadd.f32 %v2861_v0, %v2851_v30  ;;  %3396 = vrot.lane.b32.xlu0 %v3388_v53, %s9551_s1  ;;  %v3162_v13 = vadd.f32 %v3159_v63, %v3146_v18  ;;  %v3494_v23 = vmul.f32 %v9706_v9, %v9632_v12  ;;  %v9711_v12 = vld [vmem:[#allocation52_spill] sm:$0xff]  ;;  %v9712_v50 = vld [vmem:[#allocation31_spill] sm:$0xff]  ;;  %s9151_s6 = scalar_lea.hbm %s9768_s5, %s5515_s27 }
 0x2af   : > { %v8621_v49 = vadd.f32 %v3337_v38, %v3303_v33  ;;  %v3526_v42 = vmul.f32 %v9707_v47, %v6643_v4  ;;  %v3542_v41 = vmul.f32 %v9708_v28, %v6657_v14  ;;  %3456 = vrot.lane.b32.xlu1 %v3448_v56, %s9551_s1  ;;  %v2889_v44 = vadd.f32 %v9709_v32, %v2869_v29  ;;  %v9717_v53 = vld [vmem:[#allocation116_spill] sm:$0xff]  ;;  %v9719_v29 = vld [vmem:[#allocation53_spill] sm:$0xff] }
 0x2b0   : > { %v3621_v43 = vpop.permute.xlu0 %3620  ;;  %v2875_v60 = vadd.f32 %v2873_v19, %v2863_v31  ;;  %v3732_v52 = vmul.f32 %v8493_v45, %v9710_v27  ;;  %v3181_v34 = vadd.f32 %v9711_v12, %v8406_v16  ;;  %v3513_v36 = vadd.f32 %v3510_v62, %v3494_v23  ;;  %v9714_v19 = vld [vmem:[#allocation32_spill] sm:$0xff]  ;;  %v9716_v16 = vld [vmem:[#allocation137_spill] sm:$0xff] }
 0x2b1   : > { %v8634_v48 = vadd.f32 %v3621_v43, %v8354_v61  ;;  %v3511_v0 = vmul.f32 %v9705_v46, %v9552_v55  ;;  %v3792_v37 = vmul.f32 %v8528_v59, %v9712_v50  ;;  %v3201_v45 = vadd.f32 %v9713_v24, %v3161_v40  ;;  %v9715_v61 = vld [vmem:[#allocation65_spill] sm:$0xff]  ;;  %v9718_v46 = vld [vmem:[#allocation56_spill] sm:$0xff] }
 0x2b2   : > { %v3681_v63 = vpop.permute.xlu1 %3680  ;;  %v2917_v22 = vadd.f32 %v9714_v19, %v2889_v44  ;;  %v2903_v33 = vadd.f32 %v9715_v61, %v2875_v60  ;;  %3740 = vrot.lane.b32.xlu0 %v3732_v52, %s9551_s1  ;;  %v3182_v18 = vadd.f32 %v9717_v53, %v3154_v5  ;;  %v3221_v62 = vadd.f32 %v9718_v46, %v3181_v34  ;;  %v9720_v31 = vld [vmem:[#allocation72_spill] sm:$0xff]  ;;  %v9721_v43 = vld [vmem:[#allocation125_spill] sm:$0xff]  ;;  %v9722_v60 = vld [vmem:[#allocation122_spill] sm:$0xff] }
 0x2b3   : > { %v8649_v30 = vadd.f32 %v3681_v63, %v9716_v16  ;;  %3800 = vrot.lane.b32.xlu1 %v3792_v37, %s9551_s1  ;;  %v3005_v59 = vmul.f32 %v3003_v20, %v6618_v51  ;;  %v8658_v56 = vstv %s8606_s18  ;;  %v3202_v40 = vadd.f32 %v9719_v29, %v3162_v13  ;;  %v9723_v12 = vld [vmem:[#allocation68_spill] sm:$0xff]  ;;  %v9724_v37 = vld [vmem:[#allocation83_spill] sm:$0xff]  ;;  %v9726_v61 = vld [vmem:[#allocation118_spill] sm:$0xff] }
 0x2b4   : > { %v2927_v38 = vpop.permute.xlu0 %2926  ;;  %v3241_v23 = vadd.f32 %v9720_v31, %v3201_v45  ;;  %v2945_v32 = vadd.f32 %v9721_v43, %v2917_v22  ;;  %v3222_v5 = vadd.f32 %v9722_v60, %v3182_v18  ;;  %v3495_v27 = vmul.f32 %v9706_v9, %v6618_v51  ;;  %v9727_v16 = vld [vmem:[#allocation124_spill] sm:$0xff]  ;;  %v9730_v29 = vld [vmem:[#allocation138_spill] sm:$0xff]  ;;  %v9732_v60 = vld [vmem:[#allocation139_spill] sm:$0xff] }
 0x2b5   : > { %v8663_v44 = vadd.f32 %v2927_v38, %v2903_v33  ;;  %v3527_v52 = vmul.f32 %v9707_v47, %v6648_v8  ;;  %v3047_v20 = vmul.f32 %v3045_v11, %v6648_v8  ;;  %v3261_v34 = vadd.f32 %v9723_v12, %v3221_v62  ;;  %v9725_v11 = vld [vmem:[#allocation34_spill] sm:$0xff]  ;;  %v9731_v43 = vld [vmem:[#allocation76_spill] sm:$0xff] }
 0x2b6   : > { %v2969_v13 = vpop.permute.xlu1 %2968  ;;  %v3242_v63 = vadd.f32 %v9724_v37, %v3202_v40  ;;  %v3281_v24 = vadd.f32 %v8423_v57, %v3241_v23  ;;  %3010 = vrot.lane.b32.xlu0 %v3005_v59, %s9551_s1  ;;  %v3529_v51 = vadd.f32 %v3526_v42, %v3513_v36  ;;  %v3514_v9 = vadd.f32 %v3511_v0, %v3495_v27  ;;  %v9728_v57 = vld [vmem:[#allocation69_spill] sm:$0xff]  ;;  %v9733_v12 = vld [vmem:[#allocation98_spill] sm:$0xff] }
 0x2b7   : > { %v8679_v45 = vadd.f32 %v2969_v13, %v2945_v32  ;;  %v3543_v47 = vmul.f32 %v9708_v28, %v9558_v39  ;;  %3052 = vrot.lane.b32.xlu1 %v3047_v20, %s9551_s1  ;;  %v3426_v19 = vmul.f32 %v8658_v56, %v9725_v11  ;;  %v3262_v33 = vadd.f32 %v9726_v61, %v3222_v5  ;;  %v9729_v0 = vld [vmem:[#allocation61_spill] sm:$0xff] }
 0x2b8   : > { %v3313_v22 = vpop.permute.xlu0 %3312  ;;  %v3301_v53 = vadd.f32 %v9727_v16, %v3261_v34  ;;  %v3282_v18 = vadd.f32 %v9728_v57, %v3242_v63  ;;  %v3530_v62 = vadd.f32 %v3527_v52, %v3514_v9  ;;  %v3427_v42 = vmul.f32 %v8658_v56, %v6730_v2 }
 0x2b9   : > { %v8689_v46 = vadd.f32 %v3313_v22, %v3281_v24  ;;  %v3769_v36 = vstv %s8642_s11  ;;  %v3302_v59 = vadd.f32 %v9729_v0, %v3262_v33  ;;  %v3545_v38 = vadd.f32 %v3542_v41, %v3529_v51 }
 0x2ba   : > { %v3315_v28 = vpop.permute.xlu1 %3314  ;;  %v3341_v40 = vadd.f32 %v9730_v29, %v3301_v53  ;;  %3432 = vrot.lane.b32.xlu0 %v3426_v19, %s9551_s1  ;;  %v3546_v23 = vadd.f32 %v3543_v47, %v3530_v62  ;;  %v3770_v27 = vmul.f32 %v3769_v36, %v9544_v17  ;;  %v3771_v52 = vmul.f32 %v3769_v36, %v9552_v55 }
 0x2bb   : > { %v8701_v31 = vadd.f32 %v3315_v28, %v3282_v18  ;;  %3434 = vrot.lane.b32.xlu1 %v3427_v42, %s9551_s1  ;;  %v3585_v32 = vadd.f32 %v9731_v43, %v3545_v38  ;;  %v3342_v5 = vadd.f32 %v9732_v60, %v3302_v59  ;;  %v3829_v20 = vstv %s8673_s10  ;;  %v9734_v42 = vld [vmem:[#allocation35_spill] sm:$0xff] }
 0x2bc   : > { %v3373_v2 = vpop.permute.xlu0 %3372  ;;  %v3586_v34 = vadd.f32 %v9733_v12, %v3546_v23  ;;  %v3830_v9 = vmul.f32 %v3829_v20, %v6657_v14  ;;  %v3831_v11 = vmul.f32 %v3829_v20, %v9558_v39  ;;  %v3031_v19 = vstv %s8694_s12 }
 0x2bd   : > { %v8707_v41 = vadd.f32 %v3373_v2, %v3341_v40  ;;  %v3625_v37 = vadd.f32 %v8519_v58, %v3585_v32  ;;  %v3073_v58 = vstv %s8699_s13  ;;  %v3032_v16 = vmul.f32 %v3031_v19, %v9544_v17 }
 0x2be   : > { %v3375_v13 = vpop.permute.xlu1 %3374  ;;  %3776 = vrot.lane.b32.xlu0 %v3770_v27, %s9551_s1  ;;  %v3626_v51 = vadd.f32 %v8535_v3, %v3586_v34  ;;  %v3074_v53 = vmul.f32 %v3073_v58, %v6657_v14  ;;  %v3428_v28 = vmul.f32 %v8658_v56, %v9734_v42  ;;  %v3033_v23 = vmul.f32 %v3031_v19, %v9552_v55 }
 0x2bf   : > { %v8714_v63 = vadd.f32 %v3375_v13, %v3342_v5  ;;  %3778 = vrot.lane.b32.xlu1 %v3771_v52, %s9551_s1  ;;  %v3075_v2 = vmul.f32 %v3073_v58, %v9558_v39  ;;  %v3059_v52 = vstv %s8755_s26 }
 0x2c0   : > { %v3657_v24 = vpop.permute.xlu0 %3656  ;;  %v3060_v13 = vmul.f32 %v3059_v52, %v6643_v4 }
 0x2c1   : > { %v8719_v47 = vadd.f32 %v3657_v24, %v3625_v37 }
 0x2c2   : > { %v3659_v22 = vpop.permute.xlu1 %3658  ;;  %3836 = vrot.lane.b32.xlu0 %v3830_v9, %s9551_s1 }
 0x2c3   : > { %v8725_v61 = vadd.f32 %v3659_v22, %v3626_v51  ;;  %3838 = vrot.lane.b32.xlu1 %v3831_v11, %s9551_s1 }
 0x2c4   : > { %v3717_v33 = vpop.permute.xlu0 %3716 }
 0x2c5   : > { %v8730_v3 = vadd.f32 %v3717_v33, %v8551_v54  ;;  %v9735_v54 = vld [vmem:[#allocation30_spill] sm:$0xff] }
 0x2c6   : > { %v3719_v57 = vpop.permute.xlu1 %3718  ;;  %3036 = vrot.lane.b32.xlu0 %v3032_v16, %s9551_s1  ;;  %v3772_v0 = vmul.f32 %v3769_v36, %v9735_v54  ;;  %v3465_v36 = vstv %s5473_s20 }
 0x2c7   : > { %v8735_v18 = vadd.f32 %v3719_v57, %v8563_v10  ;;  %3078 = vrot.lane.b32.xlu1 %v3074_v53, %s9551_s1  ;;  %v9736_v10 = vld [vmem:[#allocation33_spill] sm:$0xff]  ;;  %v3466_v43 = vmul.f32 %v3465_v36, %v9674_v1 }
 0x2c8   : > { %v2953_v62 = vpop.permute.xlu0 %2952  ;;  %v3832_v29 = vmul.f32 %v3829_v20, %v9736_v10 }
 0x2c9   : > { %v8741_v17 = vadd.f32 %v2953_v62, %v8579_v26 }
 0x2ca   : > { %v2995_v59 = vpop.permute.xlu1 %2994  ;;  %3436 = vrot.lane.b32.xlu0 %v3428_v28, %s9551_s1 }
 0x2cb   : > { %v8746_v38 = vadd.f32 %v2995_v59, %v8597_v7  ;;  %3780 = vrot.lane.b32.xlu1 %v3772_v0, %s9551_s1 }
 0x2cc   : > { %v3317_v40 = vpop.permute.xlu0 %3316 }
 0x2cd   : > { %v8752_v56 = vadd.f32 %v3317_v40, %v8611_v35  ;;  %v3809_v35 = vstv %s5495_s25 }
 0x2ce   : > { %v3377_v26 = vpop.permute.xlu1 %3376  ;;  %3840 = vrot.lane.b32.xlu0 %v3832_v29, %s9551_s1  ;;  %v3810_v27 = vmul.f32 %v3809_v35, %v6643_v4  ;;  %v3812_v34 = vmul.f32 %v3809_v35, %v9712_v50  ;;  %v3061_v4 = vmul.f32 %v3059_v52, %v6648_v8 }
 0x2cf   : > { %v8758_v7 = vadd.f32 %v3377_v26, %v8621_v49  ;;  %3038 = vrot.lane.b32.xlu1 %v3033_v23, %s9551_s1  ;;  %v3467_v49 = vmul.f32 %v3465_v36, %v6755_v25 }
 0x2d1   : > { %v3661_v55 = vpop.permute.xlu0 %3660 }
 0x2d2   : > { %3080 = vrot.lane.b32.xlu0 %v3075_v2, %s9551_s1  ;;  %v3667_v32 = vadd.f32 %v3661_v55, %v8634_v48  ;;  %v3721_v60 = vpop.permute.xlu1 %3720  ;;  %v3811_v48 = vmul.f32 %v3809_v35, %v6648_v8 }
 0x2d3   : > { %3472 = vrot.lane.b32.xlu1 %v3466_v43, %s9551_s1  ;;  %v8767_v5 = vadd.f32 %v3721_v60, %v8649_v30  ;;  %v3468_v30 = vmul.f32 %v3465_v36, %v6749_v21  ;;  %v3087_v21 = vstv %s5449_s8 }
 0x2d4   : > { %v3088_v19 = vmul.f32 %v3087_v21, %v6657_v14  ;;  %v3089_v58 = vmul.f32 %v3087_v21, %v9558_v39 }
 0x2d6   : > { %3474 = vrot.lane.b32.xlu0 %v3467_v49, %s9551_s1  ;;  %v2955_v1 = vpop.permute.xlu0 %2954 }
 0x2d7   : > { %3816 = vrot.lane.b32.xlu1 %v3810_v27, %s9551_s1  ;;  %v2959_v20 = vadd.f32 %v2955_v1, %v8663_v44  ;;  %v3849_v44 = vstv %s5497_s4 }
 0x2d8   : > { %v3851_v50 = vmul.f32 %v3849_v44, %v9558_v39  ;;  %v3852_v22 = vmul.f32 %v3849_v44, %v9736_v10 }
 0x2d9   : > { %v2997_v12 = vpop.permute.xlu1 %2996 }
 0x2da   : > { %3818 = vrot.lane.b32.xlu0 %v3811_v48, %s9551_s1  ;;  %v8779_v25 = vadd.f32 %v2997_v12, %v8679_v45  ;;  %v3850_v45 = vmul.f32 %v3849_v44, %v6657_v14 }
 0x2db   : > { %3064 = vrot.lane.b32.xlu1 %v3060_v13, %s9551_s1 }
 0x2dd   : > { %v3353_v37 = vpop.permute.xlu0 %3352 }
 0x2de   : > { %3476 = vrot.lane.b32.xlu0 %v3468_v30, %s9551_s1  ;;  %v3361_v24 = vadd.f32 %v3353_v37, %v8689_v46 }
 0x2df   : > { %3820 = vrot.lane.b32.xlu1 %v3812_v34, %s9551_s1 }
 0x2e0   : > { %v3355_v51 = vpop.permute.xlu1 %3354 }
 0x2e1   : > { %v3362_v9 = vadd.f32 %v3355_v51, %v8701_v31 }
 0x2e2   : > { %3066 = vrot.lane.b32.xlu0 %v3061_v4, %s9551_s1 }
 0x2e3   : > { %3856 = vrot.lane.b32.xlu1 %v3850_v45, %s9551_s1 }
 0x2e4   : > { %v3413_v11 = vpop.permute.xlu0 %3412 }
 0x2e5   : > { %v3421_v46 = vadd.f32 %v3413_v11, %v8707_v41 }
 0x2e6   : > { %3858 = vrot.lane.b32.xlu0 %v3851_v50, %s9551_s1 }
 0x2e7   : > { %3092 = vrot.lane.b32.xlu1 %v3088_v19, %s9551_s1  ;;  %v3415_v8 = vpop.permute.xlu1 %3414 }
 0x2e8   : > { %v3422_v31 = vadd.f32 %v3415_v8, %v8714_v63 }
 0x2ea   : > { %3860 = vrot.lane.b32.xlu0 %v3852_v22, %s9551_s1 }
 0x2eb   : > { %3094 = vrot.lane.b32.xlu1 %v3089_v58, %s9551_s1  ;;  %v3697_v33 = vpop.permute.xlu0 %3696  ;;  %s9737_s1 = sld [smem:[#allocation25_spill]] }
 0x2ec   : > { %v8803_v14 = vadd.f32 %v3697_v33, %v8719_v47 }
 0x2ee   : > { %v3699_v41 = vpop.permute.xlu1 %3698 }
 0x2ef   : > { %v8806_v16 = vadd.f32 %v3699_v41, %v8725_v61 }
 0x2f1   : > { %s5349_s28 = sshll.u32 %s9737_s1, 7  ;;  %s5169_s21 = scalar_lea.sflag [#allocation4], %s9737_s1 }
 0x2f2   : > { %v8808_v53 = vpop.permute.xlu0 %3756  ;;  %s8870_s0 = scalar_lea.vmem [#allocation10], %s5349_s28 }
 0x2f3   : > { %s5184_s17 = sshll.u32 %s8870_s0, 4  ;;  %s9153_s17 = int_to_ptr.vmem [resolvable:$true] %s5184_s17 }
 0x2f4   : > { %s6236_s22 = scalar_lea.vmem %s9153_s17, 2048  ;;  %p6243_p13 = scmp.lt.s32.totalorder %s9153_s17, %s6241_s16 }
 0x2f5   : > { %v8810_v57 = vpop.permute.xlu1 %3758  ;;  %p6237_p7 = scmp.ne.s32.totalorder %s9153_s17, %s6236_s22  ;;  %p6244_p4 = scmp.lt.s32.totalorder %s6242_s7, %s6236_s22 }
 0x2f7   : > { %p6238_p11 = pnand %p6237_p7, %p6471_p12  ;;  %p6245_p1 = por %p6244_p4, %p6243_p13 }
 0x2f9   : > { %v2981_v62 = vpop.permute.xlu0 %2980  ;;  %p6239_p2 = pneg %p6238_p11 }
 0x2fa   : > { %v8813_v63 = vadd.f32 %v2981_v62, %v8741_v17 }
 0x2fb   : > { %p6246_p6 = pnand %p6245_p1, %p6239_p2 }
 0x2fc   : > { %v8815_v39 = vpop.permute.xlu1 %3022 }
 0x2ff   : > { %v3357_v42 = vpop.permute.xlu0 %3356 }
 0x300   : > { %v8818_v28 = vadd.f32 %v3357_v42, %v8752_v56  ;;  %v3417_v47 = vpop.permute.xlu1 %3416 }
 0x301   : > { %v5733_v26 = vpop.f32.mrf.mxu1  ;;  %v3423_v21 = vadd.f32 %v3417_v47, %v8758_v7 }
 0x303   : > { %v1784_v55 = vpop.f32.mrf.mxu1 }
 0x304   : > { %v3701_v54 = vpop.permute.xlu0 %3700 }
 0x305   : > { %v8820_v0 = vadd.f32 %v3701_v54, %v3667_v32  ;;  %v8822_v61 = vpop.permute.xlu1 %3760 }
 0x308   : > { %v2983_v59 = vpop.permute.xlu0 %2982 }
 0x309   : > { %v8824_v10 = vadd.f32 %v2983_v59, %v2959_v20  ;;  %v8826_v29 = vpop.permute.xlu1 %3024  ;;  %v5719_v20 = vpop.f32.mrf.mxu0 }
 0x30a   : > { %v1791_v42 = vadd.f32 %v5733_v26, %v5719_v20 }
 0x30b   : > { %v1663_v34 = vpop.f32.mrf.mxu0 }
 0x30c   : > { %v3393_v40 = vpop.permute.xlu0 %3392  ;;  %v1785_v59 = vadd.f32 %v1784_v55, %v1663_v34 }
 0x30d   : > { %v8828_v17 = vadd.f32 %v3393_v40, %v3361_v24  ;;  %v3395_v23 = vpop.permute.xlu1 %3394 }
 0x30e   : > { %v8830_v36 = vadd.f32 %v3395_v23, %v3362_v9 }
 0x310   : > { %v3453_v56 = vpop.permute.xlu0 %3452 }
 0x311   : > { %v3461_v2 = vadd.f32 %v3453_v56, %v3421_v46  ;;  %v3455_v43 = vpop.permute.xlu1 %3454 }
 0x312   : > { %v3462_v35 = vadd.f32 %v3455_v43, %v3422_v31 }
 0x313   : > { %v5736_v32 = vpop.f32.mrf.mxu1  ;;  %v3871_v60 = vrot.slane %v3461_v2, 1 }
 0x314   : > { %v3872_v49 = vrot.slane %v3462_v35, 1  ;;  %v8832_v27 = vpop.permute.xlu0 %3736 }
 0x315   : > { %v8834_v52 = vpop.permute.xlu1 %3738  ;;  %v1796_v1 = vpop.f32.mrf.mxu1 }
 0x316   : > { %v8837_v48 = vsel %vm1551_vm3, %v3871_v60, %v3872_v49 }
 0x317   : > { %v5761_v12 = vpop.f32.mrf.mxu1 }
 0x318   : > { %v3797_v13 = vpop.permute.xlu0 %3796 }
 0x319   : > { %v3799_v30 = vpop.permute.xlu1 %3798  ;;  %v1980_v37 = vpop.f32.mrf.mxu1 }
 0x31b   : > { %v5722_v24 = vpop.f32.mrf.mxu0 }
 0x31c   : > { %v8839_v44 = vpop.permute.xlu0 %3008  ;;  %v5764_v51 = vpop.f32.mrf.mxu1 }
 0x31d   : > { %v3051_v4 = vpop.permute.xlu1 %3050  ;;  %v1683_v45 = vpop.f32.mrf.mxu0 }
 0x31e   : > { %v1996_v9 = vpop.f32.mrf.mxu1  ;;  %v1797_v55 = vadd.f32 %v1796_v1, %v1683_v45 }
 0x320   : > { %v8842_v50 = vpop.permute.xlu0 %3396 }
 0x321   : > { %v3457_v11 = vpop.permute.xlu1 %3456  ;;  %v5747_v19 = vpop.f32.mrf.mxu0 }
 0x322   : > { %v3463_v46 = vadd.f32 %v3457_v11, %v3423_v21  ;;  %v5789_v8 = vpop.f32.mrf.mxu1  ;;  %v1890_v23 = vadd.f32 %v5747_v19, %v1791_v42 }
 0x323   : > { %v1882_v22 = vpop.f32.mrf.mxu0 }
 0x324   : > { %v3874_v31 = vrot.slane %v3463_v46, 1  ;;  %v8844_v58 = vpop.permute.xlu0 %3740  ;;  %v2180_v33 = vpop.f32.mrf.mxu1  ;;  %v1883_v2 = vadd.f32 %v1882_v22, %v1785_v59  ;;  %v1989_v21 = vadd.f32 %v5761_v12, %v1890_v23  ;;  %v3765_v22 = vadd.f32 %v8808_v53, %v8730_v3 }
 0x325   : > { %v8846_v41 = vpop.permute.xlu1 %3800 }
 0x326   : > { %v8849_v62 = vsel %vm1551_vm3, %v3872_v49, %v3874_v31  ;;  %v1803_v49 = vadd.f32 %v5736_v32, %v5722_v24  ;;  %v1981_v46 = vadd.f32 %v1980_v37, %v1883_v2  ;;  %v3766_v32 = vadd.f32 %v8810_v57, %v8735_v18 }
 0x327   : > { %v5750_v54 = vpop.f32.mrf.mxu0  ;;  %v3805_v24 = vadd.f32 %v3797_v13, %v3765_v22 }
 0x328   : > { %v8851_v7 = vpop.permute.xlu0 %3010  ;;  %v5792_v47 = vpop.f32.mrf.mxu1  ;;  %v1904_v34 = vadd.f32 %v5750_v54, %v1803_v49  ;;  %v3806_v45 = vadd.f32 %v3799_v30, %v3766_v32 }
 0x329   : > { %9738 = vst [vmem:[#allocation46_spill] sm:$0xff] %v8851_v7  ;;  %v8853_v40 = vpop.permute.xlu1 %3052  ;;  %v1896_v56 = vpop.f32.mrf.mxu0 }
 0x32a   : > { %v2192_v43 = vpop.f32.mrf.mxu1  ;;  %v1897_v12 = vadd.f32 %v1896_v56, %v1797_v55  ;;  %v2005_v53 = vadd.f32 %v5764_v51, %v1904_v34 }
 0x32c   : > { %v8855_v35 = vpop.permute.xlu0 %3432  ;;  %v1997_v56 = vadd.f32 %v1996_v9, %v1897_v12 }
 0x32d   : > { %v8857_v60 = vpop.permute.xlu1 %3434 }
 0x32e   : > { %v5775_v11 = vpop.f32.mrf.mxu0 }
 0x32f   : > { %v2094_v26 = vadd.f32 %v5775_v11, %v1989_v21  ;;  %v8860_v20 = vpop.f32.mrf.mxu1 }
 0x330   : > { %v8862_v31 = vpop.permute.xlu0 %3776  ;;  %v2087_v19 = vpop.f32.mrf.mxu0 }
 0x331   : > { %v8866_v42 = vpop.permute.xlu1 %3778  ;;  %v2187_v59 = vadd.f32 %v5789_v8, %v2094_v26  ;;  %v2088_v7 = vadd.f32 %v2087_v19, %v1981_v46  ;;  %v8874_v37 = vpop.f32.mrf.mxu1  ;;  %v3028_v8 = vadd.f32 %v8815_v39, %v8746_v38  ;;  %v3767_v19 = vadd.f32 %v8822_v61, %v8767_v5 }
 0x333   : > { %2818 = vst.msk [vmem:[%s8870_s0 + $0x8] sm:$0xff] %vm2816_vm5, %v2187_v59  ;;  %v2181_v1 = vadd.f32 %v2180_v33, %v2088_v7  ;;  %v3056_v2 = vadd.f32 %v3051_v4, %v3028_v8  ;;  %v3807_v59 = vadd.f32 %v8846_v41, %v3767_v19  ;;  %v3403_v19 = vadd.f32 %v8842_v50, %v8818_v28 }
 0x334   : > { %v3837_v3 = vpop.permute.xlu0 %3836  ;;  %v3745_v28 = vadd.f32 %v8832_v27, %v8803_v14 }
 0x335   : > { %v3845_v54 = vadd.f32 %v3837_v3, %v3805_v24  ;;  %v3839_v23 = vpop.permute.xlu1 %3838  ;;  %2817 = vst.msk [vmem:[%s8870_s0] sm:$0xff] %vm2816_vm5, %v2181_v1  ;;  %v5778_v18 = vpop.f32.mrf.mxu0 }
 0x336   : > { %v3846_v57 = vadd.f32 %v3839_v23, %v3806_v45  ;;  %v2106_v13 = vadd.f32 %v5778_v18, %v2005_v53  ;;  %v8880_v33 = vpop.f32.mrf.mxu1 }
 0x337   : > { %v2099_v7 = vpop.f32.mrf.mxu0  ;;  %v3883_v30 = vrot.slane %v3845_v54, 1 }
 0x338   : > { %v3884_v21 = vrot.slane %v3846_v57, 1  ;;  %v8882_v51 = vpop.permute.xlu0 %3036  ;;  %v2199_v49 = vadd.f32 %v5792_v47, %v2106_v13  ;;  %v2100_v38 = vadd.f32 %v2099_v7, %v1997_v56  ;;  %v8887_v55 = vpop.f32.mrf.mxu1  ;;  %v3442_v13 = vadd.f32 %v8857_v60, %v8830_v36 }
 0x339   : > { %v3079_v39 = vpop.permute.xlu1 %3078 }
 0x33a   : > { %v3885_v11 = vsel %vm1551_vm3, %v3883_v30, %v3884_v21  ;;  %v3084_v26 = vadd.f32 %v3079_v39, %v3056_v2  ;;  %5424 = vst.msk [vmem:[%s8870_s0 + $0x48] sm:$0xff] %vm2816_vm5, %v2199_v49  ;;  %v2193_v46 = vadd.f32 %v2192_v43, %v2100_v38 }
 0x33c   : > { %v3878_v4 = vadd.f32 %v8837_v48, %v3084_v26  ;;  %v3437_v9 = vpop.permute.xlu0 %3436  ;;  %5423 = vst.msk [vmem:[%s8870_s0 + $0x40] sm:$0xff] %vm2816_vm5, %v2193_v46  ;;  %v5803_v34 = vpop.f32.mrf.mxu0  ;;  %v3029_v48 = vadd.f32 %v8826_v29, %v8779_v25  ;;  %v3441_v25 = vadd.f32 %v8855_v35, %v8828_v17 }
 0x33d   : > { %v8894_v47 = vpop.permute.xlu1 %3780  ;;  %v8897_v32 = vpop.f32.mrf.mxu1 }
 0x33e   : > { %v3890_v22 = vadd.f32 %v3885_v11, %v3878_v4  ;;  %v2277_v12 = vpop.f32.mrf.mxu0  ;;  %v3057_v5 = vadd.f32 %v8853_v40, %v3029_v48  ;;  %v3443_v48 = vadd.f32 %v3437_v9, %v3403_v19 }
 0x33f   : > { %v8911_v53 = vpop.f32.mrf.mxu1 }
 0x340   : > { %v3917_v43 = vsel %vm1575_vm4, %v3890_v22, 0  ;;  %v3841_v24 = vpop.permute.xlu0 %3840  ;;  %v2405_v22 = vadd.f32 %v8860_v20, %v5803_v34 }
 0x341   : > { %v8902_v1 = vand.u32 4294901760, %v3917_v43  ;;  %v3847_v45 = vadd.f32 %v3841_v24, %v3807_v59  ;;  %v8904_v3 = vpop.permute.xlu1 %3038 }
 0x343   : > { %v8908_v61 = vsub.f32 %v3917_v43, %v8902_v1  ;;  %v3886_v41 = vrot.slane %v3847_v45, 1  ;;  %5899 = vmatprep.mubr.f32.mxu1 %v8902_v1  ;;  %v5806_v8 = vpop.f32.mrf.mxu0  ;;  %v2399_v45 = vadd.f32 %v8874_v37, %v2277_v12  ;;  %v3746_v37 = vadd.f32 %v8834_v52, %v8806_v16 }
 0x344   : > { %v3081_v54 = vpop.permute.xlu0 %3080  ;;  %v8922_v7 = vpop.f32.mrf.mxu1  ;;  %v3785_v12 = vadd.f32 %v8862_v31, %v3745_v28  ;;  %v3014_v16 = vadd.f32 %v8839_v44, %v8813_v63  ;;  %v3747_v63 = vadd.f32 %v8844_v58, %v8820_v0 }
 0x345   : > { %v3085_v29 = vadd.f32 %v3081_v54, %v3057_v5  ;;  %v3887_v23 = vsel %vm1551_vm3, %v3884_v21, %v3886_v41  ;;  %v3473_v18 = vpop.permute.xlu1 %3472  ;;  %v8917_v57 = vand.u32 4294901760, %v8908_v61  ;;  %v2297_v40 = vpop.f32.mrf.mxu0  ;;  %v9739_v54 = vld [vmem:[#allocation85_spill] sm:$0xff]  ;;  %v3786_v52 = vadd.f32 %v8866_v42, %v3746_v37 }
 0x346   : > { %v3481_v2 = vadd.f32 %v3473_v18, %v3441_v25  ;;  %v8929_v36 = vpop.f32.mrf.mxu1  ;;  %v9740_v25 = vld [vmem:[#allocation86_spill] sm:$0xff]  ;;  %v3042_v44 = vadd.f32 %v8882_v51, %v3014_v16  ;;  %v3787_v58 = vadd.f32 %v8894_v47, %v3747_v63  ;;  %v9746_v16 = vld [vmem:[#allocation95_spill] sm:$0xff] }
 0x347   : > { %v3879_v56 = vadd.f32 %v8849_v62, %v3085_v29  ;;  %v4000_v30 = vsub.f32 %v8908_v61, %v8917_v57  ;;  %v2417_v29 = vadd.f32 %v8880_v33, %v5806_v8 }
 0x348   : > { %v3475_v17 = vpop.permute.xlu0 %3474  ;;  %v3895_v26 = vrot.slane %v3481_v2, 1 }
 0x349   : > { %v3891_v35 = vadd.f32 %v3887_v23, %v3879_v56  ;;  %v3482_v49 = vadd.f32 %v3475_v17, %v3442_v13  ;;  %v3817_v21 = vpop.permute.xlu1 %3816  ;;  %v8926_v38 = vand.u32 4294901760, %v4000_v30  ;;  %v9741_v13 = vld [vmem:[#allocation87_spill] sm:$0xff]  ;;  %v2411_v56 = vadd.f32 %v8887_v55, %v2297_v40 }
 0x34a   : > { %v5831_v39 = vpop.f32.mrf.mxu0  ;;  %v3825_v31 = vadd.f32 %v3817_v21, %v3785_v12 }
 0x34b   : > { %v3920_v11 = vsel %vm1575_vm4, %v3891_v35, 0  ;;  %v3896_v46 = vrot.slane %v3482_v49, 1  ;;  %5885 = vmatprep.mubr.f32.mxu0 %v8926_v38  ;;  %v2504_v5 = vadd.f32 %v5831_v39, %v2405_v22  ;;  %v5873_v41 = vpop.f32.mrf.mxu1  ;;  %v9742_v22 = vld [vmem:[#allocation46_spill] sm:$0xff] }
 0x34c   : > { %v8932_v62 = vand.u32 4294901760, %v3920_v11  ;;  %v3819_v60 = vpop.permute.xlu0 %3818  ;;  %v2496_v4 = vpop.f32.mrf.mxu0  ;;  %v3015_v0 = vadd.f32 %v9742_v22, %v8824_v10  ;;  %v9754_v22 = vld [vmem:[#allocation115_spill] sm:$0xff] }
 0x34d   : > { %v3065_v59 = vpop.permute.xlu1 %3064  ;;  %v8938_v43 = vsel %vm1551_vm3, %v3895_v26, %v3896_v46  ;;  %v2497_v23 = vadd.f32 %v2496_v4, %v2399_v45  ;;  %v2794_v2 = vpop.f32.mrf.mxu1  ;;  %v2603_v30 = vadd.f32 %v8897_v32, %v2504_v5  ;;  %v3826_v42 = vadd.f32 %v3819_v60, %v3786_v52  ;;  %v9743_v45 = vld [vmem:[#allocation91_spill] sm:$0xff] }
 0x34e   : > { %v8941_v24 = vsub.f32 %v3920_v11, %v8932_v62  ;;  %5900 = vmatmul.mubr.f32.vlgmr.msra.gmra.mxu1 %v8932_v62  ;;  %v3070_v51 = vadd.f32 %v3065_v59, %v3042_v44 }
 0x34f   : > { %5920 = vmatpush3.msra.mxu1 %v9739_v54  ;;  %v2595_v39 = vadd.f32 %v8911_v53, %v2497_v23  ;;  %v5876_v26 = vpop.f32.mrf.mxu1 }
 0x350   : > { %v8949_v50 = vand.u32 4294901760, %v8941_v24  ;;  %v3477_v20 = vpop.permute.xlu0 %3476  ;;  %v5834_v34 = vpop.f32.mrf.mxu0  ;;  %5921 = vmatprep.subr.mxu1 %v9740_v25 }
 0x351   : > { %v3483_v9 = vadd.f32 %v3477_v20, %v3443_v48  ;;  %v3821_v18 = vpop.permute.xlu1 %3820  ;;  %5922 = vmatpush3.msra.mxu1 %v9740_v25  ;;  %v2518_v8 = vadd.f32 %v5834_v34, %v2417_v29  ;;  %v9744_v34 = vld [vmem:[#allocation92_spill] sm:$0xff] }
 0x352   : > { %v2510_v14 = vpop.f32.mrf.mxu0  ;;  %v4010_v27 = vsub.f32 %v8941_v24, %v8949_v50  ;;  %5923 = vmatprep.subr.mxu1 %v9741_v13  ;;  %v3827_v10 = vadd.f32 %v3821_v18, %v3787_v58  ;;  %v9756_v58 = vld [vmem:[#allocation128_spill] sm:$0xff] }
 0x353   : > { %v3898_v33 = vrot.slane %v3483_v9, 1  ;;  %5924 = vmatpush3.msra.mxu1 %v9741_v13  ;;  %v2511_v55 = vadd.f32 %v2510_v14, %v2411_v56 }
 0x354   : > { %v3067_v17 = vpop.permute.xlu0 %3066  ;;  %v5859_v35 = vpop.f32.mrf.mxu0  ;;  %v8966_v49 = vand.u32 4294901760, %v4010_v27  ;;  %5925 = vmatprep.subr.mxu1 %v9694_v6  ;;  %v9745_v27 = vld [vmem:[#allocation94_spill] sm:$0xff] }
 0x355   : > { %v2708_v40 = vadd.f32 %v5859_v35, %v2603_v30  ;;  %v3857_v11 = vpop.permute.xlu1 %3856  ;;  %v3899_v32 = vsel %vm1551_vm3, %v3896_v46, %v3898_v33  ;;  %5926 = vmatpush3.msra.mxu1 %v9694_v6  ;;  %v2619_v46 = vadd.f32 %v8922_v7, %v2518_v8  ;;  %v2611_v7 = vadd.f32 %v8929_v36, %v2511_v55  ;;  %v2806_v36 = vpop.f32.mrf.mxu1 }
 0x356   : > { %v2701_v21 = vpop.f32.mrf.mxu0  ;;  %5886 = vmatmul.mubr.f32.vlgmr.msra.gmra.mxu0 %v8966_v49  ;;  %5947 = vmatprep.subr.mxu1 %v9739_v54  ;;  %v3865_v19 = vadd.f32 %v3857_v11, %v3825_v31 }
 0x357   : > { %v2801_v4 = vadd.f32 %v5873_v41, %v2708_v40  ;;  %v2702_v53 = vadd.f32 %v2701_v21, %v2595_v39  ;;  %5906 = vmatpush3.msra.mxu0 %v9695_v15  ;;  %v3043_v15 = vadd.f32 %v8904_v3, %v3015_v0  ;;  %v9755_v0 = vld [vmem:[#allocation82_spill] sm:$0xff] }
 0x358   : > { %v3859_v60 = vpop.permute.xlu0 %3858  ;;  %v5862_v48 = vpop.f32.mrf.mxu0  ;;  %5907 = vmatprep.subr.mxu0 %v9743_v45  ;;  %v3907_v29 = vrot.slane %v3865_v19, 1  ;;  %v9752_v19 = vld [vmem:[#allocation99_spill] sm:$0xff] }
 0x359   : > { %5422 = vst.msk [vmem:[%s8870_s0 + $0x18] sm:$0xff] %vm2816_vm5, %v2801_v4  ;;  %v2795_v5 = vadd.f32 %v2794_v2, %v2702_v53  ;;  %v3866_v41 = vadd.f32 %v3859_v60, %v3826_v42  ;;  %v2720_v28 = vadd.f32 %v5862_v48, %v2619_v46  ;;  %v3093_v20 = vpop.permute.xlu1 %3092  ;;  %5908 = vmatpush3.msra.mxu0 %v9743_v45  ;;  %v9751_v53 = vld [vmem:[#allocation29_spill] sm:$0xff]  ;;  %v9753_v46 = vld [vmem:[#allocation134_spill] sm:$0xff]  ;;  %v9758_v60 = vld [vmem:[#allocation107_spill] sm:$0xff] }
 0x35a   : > { %v2713_v47 = vpop.f32.mrf.mxu0  ;;  %v3098_v59 = vadd.f32 %v3093_v20, %v3070_v51  ;;  %5909 = vmatprep.subr.mxu0 %v9744_v34  ;;  %v3071_v12 = vadd.f32 %v3067_v17, %v3043_v15  ;;  %v9757_v51 = vld [vmem:[#allocation93_spill] sm:$0xff]  ;;  %v9764_v48 = vld [vmem:[#allocation28_spill] sm:$0xff] }
 0x35b   : > { %5421 = vst.msk [vmem:[%s8870_s0 + $0x10] sm:$0xff] %vm2816_vm5, %v2795_v5  ;;  %v3908_v23 = vrot.slane %v3866_v41, 1  ;;  %v2813_v9 = vadd.f32 %v5876_v26, %v2720_v28  ;;  %v2714_v37 = vadd.f32 %v2713_v47, %v2611_v7  ;;  %5910 = vmatpush3.msra.mxu0 %v9744_v34 }
 0x35c   : > { %v3902_v14 = vadd.f32 %v8938_v43, %v3098_v59  ;;  %v3861_v3 = vpop.permute.xlu0 %3860  ;;  %5911 = vmatprep.subr.mxu0 %v9745_v27 }
 0x35d   : > { %5426 = vst.msk [vmem:[%s8870_s0 + $0x58] sm:$0xff] %vm2816_vm5, %v2813_v9  ;;  %v2807_v18 = vadd.f32 %v2806_v36, %v2714_v37  ;;  %v3909_v56 = vsel %vm1551_vm3, %v3907_v29, %v3908_v23  ;;  %v3867_v2 = vadd.f32 %v3861_v3, %v3827_v10  ;;  %v3095_v33 = vpop.permute.xlu1 %3094  ;;  %5912 = vmatpush3.msra.mxu0 %v9745_v27 }
 0x35e   : > { %v3914_v8 = vadd.f32 %v3909_v56, %v3902_v14  ;;  %v3099_v30 = vadd.f32 %v3095_v33, %v3071_v12  ;;  %5933 = vmatprep.subr.mxu0 %v9746_v16 }
 0x35f   : > { %5425 = vst.msk [vmem:[%s8870_s0 + $0x50] sm:$0xff] %vm2816_vm5, %v2807_v18  ;;  %v3910_v52 = vrot.slane %v3867_v2, 1 }
 0x360   : > { %v3923_v43 = vsel %vm1575_vm4, %v3914_v8, 0  ;;  %v3903_v31 = vadd.f32 %v3899_v32, %v3099_v30 }
 0x361   : > { %v9002_v17 = vand.u32 4294901760, %v3923_v43  ;;  %v3911_v35 = vsel %vm1551_vm3, %v3908_v23, %v3910_v52 }
 0x362   : > { %v3915_v55 = vadd.f32 %v3911_v35, %v3903_v31 }
 0x363   : > { %v9006_v40 = vsub.f32 %v3923_v43, %v9002_v17  ;;  %5902 = vmatprep.mubr.f32.mxu1 %v9002_v17 }
 0x364   : > { %v3926_v39 = vsel %vm1575_vm4, %v3915_v55, 0 }
 0x365   : > { %v9010_v11 = vand.u32 4294901760, %v3926_v39  ;;  %v9013_v63 = vand.u32 4294901760, %v9006_v40 }
 0x367   : > { %v9016_v44 = vsub.f32 %v3926_v39, %v9010_v11  ;;  %5903 = vmatmul.mubr.f32.gmra.mxu1 %v9010_v11  ;;  %v4020_v32 = vsub.f32 %v9006_v40, %v9013_v63 }
 0x368   : > { %5927 = vmatprep.mubr.f32.mxu1 %v8917_v57 }
 0x369   : > { %v9022_v42 = vand.u32 4294901760, %v4020_v32  ;;  %v9025_v21 = vand.u32 4294901760, %v9016_v44 }
 0x36b   : > { %5888 = vmatprep.mubr.f32.mxu0 %v9022_v42  ;;  %5928 = vmatmul.mubr.f32.vlgmr.msra.gmra.mxu1 %v8949_v50  ;;  %v4030_v26 = vsub.f32 %v9016_v44, %v9025_v21 }
 0x36c   : > { %5930 = vmatprep.mubr.f32.mxu1 %v9013_v63  ;;  %5948 = vmatpush3.msra.mxu1 %v9739_v54  ;;  %v9747_v54 = vld [vmem:[#allocation129_spill] sm:$0xff] }
 0x36d   : > { %5949 = vmatprep.subr.mxu1 %v9740_v25  ;;  %v9034_v4 = vand.u32 4294901760, %v4030_v26 }
 0x36e   : > { %5950 = vmatpush3.msra.mxu1 %v9740_v25  ;;  %v9748_v25 = vld [vmem:[#allocation96_spill] sm:$0xff] }
 0x36f   : > { %5889 = vmatmul.mubr.f32.gmra.mxu0 %v9034_v4  ;;  %5931 = vmatmul.mubr.f32.gmra.mxu1 %v9025_v21 }
 0x370   : > { %5951 = vmatprep.subr.mxu1 %v9741_v13  ;;  %5913 = vmatprep.mubr.f32.mxu0 %v8908_v61 }
 0x371   : > { %5952 = vmatpush3.msra.mxu1 %v9741_v13  ;;  %5955 = vmatprep.mubr.f32.mxu1 %v8902_v1  ;;  %v9749_v13 = vld [vmem:[#allocation112_spill] sm:$0xff] }
 0x372   : > { %5953 = vmatprep.subr.mxu1 %v9694_v6 }
 0x373   : > { %5954 = vmatpush3.msra.mxu1 %v9694_v6  ;;  %5914 = vmatmul.mubr.f32.vlgmr.msra.gmra.mxu0 %v8941_v24  ;;  %v9750_v6 = vld [vmem:[#allocation97_spill] sm:$0xff] }
 0x374   : > { %5934 = vmatpush3.msra.mxu0 %v9746_v16  ;;  %5956 = vmatmul.mubr.f32.vlgmr.msra.gmra.mxu1 %v8932_v62 }
 0x375   : > { %5975 = vmatprep.subr.mxu1 %v9747_v54  ;;  %5916 = vmatprep.mubr.f32.mxu0 %v9006_v40 }
 0x376   : > { %5935 = vmatprep.subr.mxu0 %v9748_v25  ;;  %5958 = vmatprep.mubr.f32.mxu1 %v9002_v17 }
 0x377   : > { %5976 = vmatpush3.msra.mxu1 %v9747_v54  ;;  %5936 = vmatpush3.msra.mxu0 %v9748_v25 }
 0x378   : > { %5977 = vmatprep.subr.mxu1 %v9749_v13  ;;  %5937 = vmatprep.subr.mxu0 %v9750_v6 }
 0x379   : > { %5978 = vmatpush3.msra.mxu1 %v9749_v13  ;;  %5917 = vmatmul.mubr.f32.gmra.mxu0 %v9016_v44 }
 0x37a   : > { %5938 = vmatpush3.msra.mxu0 %v9750_v6  ;;  %5959 = vmatmul.mubr.f32.gmra.mxu1 %v9010_v11 }
 0x37b   : > { %5979 = vmatprep.subr.mxu1 %v9751_v53  ;;  %5939 = vmatprep.subr.mxu0 %v9752_v19 }
 0x37c   : > { %5941 = vmatprep.mubr.f32.mxu0 %v8902_v1  ;;  %5980 = vmatpush3.msra.mxu1 %v9751_v53 }
 0x37d   : > { %5983 = vmatprep.mubr.f32.mxu1 %v8902_v1  ;;  %5940 = vmatpush3.msra.mxu0 %v9752_v19 }
 0x37e   : > { %5981 = vmatprep.subr.mxu1 %v9753_v46  ;;  %5961 = vmatprep.subr.mxu0 %v9754_v22 }
 0x37f   : > { %5982 = vmatpush3.msra.mxu1 %v9753_v46  ;;  %5942 = vmatmul.mubr.f32.vlgmr.msra.gmra.mxu0 %v8932_v62 }
 0x380   : > { %5962 = vmatpush3.msra.mxu0 %v9754_v22  ;;  %5984 = vmatmul.mubr.f32.vlgmr.msra.gmra.mxu1 %v8932_v62 }
 0x381   : > { %6003 = vmatprep.subr.mxu1 %v9754_v22  ;;  %5944 = vmatprep.mubr.f32.mxu0 %v9002_v17 }
 0x382   : > { %5963 = vmatprep.subr.mxu0 %v9755_v0  ;;  %5986 = vmatprep.mubr.f32.mxu1 %v9002_v17 }
 0x383   : > { %6004 = vmatpush3.msra.mxu1 %v9754_v22  ;;  %5964 = vmatpush3.msra.mxu0 %v9755_v0 }
 0x384   : > { %6005 = vmatprep.subr.mxu1 %v9755_v0  ;;  %5965 = vmatprep.subr.mxu0 %v9756_v58 }
 0x385   : > { %6006 = vmatpush3.msra.mxu1 %v9755_v0  ;;  %5945 = vmatmul.mubr.f32.gmra.mxu0 %v9010_v11 }
 0x386   : > { %5966 = vmatpush3.msra.mxu0 %v9756_v58  ;;  %5987 = vmatmul.mubr.f32.gmra.mxu1 %v9010_v11 }
 0x387   : > { %6007 = vmatprep.subr.mxu1 %v9756_v58  ;;  %5967 = vmatprep.subr.mxu0 %v9757_v51 }
 0x388   : > { %5969 = vmatprep.mubr.f32.mxu0 %v8926_v38  ;;  %6008 = vmatpush3.msra.mxu1 %v9756_v58  ;;  %v9759_v38 = vld [vmem:[#allocation121_spill] sm:$0xff] }
 0x389   : > { %6011 = vmatprep.mubr.f32.mxu1 %v8917_v57  ;;  %5968 = vmatpush3.msra.mxu0 %v9757_v51  ;;  %v9760_v57 = vld [vmem:[#allocation45_spill] sm:$0xff] }
 0x38a   : > { %6009 = vmatprep.subr.mxu1 %v9757_v51  ;;  %5989 = vmatprep.subr.mxu0 %v9758_v60 }
 0x38b   : > { %6010 = vmatpush3.msra.mxu1 %v9757_v51  ;;  %5970 = vmatmul.mubr.f32.vlgmr.msra.gmra.mxu0 %v8966_v49  ;;  %v9762_v49 = vld [vmem:[#allocation60_spill] sm:$0xff] }
 0x38c   : > { %5990 = vmatpush3.msra.mxu0 %v9758_v60  ;;  %6012 = vmatmul.mubr.f32.vlgmr.msra.gmra.mxu1 %v8949_v50  ;;  %v9761_v50 = vld [vmem:[#allocation130_spill] sm:$0xff] }
 0x38d   : > { %6031 = vmatprep.subr.mxu1 %v9754_v22  ;;  %5972 = vmatprep.mubr.f32.mxu0 %v9022_v42 }
 0x38e   : > { %5991 = vmatprep.subr.mxu0 %v9759_v38  ;;  %6014 = vmatprep.mubr.f32.mxu1 %v9013_v63 }
 0x38f   : > { %6032 = vmatpush3.msra.mxu1 %v9754_v22  ;;  %5992 = vmatpush3.msra.mxu0 %v9759_v38 }
 0x390   : > { %6033 = vmatprep.subr.mxu1 %v9755_v0  ;;  %5993 = vmatprep.subr.mxu0 %v9760_v57 }
 0x391   : > { %6034 = vmatpush3.msra.mxu1 %v9755_v0  ;;  %5973 = vmatmul.mubr.f32.gmra.mxu0 %v9034_v4 }
 0x392   : > { %5994 = vmatpush3.msra.mxu0 %v9760_v57  ;;  %6015 = vmatmul.mubr.f32.gmra.mxu1 %v9025_v21 }
 0x393   : > { %6035 = vmatprep.subr.mxu1 %v9756_v58  ;;  %5995 = vmatprep.subr.mxu0 %v9761_v50 }
 0x394   : > { %5997 = vmatprep.mubr.f32.mxu0 %v8908_v61  ;;  %6036 = vmatpush3.msra.mxu1 %v9756_v58  ;;  %v9763_v61 = vld [vmem:[#allocation133_spill] sm:$0xff] }
 0x395   : > { %6039 = vmatprep.mubr.f32.mxu1 %v8902_v1  ;;  %5996 = vmatpush3.msra.mxu0 %v9761_v50 }
 0x396   : > { %6037 = vmatprep.subr.mxu1 %v9757_v51  ;;  %6017 = vmatprep.subr.mxu0 %v9762_v49 }
 0x397   : > { %6038 = vmatpush3.msra.mxu1 %v9757_v51  ;;  %5998 = vmatmul.mubr.f32.vlgmr.msra.gmra.mxu0 %v8941_v24  ;;  %v9765_v24 = vld [vmem:[#allocation105_spill] sm:$0xff] }
 0x398   : > { %6018 = vmatpush3.msra.mxu0 %v9762_v49  ;;  %6040 = vmatmul.mubr.f32.vlgmr.msra.gmra.mxu1 %v8932_v62 }
 0x399   : > { %6000 = vmatprep.mubr.f32.mxu0 %v9006_v40  ;;  %6019 = vmatprep.subr.mxu0 %v9763_v61 }
 0x39a   : > { %6042 = vmatprep.mubr.f32.mxu1 %v9002_v17  ;;  %6020 = vmatpush3.msra.mxu0 %v9763_v61 }
 0x39b   : > { %6021 = vmatprep.subr.mxu0 %v9764_v48  ;;  %6001 = vmatmul.mubr.f32.gmra.mxu0 %v9016_v44 }
 0x39c   : > { %6022 = vmatpush3.msra.mxu0 %v9764_v48  ;;  %6043 = vmatmul.mubr.f32.gmra.mxu1 %v9010_v11 }
 0x39d   : > { %6023 = vmatprep.subr.mxu0 %v9765_v24  ;;  %6025 = vmatprep.mubr.f32.mxu0 %v8902_v1 }
 0x39e   : > { %6024 = vmatpush3.msra.mxu0 %v9765_v24 }
 0x39f   : > { %6026 = vmatmul.mubr.f32.vlgmr.msra.gmra.mxu0 %v8932_v62 }
 0x3a0   : > { %6028 = vmatprep.mubr.f32.mxu0 %v9002_v17 }
 0x3a3   : > { %6029 = vmatmul.mubr.f32.gmra.mxu0 %v9010_v11 }
 0x40e   : > { %v5901_v45 = vpop.f32.mrf.mxu1 }
 0x410   : > { %v4124_v5 = vpop.f32.mrf.mxu1 }
 0x416   : > { %v5887_v28 = vpop.f32.mrf.mxu0 }
 0x417   : > { %v4131_v37 = vadd.f32 %v5901_v45, %v5887_v28 }
 0x418   : > { %v4003_v15 = vpop.f32.mrf.mxu0 }
 0x419   : > { %v4125_v12 = vadd.f32 %v4124_v5, %v4003_v15 }
 0x427   : > { %v5904_v41 = vpop.f32.mrf.mxu1 }
 0x429   : > { %v4136_v7 = vpop.f32.mrf.mxu1 }
 0x42b   : > { %v5929_v20 = vpop.f32.mrf.mxu1 }
 0x42d   : > { %v4320_v10 = vpop.f32.mrf.mxu1 }
 0x42f   : > { %v5890_v47 = vpop.f32.mrf.mxu0  ;;  %v5932_v59 = vpop.f32.mrf.mxu1 }
 0x430   : > { %v4143_v2 = vadd.f32 %v5904_v41, %v5890_v47 }
 0x431   : > { %v4023_v34 = vpop.f32.mrf.mxu0  ;;  %v4336_v1 = vpop.f32.mrf.mxu1 }
 0x432   : > { %v4137_v30 = vadd.f32 %v4136_v7, %v4023_v34 }
 0x433   : > { %v5915_v29 = vpop.f32.mrf.mxu0 }
 0x434   : > { %v5957_v23 = vpop.f32.mrf.mxu1  ;;  %v4230_v14 = vadd.f32 %v5915_v29, %v4131_v37 }
 0x435   : > { %v4222_v9 = vpop.f32.mrf.mxu0 }
 0x436   : > { %v4520_v62 = vpop.f32.mrf.mxu1  ;;  %v4223_v18 = vadd.f32 %v4222_v9, %v4125_v12  ;;  %v4329_v33 = vadd.f32 %v5929_v20, %v4230_v14 }
 0x438   : > { %v4321_v31 = vadd.f32 %v4320_v10, %v4223_v18 }
 0x439   : > { %v5918_v36 = vpop.f32.mrf.mxu0 }
 0x43a   : > { %v5960_v3 = vpop.f32.mrf.mxu1  ;;  %v4244_v16 = vadd.f32 %v5918_v36, %v4143_v2 }
 0x43b   : > { %v4236_v27 = vpop.f32.mrf.mxu0 }
 0x43c   : > { %v4532_v56 = vpop.f32.mrf.mxu1  ;;  %v4237_v35 = vadd.f32 %v4236_v27, %v4137_v30  ;;  %v4345_v63 = vadd.f32 %v5932_v59, %v4244_v16 }
 0x43e   : > { %v4337_v21 = vadd.f32 %v4336_v1, %v4237_v35 }
 0x43f   : > { %v5943_v8 = vpop.f32.mrf.mxu0 }
 0x440   : > { %v4434_v52 = vadd.f32 %v5943_v8, %v4329_v33  ;;  %v5985_v43 = vpop.f32.mrf.mxu1 }
 0x441   : > { %v4427_v17 = vpop.f32.mrf.mxu0 }
 0x442   : > { %v4527_v55 = vadd.f32 %v5957_v23, %v4434_v52  ;;  %v4428_v40 = vadd.f32 %v4427_v17, %v4321_v31  ;;  %v4738_v39 = vpop.f32.mrf.mxu1 }
 0x444   : > { %5499 = vst.msk [vmem:[%s8870_s0 + $0x28] sm:$0xff] %vm2816_vm5, %v4527_v55  ;;  %v4521_v11 = vadd.f32 %v4520_v62, %v4428_v40 }
 0x445   : > { %v5946_v44 = vpop.f32.mrf.mxu0 }
 0x446   : > { %5498 = vst.msk [vmem:[%s8870_s0 + $0x20] sm:$0xff] %vm2816_vm5, %v4521_v11  ;;  %v4446_v32 = vadd.f32 %v5946_v44, %v4345_v63  ;;  %v5988_v42 = vpop.f32.mrf.mxu1 }
 0x447   : > { %v4439_v26 = vpop.f32.mrf.mxu0 }
 0x448   : > { %v4539_v4 = vadd.f32 %v5960_v3, %v4446_v32  ;;  %v4440_v54 = vadd.f32 %v4439_v26, %v4337_v21  ;;  %v4750_v25 = vpop.f32.mrf.mxu1 }
 0x44a   : > { %5503 = vst.msk [vmem:[%s8870_s0 + $0x68] sm:$0xff] %vm2816_vm5, %v4539_v4  ;;  %v4533_v13 = vadd.f32 %v4532_v56, %v4440_v54 }
 0x44b   : > { %v5971_v6 = vpop.f32.mrf.mxu0 }
 0x44c   : > { %5502 = vst.msk [vmem:[%s8870_s0 + $0x60] sm:$0xff] %vm2816_vm5, %v4533_v13  ;;  %v6013_v53 = vpop.f32.mrf.mxu1  ;;  %v4745_v38 = vadd.f32 %v5985_v43, %v5971_v6 }
 0x44d   : > { %v4617_v19 = vpop.f32.mrf.mxu0 }
 0x44e   : > { %v4934_v46 = vpop.f32.mrf.mxu1  ;;  %v4739_v50 = vadd.f32 %v4738_v39, %v4617_v19 }
 0x451   : > { %v5974_v22 = vpop.f32.mrf.mxu0 }
 0x452   : > { %v6016_v0 = vpop.f32.mrf.mxu1  ;;  %v4757_v24 = vadd.f32 %v5988_v42, %v5974_v22 }
 0x453   : > { %v4637_v58 = vpop.f32.mrf.mxu0 }
 0x454   : > { %v4950_v51 = vpop.f32.mrf.mxu1  ;;  %v4751_v41 = vadd.f32 %v4750_v25, %v4637_v58 }
 0x457   : > { %v5999_v60 = vpop.f32.mrf.mxu0 }
 0x458   : > { %v4844_v49 = vadd.f32 %v5999_v60, %v4745_v38  ;;  %v6041_v61 = vpop.f32.mrf.mxu1 }
 0x459   : > { %v4836_v57 = vpop.f32.mrf.mxu0 }
 0x45a   : > { %v4837_v45 = vadd.f32 %v4836_v57, %v4739_v50  ;;  %v4943_v7 = vadd.f32 %v6013_v53, %v4844_v49  ;;  %v5134_v20 = vpop.f32.mrf.mxu1 }
 0x45b   : > { %v6002_v48 = vpop.f32.mrf.mxu0 }
 0x45c   : > { %v4858_v28 = vadd.f32 %v6002_v48, %v4757_v24  ;;  %v4935_v59 = vadd.f32 %v4934_v46, %v4837_v45  ;;  %v6044_v9 = vpop.f32.mrf.mxu1 }
 0x45d   : > { %v4850_v5 = vpop.f32.mrf.mxu0 }
 0x45e   : > { %v4851_v10 = vadd.f32 %v4850_v5, %v4751_v41  ;;  %v4959_v23 = vadd.f32 %v6016_v0, %v4858_v28  ;;  %v5146_v18 = vpop.f32.mrf.mxu1 }
 0x45f   : > { %v6027_v15 = vpop.f32.mrf.mxu0 }
 0x460   : > { %v5048_v47 = vadd.f32 %v6027_v15, %v4943_v7  ;;  %v4951_v12 = vadd.f32 %v4950_v51, %v4851_v10 }
 0x461   : > { %v5041_v34 = vpop.f32.mrf.mxu0 }
 0x462   : > { %v5141_v1 = vadd.f32 %v6041_v61, %v5048_v47  ;;  %v5042_v29 = vadd.f32 %v5041_v34, %v4935_v59 }
 0x463   : > { %v6030_v62 = vpop.f32.mrf.mxu0 }
 0x464   : > { %5501 = vst.msk [vmem:[%s8870_s0 + $0x38] sm:$0xff] %vm2816_vm5, %v5141_v1  ;;  %v5135_v37 = vadd.f32 %v5134_v20, %v5042_v29  ;;  %v5060_v36 = vadd.f32 %v6030_v62, %v4959_v23 }
 0x465   : > { %v5053_v14 = vpop.f32.mrf.mxu0 }
 0x466   : > { %5500 = vst.msk [vmem:[%s8870_s0 + $0x30] sm:$0xff] %vm2816_vm5, %v5135_v37  ;;  %v5153_v3 = vadd.f32 %v6044_v9, %v5060_v36  ;;  %v5054_v27 = vadd.f32 %v5053_v14, %v4951_v12 }
 0x468   : > { %5505 = vst.msk [vmem:[%s8870_s0 + $0x78] sm:$0xff] %vm2816_vm5, %v5153_v3  ;;  %v5147_v56 = vadd.f32 %v5146_v18, %v5054_v27 }
 0x46a   : > { %5504 = vst.msk [vmem:[%s8870_s0 + $0x70] sm:$0xff] %vm2816_vm5, %v5147_v56 }
 0x46b   : > { %6249 = shalt.err (!%p6246_p6)
}
 0x46c   : > { %s6250_s19 = scalar_lea.hbm %s9151_s6, 2048  ;;  %s6254_s9 = scalar_lea.hbm %s9768_s5, 4096 }
 0x46d   : > { %p6251_p9 = scmp.ne.s32.totalorder %s9151_s6, %s6250_s19  ;;  %p6255_p8 = scmp.lt.s32.totalorder %s9151_s6, %s9768_s5 }
 0x46e   : > { %p6256_p5 = scmp.lt.s32.totalorder %s6254_s9, %s6250_s19 }
 0x46f   : > { %p6252_p10 = pnand %p6251_p9, %p6471_p12 }
 0x470   : > { %p6257_p0 = por %p6256_p5, %p6255_p8 }
 0x471   : > { %p6253_p3 = pneg %p6252_p10 }
 0x473   : > { %p6258_p7 = pnand %p6257_p0, %p6253_p3 }
 0x475   : > { %6261 = shalt.err (!%p6258_p7)
}
 0x476   : > { %s6338_s10 = smov 128   ;;  %s6339_s12 = smov 8  }
 0x477   : > { %6055 = dma.vmem_to_hbm [thread:$0]  (%p6471_p12), %s9153_s17, 2048, %s9151_s6, %s5169_s21, %s6338_s10, %s6338_s10, %s6339_s12  }
 0x478 PF: > { %s9769_s13 = sld [smem:[#allocation15_spill]] }
 0x479   : > { %s9770_s20 = sld [smem:[#allocation24_spill]] }
 0x47a   : > { %s9771_s25 = sld [smem:[#allocation20_spill]] }
 0x47e   : > { %s5199_s26 = sand.u32 1, %s9769_s13  }
 0x47f   : > { %p9772_p11 = scmp.ne.s32.totalorder %s9770_s20, 0  ;;  %s5200_s4 = scalar_lea.sflag [#allocation4], %s5199_s26 }
 0x480   : > { %p9773_p2 = scmp.ge.s32.totalorder %s9771_s25, 2 }
 0x482   : > { %p6072_p13 = pnand %p9773_p2, %p9772_p11 }
 0x484   : > { %p6073_p4 = pneg %p6072_p13 }
 0x486   : > { %6299 = dma.done.wait (%p6073_p4), %s5200_s4, 2048  }
 0x487   : > { %6301 = vsyncadd (%p6073_p4), %s5200_s4, 4294965248  ;;  %s26_s26 = sadd.s32 1, %s9771_s25   ;;  %s9774_s21 = sld [smem:[#allocation16_spill]] }
 0x488   : > { %p23_p1 = scmp.ge.s32.totalorder %s26_s26, 4   ;;  %s9775_s22 = sld [smem:[#allocation17_spill]] }
 0x489   : > { %s9776_s23 = sld [smem:[#allocation22_spill]] }
 0x48a   : > { %s9777_s24 = sld [smem:[#allocation19_spill]]  ;;  %25 = sbr.rel (!%p23_p1) target bundleno = 17 (0x11), region = 125 }
 0x48b   : > { %s9778_s25 = sld [smem:[#allocation21_spill]] }
 0x48f   :  { %5205 = vsyncpa [#allocation3], 1 }
 0x490   :  { %5207 = vsyncpa [#allocation3 + $0x1], 1 }
 0x491   :  { %5208 = vsyncpa [#allocation8], 1 }
 0x492   :  { %5210 = vsyncpa [#allocation8 + $0x1], 1 }
 0x493   :  { %5211 = vsyncpa [#allocation4], 1 }
 0x494   :  { %5213 = vsyncpa [#allocation4 + $0x1], 1 }
 0x495   :  { %5214 = vsyncpa [#allocation5], 1 }
 0x496   :  { %5216 = vsyncpa [#allocation5 + $0x1], 1 }

</bundles_post_ra>
